<compile_context>
chip_gen: v5e
topology: v5e:2x2
jax: 0.10.0
libtpu: 0.0.40
codegen_flags: <defaults>
</compile_context>

<pallas_src>
import functools

import jax
import jax.numpy as jnp
from jax.experimental import pallas as pl
from jax.experimental.pallas import tpu as pltpu


def _round_up(x, m):
    return (x + m - 1) // m * m


# ---------------------------------------------------------------------------
# Fused GEMM kernel: out = A @ W (+ bias) [+ LeakyReLU] [+ per-column stats]
# ---------------------------------------------------------------------------

def _gemm_fused_kernel(a_ref, w_ref, b_ref, o_ref, *stat_refs,
                       apply_lrelu, slope):
    k = pl.program_id(2)

    @pl.when(k == 0)
    def _init():
        o_ref[...] = jnp.zeros_like(o_ref)

    # bf16 x bf16 -> f32, accumulated directly in the resident output block.
    o_ref[...] += jnp.dot(a_ref[...], w_ref[...],
                          preferred_element_type=jnp.float32)

    @pl.when(k == pl.num_programs(2) - 1)
    def _epilogue():
        y = o_ref[...] + b_ref[...]
        if apply_lrelu:
            y = jnp.where(y >= 0, y, slope * y)
        o_ref[...] = y
        if stat_refs:  # per-(M-tile, N-tile) column sums for BatchNorm
            sum_ref, sq_ref = stat_refs
            sum_ref[...] = jnp.sum(y, axis=0, keepdims=True)[None]
            sq_ref[...] = jnp.sum(y * y, axis=0, keepdims=True)[None]


def gemm_fused(a, w, b, *, tm, tn, tk, apply_lrelu=False, compute_stats=False,
               slope=0.2):
    """a: (Mp, Kp) bf16, w: (Kp, Np) bf16, b: (1, Np) f32 -> f32 outputs."""
    Mp, Kp = a.shape
    Np = w.shape[1]
    gm, gn, gk = Mp // tm, Np // tn, Kp // tk

    out_shape = (jax.ShapeDtypeStruct((Mp, Np), jnp.float32),)
    out_specs = (pl.BlockSpec((tm, tn), lambda i, j, k: (i, j)),)
    if compute_stats:
        out_shape += (jax.ShapeDtypeStruct((gm, 1, Np), jnp.float32),
                      jax.ShapeDtypeStruct((gm, 1, Np), jnp.float32))
        out_specs += (pl.BlockSpec((1, 1, tn), lambda i, j, k: (i, 0, j)),
                      pl.BlockSpec((1, 1, tn), lambda i, j, k: (i, 0, j)))

    kern = functools.partial(_gemm_fused_kernel,
                             apply_lrelu=apply_lrelu, slope=slope)
    outs = pl.pallas_call(
        kern,
        out_shape=out_shape,
        grid_spec=pltpu.PrefetchScalarGridSpec(
            num_scalar_prefetch=0,
            grid=(gm, gn, gk),
            in_specs=[
                pl.BlockSpec((tm, tk), lambda i, j, k: (i, k)),
                pl.BlockSpec((tk, tn), lambda i, j, k: (k, j)),
                pl.BlockSpec((1, tn), lambda i, j, k: (0, j)),
            ],
            out_specs=out_specs,
        ),
        compiler_params=pltpu.CompilerParams(
            dimension_semantics=("parallel", "parallel", "arbitrary"),
            # tiles total only a few MiB; explicit limit stays well under
            # v7x's 64 MiB physical VMEM (and v5e/v6e's 128 MiB).
            vmem_limit_bytes=48 * 1024 * 1024,
        ),
    )(a, w, b)
    if compute_stats:
        return outs[0], outs[1], outs[2]
    return outs[0]


# ---------------------------------------------------------------------------
# BatchNorm affine + LeakyReLU apply (row-tiled, parallel grid)
# ---------------------------------------------------------------------------

def _affine_lrelu_kernel(x_ref, scale_ref, shift_ref, o_ref, *, slope):
    y = x_ref[...] * scale_ref[...] + shift_ref[...]
    o_ref[...] = jnp.where(y >= 0, y, slope * y)


def affine_lrelu(x, scale, shift, *, slope=0.2):
    Mp, Np = x.shape
    tm = Mp if Mp <= 1024 else 512  # Mp is a multiple of 512 whenever it exceeds 512
    return pl.pallas_call(
        functools.partial(_affine_lrelu_kernel, slope=slope),
        out_shape=jax.ShapeDtypeStruct((Mp, Np), jnp.float32),
        grid_spec=pltpu.PrefetchScalarGridSpec(
            num_scalar_prefetch=0,
            grid=(Mp // tm,),
            in_specs=[
                pl.BlockSpec((tm, Np), lambda i: (i, 0)),
                pl.BlockSpec((1, Np), lambda i: (0, 0)),
                pl.BlockSpec((1, Np), lambda i: (0, 0)),
            ],
            out_specs=pl.BlockSpec((tm, Np), lambda i: (i, 0)),
        ),
        compiler_params=pltpu.CompilerParams(
            dimension_semantics=("parallel",)),
    )(x, scale, shift)


# ---------------------------------------------------------------------------
# Plain-JAX glue: im2col (NHWC, channel-minor K), tiling, layer plumbing
# ---------------------------------------------------------------------------

def im2col_nhwc(x, kh, kw, stride, pad):
    """x: (N, H, W, C) -> (N*Ho*Wo, kh*kw*C); K ordered (kh, kw, C)."""
    N, H, W, C = x.shape
    xp = jnp.pad(x, ((0, 0), (pad, pad), (pad, pad), (0, 0)))
    Ho = (H + 2 * pad - kh) // stride + 1
    Wo = (W + 2 * pad - kw) // stride + 1
    cols = []
    for i in range(kh):
        for j in range(kw):
            cols.append(xp[:, i:i + stride * Ho:stride,
                           j:j + stride * Wo:stride, :])      # (N, Ho, Wo, C)
    col = jnp.stack(cols, axis=3)                             # (N, Ho, Wo, kh*kw, C)
    return col.reshape(N * Ho * Wo, kh * kw * C), Ho, Wo


def _gemm_tiles(M, K, Cout):
    if M <= 512:
        tm = _round_up(max(M, 8), 8)
        Mp = tm
    else:
        tm = 512
        Mp = _round_up(M, tm)
    Kp = _round_up(K, 128)
    tk = next(t for t in (512, 256, 128) if Kp % t == 0)
    Np = _round_up(max(Cout, 128), 128)
    tn = 256 if Np % 256 == 0 else 128                        # 256-wide feeds v6e/v7x MXU
    return tm, Mp, tk, Kp, tn, Np


def conv2d_pallas(x_nhwc, w, b, stride, pad, *,
                  apply_lrelu=False, compute_stats=False):
    """Conv2d via im2col glue + fused Pallas GEMM.

    Returns the padded (Mp, Np) f32 GEMM output (plus per-tile column stats when
    compute_stats=True) and metadata (N, Ho, Wo, Cout, M).
    """
    N = x_nhwc.shape[0]
    Cout, Cin, kh, kw = w.shape
    col, Ho, Wo = im2col_nhwc(x_nhwc, kh, kw, stride, pad)
    M, K = col.shape
    tm, Mp, tk, Kp, tn, Np = _gemm_tiles(M, K, Cout)

    # Single padded bf16 materialization of the GEMM operands.
    a_p = jnp.pad(col.astype(jnp.bfloat16), ((0, Mp - M), (0, Kp - K)))
    wm = w.transpose(2, 3, 1, 0).reshape(K, Cout).astype(jnp.bfloat16)
    w_p = jnp.pad(wm, ((0, Kp - K), (0, Np - Cout)))
    b_p = jnp.zeros((1, Np), jnp.float32)
    if b is not None:
        b_p = b_p.at[0, :Cout].set(b)

    res = gemm_fused(a_p, w_p, b_p, tm=tm, tn=tn, tk=tk,
                     apply_lrelu=apply_lrelu, compute_stats=compute_stats)
    return res, (N, Ho, Wo, Cout, M)


def _bn_scale_shift(sums, sqs, M, Cout, gamma, beta, eps=1e-5):
    """PyTorch training-mode BatchNorm: per-batch mean, biased variance."""
    s = jnp.sum(sums, axis=(0, 1))[:Cout]
    sq = jnp.sum(sqs, axis=(0, 1))[:Cout]
    mean = s / M
    var = sq / M - mean * mean
    scale = gamma * jax.lax.rsqrt(var + eps)
    shift = beta - mean * scale
    return scale, shift


# ---------------------------------------------------------------------------
# Discriminator forward
# ---------------------------------------------------------------------------

def discriminator_forward(x_nchw, params, slope=0.2):
    x = x_nchw.transpose(0, 2, 3, 1)                          # to NHWC once

    # conv1: bias + LeakyReLU fused into the GEMM epilogue.
    out_p, (N, Ho, Wo, Cout, M) = conv2d_pallas(
        x, params['w1'], params['b1'], stride=2, pad=1, apply_lrelu=True)
    y = out_p[:M, :Cout].reshape(N, Ho, Wo, Cout)

    # layers 2..4: conv (no bias) with column stats fused into the GEMM epilogue,
    # then BatchNorm affine + LeakyReLU as one tiled Pallas pass.
    for i in (2, 3, 4):
        (out_p, sums, sqs), (N, Ho, Wo, Cout, M) = conv2d_pallas(
            y, params[f'w{i}'], None, stride=2, pad=1, compute_stats=True)
        scale, shift = _bn_scale_shift(sums, sqs, M, Cout,
                                       params[f'gamma{i}'], params[f'beta{i}'])
        Np = out_p.shape[1]
        scale_p = jnp.zeros((1, Np), jnp.float32).at[0, :Cout].set(scale)
        shift_p = jnp.zeros((1, Np), jnp.float32).at[0, :Cout].set(shift)
        out_p = affine_lrelu(out_p, scale_p, shift_p, slope=slope)
        y = out_p[:M, :Cout].reshape(N, Ho, Wo, Cout)

    # conv5: stride 1, bias, no activation.
    out_p, (N, Ho, Wo, Cout, M) = conv2d_pallas(
        y, params['w5'], params['b5'], stride=1, pad=1)
    return out_p[:M, :Cout].reshape(N, Ho, Wo, Cout).transpose(0, 3, 1, 2)


# ---------------------------------------------------------------------------
# Deterministic parameter init (shapes per Discriminator.__init__)
# ---------------------------------------------------------------------------

def init_params(input_nc, ndf, key):
    ks = jax.random.split(key, 12)

    def w_init(k, shape, fan_in):
        return jax.random.normal(k, shape, jnp.float32) / jnp.sqrt(float(fan_in))

    p = {}
    p['w1'] = w_init(ks[0], (ndf, input_nc, 4, 4), input_nc * 16)
    p['b1'] = 0.01 * jax.random.normal(ks[1], (ndf,), jnp.float32)

    chans = [ndf, ndf * 2, ndf * 4, ndf * 8]
    for idx, i in enumerate((2, 3, 4)):
        cin, cout = chans[idx], chans[idx + 1]
        p[f'w{i}'] = w_init(ks[2 + 3 * idx], (cout, cin, 4, 4), cin * 16)
        p[f'gamma{i}'] = 1.0 + 0.1 * jax.random.normal(ks[3 + 3 * idx], (cout,), jnp.float32)
        p[f'beta{i}'] = 0.1 * jax.random.normal(ks[4 + 3 * idx], (cout,), jnp.float32)

    p['w5'] = w_init(ks[11], (1, ndf * 8, 4, 4), ndf * 8 * 16)
    p['b5'] = jnp.full((1,), 0.01, jnp.float32)
    return p


# ---------------------------------------------------------------------------
# Pure-JAX f32 reference (for self-validation)
# ---------------------------------------------------------------------------

def reference_forward(x, params, eps=1e-5):
    def conv(x, w, b, stride, pad):
        y = jax.lax.conv_general_dilated(
            x, w, (stride, stride), [(pad, pad), (pad, pad)],
            dimension_numbers=('NCHW', 'OIHW', 'NCHW'))
        if b is not None:
            y = y + b[None, :, None, None]
        return y

    def bn(x, gamma, beta):
        mean = x.mean(axis=(0, 2, 3), keepdims=True)
        var = x.var(axis=(0, 2, 3), keepdims=True)   # biased, matches PyTorch BN norm
        xn = (x - mean) * jax.lax.rsqrt(var + eps)
        return xn * gamma[None, :, None, None] + beta[None, :, None, None]

    def lrelu(x):
        return jnp.where(x >= 0, x, 0.2 * x)

    y = lrelu(conv(x, params['w1'], params['b1'], 2, 1))
    for i in (2, 3, 4):
        y = conv(y, params[f'w{i}'], None, 2, 1)
        y = lrelu(bn(y, params[f'gamma{i}'], params[f'beta{i}']))
    return conv(y, params['w5'], params['b5'], 1, 1)


# ---------------------------------------------------------------------------

if __name__ == "__main__":
    key = jax.random.PRNGKey(0)
    kx, kp = jax.random.split(key)

    batch, input_nc, ndf, hw = 2, 3, 8, 64
    x = jax.random.normal(kx, (batch, input_nc, hw, hw), jnp.float32)
    params = init_params(input_nc, ndf, kp)

    fwd = jax.jit(discriminator_forward)
    out = jax.block_until_ready(fwd(x, params))

    ref = reference_forward(x, params)
    assert out.shape == ref.shape == (batch, 1, 3, 3), (out.shape, ref.shape)
    max_err = float(jnp.max(jnp.abs(out - ref)))
    ref_max = float(jnp.max(jnp.abs(ref)))
    # bf16 MXU inputs with f32 accumulation: allow ~2% rel error accumulated over 5 layers.
    assert max_err <= 2e-2 + 2e-2 * ref_max, \
        f"mismatch vs reference: {max_err} (ref max {ref_max})"

    print("KERNEL_OK")
</pallas_src>

<mosaic_0001>
module attributes {stable_mosaic.version = 11 : i64} {
  func.func @_gemm_fused_kernel(%arg0: i32, %arg1: i32, %arg2: i32, %arg3: memref<512x128xbf16, #tpu.memory_space<vmem>>, %arg4: memref<128x128xbf16, #tpu.memory_space<vmem>>, %arg5: memref<1x128xf32, #tpu.memory_space<vmem>>, %arg6: memref<512x128xf32, #tpu.memory_space<vmem>>) attributes {dimension_semantics = [#tpu.dimension_semantics<parallel>, #tpu.dimension_semantics<parallel>, #tpu.dimension_semantics<arbitrary>], iteration_bounds = array<i64: 4, 1, 1>, scalar_prefetch = 0 : i64, scratch_operands = 0 : i64, tpu.core_type = #tpu.core_type<tc>, window_params = [{transform_indices = @transform_0, window_bounds = array<i64: 512, 128>}, {transform_indices = @transform_1, window_bounds = array<i64: 128, 128>}, {transform_indices = @transform_2, window_bounds = array<i64: 1, 128>}, {transform_indices = @transform_3, window_bounds = array<i64: 512, 128>}]} {
    %c0_i32 = arith.constant 0 : i32
    %0 = arith.cmpi eq, %arg2, %c0_i32 : i32
    %1 = arith.extui %0 : i1 to i32
    %c0_i32_0 = arith.constant 0 : i32
    %2 = arith.cmpi ne, %1, %c0_i32_0 : i32
    scf.if %2 {
      %cst_10 = arith.constant 0.000000e+00 : f32
      %12 = vector.broadcast %cst_10 : f32 to vector<512x128xf32>
      %c0_11 = arith.constant 0 : index
      %c0_12 = arith.constant 0 : index
      %13 = vector.load %arg6[%c0_11, %c0_12] : memref<512x128xf32, #tpu.memory_space<vmem>>, vector<512x128xf32>
      tpu.vector_store %arg6[%c0_11, %c0_12], %12 {strides = array<i32>} : memref<512x128xf32, #tpu.memory_space<vmem>>, vector<512x128xf32>,
    } else {
    }
    %c0 = arith.constant 0 : index
    %c0_1 = arith.constant 0 : index
    %3 = vector.load %arg6[%c0, %c0_1] : memref<512x128xf32, #tpu.memory_space<vmem>>, vector<512x128xf32>
    %c0_2 = arith.constant 0 : index
    %c0_3 = arith.constant 0 : index
    %4 = vector.load %arg3[%c0_2, %c0_3] : memref<512x128xbf16, #tpu.memory_space<vmem>>, vector<512x128xbf16>
    %c0_4 = arith.constant 0 : index
    %c0_5 = arith.constant 0 : index
    %5 = vector.load %arg4[%c0_4, %c0_5] : memref<128x128xbf16, #tpu.memory_space<vmem>>, vector<128x128xbf16>
    %cst = arith.constant dense<0.000000e+00> : vector<512x128xf32>
    %6 = tpu.matmul %4, %5, %cst {dimension_numbers = #tpu.dot_dimension_numbers<[1], [0], [0], [1], [0, 0, 1, 1], [], []>} : vector<512x128xbf16>, vector<128x128xbf16>, vector<512x128xf32> -> vector<512x128xf32>
    %7 = arith.addf %3, %6 : vector<512x128xf32>
    %c0_6 = arith.constant 0 : index
    %c0_7 = arith.constant 0 : index
    %8 = vector.load %arg6[%c0_6, %c0_7] : memref<512x128xf32, #tpu.memory_space<vmem>>, vector<512x128xf32>
    tpu.vector_store %arg6[%c0_6, %c0_7], %7 {strides = array<i32>} : memref<512x128xf32, #tpu.memory_space<vmem>>, vector<512x128xf32>,
    %c0_i32_8 = arith.constant 0 : i32
    %9 = arith.cmpi eq, %arg2, %c0_i32_8 : i32
    %10 = arith.extui %9 : i1 to i32
    %c0_i32_9 = arith.constant 0 : i32
    %11 = arith.cmpi ne, %10, %c0_i32_9 : i32
    scf.if %11 {
      %c0_10 = arith.constant 0 : index
      %c0_11 = arith.constant 0 : index
      %12 = vector.load %arg6[%c0_10, %c0_11] : memref<512x128xf32, #tpu.memory_space<vmem>>, vector<512x128xf32>
      %c0_12 = arith.constant 0 : index
      %c0_13 = arith.constant 0 : index
      %13 = vector.load %arg5[%c0_12, %c0_13] : memref<1x128xf32, #tpu.memory_space<vmem>>, vector<1x128xf32>
      %14 = vector.broadcast %13 : vector<1x128xf32> to vector<512x128xf32>
      %15 = arith.addf %12, %14 : vector<512x128xf32>
      %cst_14 = arith.constant 0.000000e+00 : f32
      %16 = vector.broadcast %cst_14 : f32 to vector<512x128xf32>
      %17 = arith.cmpf oge, %15, %16 : vector<512x128xf32>
      %cst_15 = arith.constant 2.000000e-01 : f32
      %18 = vector.broadcast %cst_15 : f32 to vector<512x128xf32>
      %19 = arith.mulf %18, %15 : vector<512x128xf32>
      %20 = arith.select %17, %15, %19 : vector<512x128xi1>, vector<512x128xf32>
      %c0_16 = arith.constant 0 : index
      %c0_17 = arith.constant 0 : index
      %21 = vector.load %arg6[%c0_16, %c0_17] : memref<512x128xf32, #tpu.memory_space<vmem>>, vector<512x128xf32>
      tpu.vector_store %arg6[%c0_16, %c0_17], %20 {strides = array<i32>} : memref<512x128xf32, #tpu.memory_space<vmem>>, vector<512x128xf32>,
    } else {
    }
    return
  }
  func.func @transform_0(%arg0: i32, %arg1: i32, %arg2: i32) -> (i32, i32) {
    %c0_i32 = arith.constant 0 : i32
    return %arg0, %arg2 : i32, i32
  }
  func.func @transform_1(%arg0: i32, %arg1: i32, %arg2: i32) -> (i32, i32) {
    %c0_i32 = arith.constant 0 : i32
    return %arg2, %arg1 : i32, i32
  }
  func.func @transform_2(%arg0: i32, %arg1: i32, %arg2: i32) -> (i32, i32) {
    %c0_i32 = arith.constant 0 : i32
    %c0_i32_0 = arith.constant 0 : i32
    return %c0_i32, %arg1 : i32, i32
  }
  func.func @transform_3(%arg0: i32, %arg1: i32, %arg2: i32) -> (i32, i32) {
    %c0_i32 = arith.constant 0 : i32
    return %arg0, %arg1 : i32, i32
  }
}

module attributes {stable_mosaic.version = 11 : i64} {
  func.func @_gemm_fused_kernel(%arg0: i32, %arg1: i32, %arg2: i32, %arg3: memref<512x128xbf16, #tpu.memory_space<vmem>>, %arg4: memref<128x128xbf16, #tpu.memory_space<vmem>>, %arg5: memref<1x128xf32, #tpu.memory_space<vmem>>, %arg6: memref<512x128xf32, #tpu.memory_space<vmem>>, %arg7: memref<1x1x128xf32, #tpu.memory_space<vmem>>, %arg8: memref<1x1x128xf32, #tpu.memory_space<vmem>>) attributes {dimension_semantics = [#tpu.dimension_semantics<parallel>, #tpu.dimension_semantics<parallel>, #tpu.dimension_semantics<arbitrary>], iteration_bounds = array<i64: 1, 1, 1>, scalar_prefetch = 0 : i64, scratch_operands = 0 : i64, tpu.core_type = #tpu.core_type<tc>, window_params = [{transform_indices = @transform_0, window_bounds = array<i64: 512, 128>}, {transform_indices = @transform_1, window_bounds = array<i64: 128, 128>}, {transform_indices = @transform_2, window_bounds = array<i64: 1, 128>}, {transform_indices = @transform_3, window_bounds = array<i64: 512, 128>}, {transform_indices = @transform_4, window_bounds = array<i64: 1, 1, 128>}, {transform_indices = @transform_5, window_bounds = array<i64: 1, 1, 128>}]} {
    %c0_i32 = arith.constant 0 : i32
    %0 = arith.cmpi eq, %arg2, %c0_i32 : i32
    %1 = arith.extui %0 : i1 to i32
    %c0_i32_0 = arith.constant 0 : i32
    %2 = arith.cmpi ne, %1, %c0_i32_0 : i32
    scf.if %2 {
      %cst_10 = arith.constant 0.000000e+00 : f32
      %12 = vector.broadcast %cst_10 : f32 to vector<512x128xf32>
      %c0_11 = arith.constant 0 : index
      %c0_12 = arith.constant 0 : index
      %13 = vector.load %arg6[%c0_11, %c0_12] : memref<512x128xf32, #tpu.memory_space<vmem>>, vector<512x128xf32>
      tpu.vector_store %arg6[%c0_11, %c0_12], %12 {strides = array<i32>} : memref<512x128xf32, #tpu.memory_space<vmem>>, vector<512x128xf32>,
    } else {
    }
    %c0 = arith.constant 0 : index
    %c0_1 = arith.constant 0 : index
    %3 = vector.load %arg6[%c0, %c0_1] : memref<512x128xf32, #tpu.memory_space<vmem>>, vector<512x128xf32>
    %c0_2 = arith.constant 0 : index
    %c0_3 = arith.constant 0 : index
    %4 = vector.load %arg3[%c0_2, %c0_3] : memref<512x128xbf16, #tpu.memory_space<vmem>>, vector<512x128xbf16>
    %c0_4 = arith.constant 0 : index
    %c0_5 = arith.constant 0 : index
    %5 = vector.load %arg4[%c0_4, %c0_5] : memref<128x128xbf16, #tpu.memory_space<vmem>>, vector<128x128xbf16>
    %cst = arith.constant dense<0.000000e+00> : vector<512x128xf32>
    %6 = tpu.matmul %4, %5, %cst {dimension_numbers = #tpu.dot_dimension_numbers<[1], [0], [0], [1], [0, 0, 1, 1], [], []>} : vector<512x128xbf16>, vector<128x128xbf16>, vector<512x128xf32> -> vector<512x128xf32>
    %7 = arith.addf %3, %6 : vector<512x128xf32>
    %c0_6 = arith.constant 0 : index
    %c0_7 = arith.constant 0 : index
    %8 = vector.load %arg6[%c0_6, %c0_7] : memref<512x128xf32, #tpu.memory_space<vmem>>, vector<512x128xf32>
    tpu.vector_store %arg6[%c0_6, %c0_7], %7 {strides = array<i32>} : memref<512x128xf32, #tpu.memory_space<vmem>>, vector<512x128xf32>,
    %c0_i32_8 = arith.constant 0 : i32
    %9 = arith.cmpi eq, %arg2, %c0_i32_8 : i32
    %10 = arith.extui %9 : i1 to i32
    %c0_i32_9 = arith.constant 0 : i32
    %11 = arith.cmpi ne, %10, %c0_i32_9 : i32
    scf.if %11 {
      %c0_10 = arith.constant 0 : index
      %c0_11 = arith.constant 0 : index
      %12 = vector.load %arg6[%c0_10, %c0_11] : memref<512x128xf32, #tpu.memory_space<vmem>>, vector<512x128xf32>
      %c0_12 = arith.constant 0 : index
      %c0_13 = arith.constant 0 : index
      %13 = vector.load %arg5[%c0_12, %c0_13] : memref<1x128xf32, #tpu.memory_space<vmem>>, vector<1x128xf32>
      %14 = vector.broadcast %13 : vector<1x128xf32> to vector<512x128xf32>
      %15 = arith.addf %12, %14 : vector<512x128xf32>
      %c0_14 = arith.constant 0 : index
      %c0_15 = arith.constant 0 : index
      %16 = vector.load %arg6[%c0_14, %c0_15] : memref<512x128xf32, #tpu.memory_space<vmem>>, vector<512x128xf32>
      tpu.vector_store %arg6[%c0_14, %c0_15], %15 {strides = array<i32>} : memref<512x128xf32, #tpu.memory_space<vmem>>, vector<512x128xf32>,
      %cst_16 = arith.constant dense<0.000000e+00> : vector<128xf32>
      %17 = vector.multi_reduction <add>, %15, %cst_16 [0] : vector<512x128xf32> to vector<128xf32>
      %18 = vector.shape_cast %17 : vector<128xf32> to vector<1x128xf32>
      %19 = vector.shape_cast %18 : vector<1x128xf32> to vector<1x1x128xf32>
      %c0_17 = arith.constant 0 : index
      %c0_18 = arith.constant 0 : index
      %c0_19 = arith.constant 0 : index
      %20 = vector.load %arg7[%c0_17, %c0_18, %c0_19] : memref<1x1x128xf32, #tpu.memory_space<vmem>>, vector<1x1x128xf32>
      tpu.vector_store %arg7[%c0_17, %c0_18, %c0_19], %19 {strides = array<i32>} : memref<1x1x128xf32, #tpu.memory_space<vmem>>, vector<1x1x128xf32>,
      %21 = arith.mulf %15, %15 : vector<512x128xf32>
      %cst_20 = arith.constant dense<0.000000e+00> : vector<128xf32>
      %22 = vector.multi_reduction <add>, %21, %cst_20 [0] : vector<512x128xf32> to vector<128xf32>
      %23 = vector.shape_cast %22 : vector<128xf32> to vector<1x128xf32>
      %24 = vector.shape_cast %23 : vector<1x128xf32> to vector<1x1x128xf32>
      %c0_21 = arith.constant 0 : index
      %c0_22 = arith.constant 0 : index
      %c0_23 = arith.constant 0 : index
      %25 = vector.load %arg8[%c0_21, %c0_22, %c0_23] : memref<1x1x128xf32, #tpu.memory_space<vmem>>, vector<1x1x128xf32>
      tpu.vector_store %arg8[%c0_21, %c0_22, %c0_23], %24 {strides = array<i32>} : memref<1x1x128xf32, #tpu.memory_space<vmem>>, vector<1x1x128xf32>,
    } else {
    }
    return
  }
  func.func @transform_0(%arg0: i32, %arg1: i32, %arg2: i32) -> (i32, i32) {
    %c0_i32 = arith.constant 0 : i32
    return %arg0, %arg2 : i32, i32
  }
  func.func @transform_1(%arg0: i32, %arg1: i32, %arg2: i32) -> (i32, i32) {
    %c0_i32 = arith.constant 0 : i32
    return %arg2, %arg1 : i32, i32
  }
  func.func @transform_2(%arg0: i32, %arg1: i32, %arg2: i32) -> (i32, i32) {
    %c0_i32 = arith.constant 0 : i32
    %c0_i32_0 = arith.constant 0 : i32
    return %c0_i32, %arg1 : i32, i32
  }
  func.func @transform_3(%arg0: i32, %arg1: i32, %arg2: i32) -> (i32, i32) {
    %c0_i32 = arith.constant 0 : i32
    return %arg0, %arg1 : i32, i32
  }
  func.func @transform_4(%arg0: i32, %arg1: i32, %arg2: i32) -> (i32, i32, i32) {
    %c0_i32 = arith.constant 0 : i32
    %c0_i32_0 = arith.constant 0 : i32
    return %arg0, %c0_i32, %arg1 : i32, i32, i32
  }
  func.func @transform_5(%arg0: i32, %arg1: i32, %arg2: i32) -> (i32, i32, i32) {
    %c0_i32 = arith.constant 0 : i32
    %c0_i32_0 = arith.constant 0 : i32
    return %arg0, %c0_i32, %arg1 : i32, i32, i32
  }
}

module attributes {stable_mosaic.version = 11 : i64} {
  func.func @_affine_lrelu_kernel(%arg0: i32, %arg1: memref<512x128xf32, #tpu.memory_space<vmem>>, %arg2: memref<1x128xf32, #tpu.memory_space<vmem>>, %arg3: memref<1x128xf32, #tpu.memory_space<vmem>>, %arg4: memref<512x128xf32, #tpu.memory_space<vmem>>) attributes {dimension_semantics = [#tpu.dimension_semantics<parallel>], iteration_bounds = array<i64: 1>, scalar_prefetch = 0 : i64, scratch_operands = 0 : i64, tpu.core_type = #tpu.core_type<tc>, window_params = [{transform_indices = @transform_0, window_bounds = array<i64: 512, 128>}, {pipeline_mode = #tpu.pipeline_mode<synchronous>, transform_indices = @transform_1, window_bounds = array<i64: 1, 128>}, {pipeline_mode = #tpu.pipeline_mode<synchronous>, transform_indices = @transform_2, window_bounds = array<i64: 1, 128>}, {transform_indices = @transform_3, window_bounds = array<i64: 512, 128>}]} {
    %c0 = arith.constant 0 : index
    %c0_0 = arith.constant 0 : index
    %0 = vector.load %arg1[%c0, %c0_0] : memref<512x128xf32, #tpu.memory_space<vmem>>, vector<512x128xf32>
    %c0_1 = arith.constant 0 : index
    %c0_2 = arith.constant 0 : index
    %1 = vector.load %arg2[%c0_1, %c0_2] : memref<1x128xf32, #tpu.memory_space<vmem>>, vector<1x128xf32>
    %2 = vector.broadcast %1 : vector<1x128xf32> to vector<512x128xf32>
    %3 = arith.mulf %0, %2 : vector<512x128xf32>
    %c0_3 = arith.constant 0 : index
    %c0_4 = arith.constant 0 : index
    %4 = vector.load %arg3[%c0_3, %c0_4] : memref<1x128xf32, #tpu.memory_space<vmem>>, vector<1x128xf32>
    %5 = vector.broadcast %4 : vector<1x128xf32> to vector<512x128xf32>
    %6 = arith.addf %3, %5 : vector<512x128xf32>
    %cst = arith.constant 0.000000e+00 : f32
    %7 = vector.broadcast %cst : f32 to vector<512x128xf32>
    %8 = arith.cmpf oge, %6, %7 : vector<512x128xf32>
    %cst_5 = arith.constant 2.000000e-01 : f32
    %9 = vector.broadcast %cst_5 : f32 to vector<512x128xf32>
    %10 = arith.mulf %9, %6 : vector<512x128xf32>
    %11 = arith.select %8, %6, %10 : vector<512x128xi1>, vector<512x128xf32>
    %c0_6 = arith.constant 0 : index
    %c0_7 = arith.constant 0 : index
    %12 = vector.load %arg4[%c0_6, %c0_7] : memref<512x128xf32, #tpu.memory_space<vmem>>, vector<512x128xf32>
    tpu.vector_store %arg4[%c0_6, %c0_7], %11 {strides = array<i32>} : memref<512x128xf32, #tpu.memory_space<vmem>>, vector<512x128xf32>,
    return
  }
  func.func @transform_0(%arg0: i32) -> (i32, i32) {
    %c0_i32 = arith.constant 0 : i32
    %c0_i32_0 = arith.constant 0 : i32
    return %arg0, %c0_i32 : i32, i32
  }
  func.func @transform_1(%arg0: i32) -> (i32, i32) {
    %c0_i32 = arith.constant 0 : i32
    %c0_i32_0 = arith.constant 0 : i32
    %c0_i32_1 = arith.constant 0 : i32
    return %c0_i32, %c0_i32_0 : i32, i32
  }
  func.func @transform_2(%arg0: i32) -> (i32, i32) {
    %c0_i32 = arith.constant 0 : i32
    %c0_i32_0 = arith.constant 0 : i32
    %c0_i32_1 = arith.constant 0 : i32
    return %c0_i32, %c0_i32_0 : i32, i32
  }
  func.func @transform_3(%arg0: i32) -> (i32, i32) {
    %c0_i32 = arith.constant 0 : i32
    %c0_i32_0 = arith.constant 0 : i32
    return %arg0, %c0_i32 : i32, i32
  }
}

module attributes {stable_mosaic.version = 11 : i64} {
  func.func @_gemm_fused_kernel(%arg0: i32, %arg1: i32, %arg2: i32, %arg3: memref<128x256xbf16, #tpu.memory_space<vmem>>, %arg4: memref<256x128xbf16, #tpu.memory_space<vmem>>, %arg5: memref<1x128xf32, #tpu.memory_space<vmem>>, %arg6: memref<128x128xf32, #tpu.memory_space<vmem>>, %arg7: memref<1x1x128xf32, #tpu.memory_space<vmem>>, %arg8: memref<1x1x128xf32, #tpu.memory_space<vmem>>) attributes {dimension_semantics = [#tpu.dimension_semantics<parallel>, #tpu.dimension_semantics<parallel>, #tpu.dimension_semantics<arbitrary>], iteration_bounds = array<i64: 1, 1, 1>, scalar_prefetch = 0 : i64, scratch_operands = 0 : i64, tpu.core_type = #tpu.core_type<tc>, window_params = [{transform_indices = @transform_0, window_bounds = array<i64: 128, 256>}, {transform_indices = @transform_1, window_bounds = array<i64: 256, 128>}, {transform_indices = @transform_2, window_bounds = array<i64: 1, 128>}, {transform_indices = @transform_3, window_bounds = array<i64: 128, 128>}, {transform_indices = @transform_4, window_bounds = array<i64: 1, 1, 128>}, {transform_indices = @transform_5, window_bounds = array<i64: 1, 1, 128>}]} {
    %c0_i32 = arith.constant 0 : i32
    %0 = arith.cmpi eq, %arg2, %c0_i32 : i32
    %1 = arith.extui %0 : i1 to i32
    %c0_i32_0 = arith.constant 0 : i32
    %2 = arith.cmpi ne, %1, %c0_i32_0 : i32
    scf.if %2 {
      %cst_10 = arith.constant 0.000000e+00 : f32
      %12 = vector.broadcast %cst_10 : f32 to vector<128x128xf32>
      %c0_11 = arith.constant 0 : index
      %c0_12 = arith.constant 0 : index
      %13 = vector.load %arg6[%c0_11, %c0_12] : memref<128x128xf32, #tpu.memory_space<vmem>>, vector<128x128xf32>
      tpu.vector_store %arg6[%c0_11, %c0_12], %12 {strides = array<i32>} : memref<128x128xf32, #tpu.memory_space<vmem>>, vector<128x128xf32>,
    } else {
    }
    %c0 = arith.constant 0 : index
    %c0_1 = arith.constant 0 : index
    %3 = vector.load %arg6[%c0, %c0_1] : memref<128x128xf32, #tpu.memory_space<vmem>>, vector<128x128xf32>
    %c0_2 = arith.constant 0 : index
    %c0_3 = arith.constant 0 : index
    %4 = vector.load %arg3[%c0_2, %c0_3] : memref<128x256xbf16, #tpu.memory_space<vmem>>, vector<128x256xbf16>
    %c0_4 = arith.constant 0 : index
    %c0_5 = arith.constant 0 : index
    %5 = vector.load %arg4[%c0_4, %c0_5] : memref<256x128xbf16, #tpu.memory_space<vmem>>, vector<256x128xbf16>
    %cst = arith.constant dense<0.000000e+00> : vector<128x128xf32>
    %6 = tpu.matmul %4, %5, %cst {dimension_numbers = #tpu.dot_dimension_numbers<[1], [0], [0], [1], [0, 0, 1, 1], [], []>} : vector<128x256xbf16>, vector<256x128xbf16>, vector<128x128xf32> -> vector<128x128xf32>
    %7 = arith.addf %3, %6 : vector<128x128xf32>
    %c0_6 = arith.constant 0 : index
    %c0_7 = arith.constant 0 : index
    %8 = vector.load %arg6[%c0_6, %c0_7] : memref<128x128xf32, #tpu.memory_space<vmem>>, vector<128x128xf32>
    tpu.vector_store %arg6[%c0_6, %c0_7], %7 {strides = array<i32>} : memref<128x128xf32, #tpu.memory_space<vmem>>, vector<128x128xf32>,
    %c0_i32_8 = arith.constant 0 : i32
    %9 = arith.cmpi eq, %arg2, %c0_i32_8 : i32
    %10 = arith.extui %9 : i1 to i32
    %c0_i32_9 = arith.constant 0 : i32
    %11 = arith.cmpi ne, %10, %c0_i32_9 : i32
    scf.if %11 {
      %c0_10 = arith.constant 0 : index
      %c0_11 = arith.constant 0 : index
      %12 = vector.load %arg6[%c0_10, %c0_11] : memref<128x128xf32, #tpu.memory_space<vmem>>, vector<128x128xf32>
      %c0_12 = arith.constant 0 : index
      %c0_13 = arith.constant 0 : index
      %13 = vector.load %arg5[%c0_12, %c0_13] : memref<1x128xf32, #tpu.memory_space<vmem>>, vector<1x128xf32>
      %14 = vector.broadcast %13 : vector<1x128xf32> to vector<128x128xf32>
      %15 = arith.addf %12, %14 : vector<128x128xf32>
      %c0_14 = arith.constant 0 : index
      %c0_15 = arith.constant 0 : index
      %16 = vector.load %arg6[%c0_14, %c0_15] : memref<128x128xf32, #tpu.memory_space<vmem>>, vector<128x128xf32>
      tpu.vector_store %arg6[%c0_14, %c0_15], %15 {strides = array<i32>} : memref<128x128xf32, #tpu.memory_space<vmem>>, vector<128x128xf32>,
      %cst_16 = arith.constant dense<0.000000e+00> : vector<128xf32>
      %17 = vector.multi_reduction <add>, %15, %cst_16 [0] : vector<128x128xf32> to vector<128xf32>
      %18 = vector.shape_cast %17 : vector<128xf32> to vector<1x128xf32>
      %19 = vector.shape_cast %18 : vector<1x128xf32> to vector<1x1x128xf32>
      %c0_17 = arith.constant 0 : index
      %c0_18 = arith.constant 0 : index
      %c0_19 = arith.constant 0 : index
      %20 = vector.load %arg7[%c0_17, %c0_18, %c0_19] : memref<1x1x128xf32, #tpu.memory_space<vmem>>, vector<1x1x128xf32>
      tpu.vector_store %arg7[%c0_17, %c0_18, %c0_19], %19 {strides = array<i32>} : memref<1x1x128xf32, #tpu.memory_space<vmem>>, vector<1x1x128xf32>,
      %21 = arith.mulf %15, %15 : vector<128x128xf32>
      %cst_20 = arith.constant dense<0.000000e+00> : vector<128xf32>
      %22 = vector.multi_reduction <add>, %21, %cst_20 [0] : vector<128x128xf32> to vector<128xf32>
      %23 = vector.shape_cast %22 : vector<128xf32> to vector<1x128xf32>
      %24 = vector.shape_cast %23 : vector<1x128xf32> to vector<1x1x128xf32>
      %c0_21 = arith.constant 0 : index
      %c0_22 = arith.constant 0 : index
      %c0_23 = arith.constant 0 : index
      %25 = vector.load %arg8[%c0_21, %c0_22, %c0_23] : memref<1x1x128xf32, #tpu.memory_space<vmem>>, vector<1x1x128xf32>
      tpu.vector_store %arg8[%c0_21, %c0_22, %c0_23], %24 {strides = array<i32>} : memref<1x1x128xf32, #tpu.memory_space<vmem>>, vector<1x1x128xf32>,
    } else {
    }
    return
  }
  func.func @transform_0(%arg0: i32, %arg1: i32, %arg2: i32) -> (i32, i32) {
    %c0_i32 = arith.constant 0 : i32
    return %arg0, %arg2 : i32, i32
  }
  func.func @transform_1(%arg0: i32, %arg1: i32, %arg2: i32) -> (i32, i32) {
    %c0_i32 = arith.constant 0 : i32
    return %arg2, %arg1 : i32, i32
  }
  func.func @transform_2(%arg0: i32, %arg1: i32, %arg2: i32) -> (i32, i32) {
    %c0_i32 = arith.constant 0 : i32
    %c0_i32_0 = arith.constant 0 : i32
    return %c0_i32, %arg1 : i32, i32
  }
  func.func @transform_3(%arg0: i32, %arg1: i32, %arg2: i32) -> (i32, i32) {
    %c0_i32 = arith.constant 0 : i32
    return %arg0, %arg1 : i32, i32
  }
  func.func @transform_4(%arg0: i32, %arg1: i32, %arg2: i32) -> (i32, i32, i32) {
    %c0_i32 = arith.constant 0 : i32
    %c0_i32_0 = arith.constant 0 : i32
    return %arg0, %c0_i32, %arg1 : i32, i32, i32
  }
  func.func @transform_5(%arg0: i32, %arg1: i32, %arg2: i32) -> (i32, i32, i32) {
    %c0_i32 = arith.constant 0 : i32
    %c0_i32_0 = arith.constant 0 : i32
    return %arg0, %c0_i32, %arg1 : i32, i32, i32
  }
}

module attributes {stable_mosaic.version = 11 : i64} {
  func.func @_affine_lrelu_kernel(%arg0: i32, %arg1: memref<128x128xf32, #tpu.memory_space<vmem>>, %arg2: memref<1x128xf32, #tpu.memory_space<vmem>>, %arg3: memref<1x128xf32, #tpu.memory_space<vmem>>, %arg4: memref<128x128xf32, #tpu.memory_space<vmem>>) attributes {dimension_semantics = [#tpu.dimension_semantics<parallel>], iteration_bounds = array<i64: 1>, scalar_prefetch = 0 : i64, scratch_operands = 0 : i64, tpu.core_type = #tpu.core_type<tc>, window_params = [{transform_indices = @transform_0, window_bounds = array<i64: 128, 128>}, {pipeline_mode = #tpu.pipeline_mode<synchronous>, transform_indices = @transform_1, window_bounds = array<i64: 1, 128>}, {pipeline_mode = #tpu.pipeline_mode<synchronous>, transform_indices = @transform_2, window_bounds = array<i64: 1, 128>}, {transform_indices = @transform_3, window_bounds = array<i64: 128, 128>}]} {
    %c0 = arith.constant 0 : index
    %c0_0 = arith.constant 0 : index
    %0 = vector.load %arg1[%c0, %c0_0] : memref<128x128xf32, #tpu.memory_space<vmem>>, vector<128x128xf32>
    %c0_1 = arith.constant 0 : index
    %c0_2 = arith.constant 0 : index
    %1 = vector.load %arg2[%c0_1, %c0_2] : memref<1x128xf32, #tpu.memory_space<vmem>>, vector<1x128xf32>
    %2 = vector.broadcast %1 : vector<1x128xf32> to vector<128x128xf32>
    %3 = arith.mulf %0, %2 : vector<128x128xf32>
    %c0_3 = arith.constant 0 : index
    %c0_4 = arith.constant 0 : index
    %4 = vector.load %arg3[%c0_3, %c0_4] : memref<1x128xf32, #tpu.memory_space<vmem>>, vector<1x128xf32>
    %5 = vector.broadcast %4 : vector<1x128xf32> to vector<128x128xf32>
    %6 = arith.addf %3, %5 : vector<128x128xf32>
    %cst = arith.constant 0.000000e+00 : f32
    %7 = vector.broadcast %cst : f32 to vector<128x128xf32>
    %8 = arith.cmpf oge, %6, %7 : vector<128x128xf32>
    %cst_5 = arith.constant 2.000000e-01 : f32
    %9 = vector.broadcast %cst_5 : f32 to vector<128x128xf32>
    %10 = arith.mulf %9, %6 : vector<128x128xf32>
    %11 = arith.select %8, %6, %10 : vector<128x128xi1>, vector<128x128xf32>
    %c0_6 = arith.constant 0 : index
    %c0_7 = arith.constant 0 : index
    %12 = vector.load %arg4[%c0_6, %c0_7] : memref<128x128xf32, #tpu.memory_space<vmem>>, vector<128x128xf32>
    tpu.vector_store %arg4[%c0_6, %c0_7], %11 {strides = array<i32>} : memref<128x128xf32, #tpu.memory_space<vmem>>, vector<128x128xf32>,
    return
  }
  func.func @transform_0(%arg0: i32) -> (i32, i32) {
    %c0_i32 = arith.constant 0 : i32
    %c0_i32_0 = arith.constant 0 : i32
    return %arg0, %c0_i32 : i32, i32
  }
  func.func @transform_1(%arg0: i32) -> (i32, i32) {
    %c0_i32 = arith.constant 0 : i32
    %c0_i32_0 = arith.constant 0 : i32
    %c0_i32_1 = arith.constant 0 : i32
    return %c0_i32, %c0_i32_0 : i32, i32
  }
  func.func @transform_2(%arg0: i32) -> (i32, i32) {
    %c0_i32 = arith.constant 0 : i32
    %c0_i32_0 = arith.constant 0 : i32
    %c0_i32_1 = arith.constant 0 : i32
    return %c0_i32, %c0_i32_0 : i32, i32
  }
  func.func @transform_3(%arg0: i32) -> (i32, i32) {
    %c0_i32 = arith.constant 0 : i32
    %c0_i32_0 = arith.constant 0 : i32
    return %arg0, %c0_i32 : i32, i32
  }
}

module attributes {stable_mosaic.version = 11 : i64} {
  func.func @_gemm_fused_kernel(%arg0: i32, %arg1: i32, %arg2: i32, %arg3: memref<32x512xbf16, #tpu.memory_space<vmem>>, %arg4: memref<512x128xbf16, #tpu.memory_space<vmem>>, %arg5: memref<1x128xf32, #tpu.memory_space<vmem>>, %arg6: memref<32x128xf32, #tpu.memory_space<vmem>>, %arg7: memref<1x1x128xf32, #tpu.memory_space<vmem>>, %arg8: memref<1x1x128xf32, #tpu.memory_space<vmem>>) attributes {dimension_semantics = [#tpu.dimension_semantics<parallel>, #tpu.dimension_semantics<parallel>, #tpu.dimension_semantics<arbitrary>], iteration_bounds = array<i64: 1, 1, 1>, scalar_prefetch = 0 : i64, scratch_operands = 0 : i64, tpu.core_type = #tpu.core_type<tc>, window_params = [{transform_indices = @transform_0, window_bounds = array<i64: 32, 512>}, {transform_indices = @transform_1, window_bounds = array<i64: 512, 128>}, {transform_indices = @transform_2, window_bounds = array<i64: 1, 128>}, {transform_indices = @transform_3, window_bounds = array<i64: 32, 128>}, {transform_indices = @transform_4, window_bounds = array<i64: 1, 1, 128>}, {transform_indices = @transform_5, window_bounds = array<i64: 1, 1, 128>}]} {
    %c0_i32 = arith.constant 0 : i32
    %0 = arith.cmpi eq, %arg2, %c0_i32 : i32
    %1 = arith.extui %0 : i1 to i32
    %c0_i32_0 = arith.constant 0 : i32
    %2 = arith.cmpi ne, %1, %c0_i32_0 : i32
    scf.if %2 {
      %cst_10 = arith.constant 0.000000e+00 : f32
      %12 = vector.broadcast %cst_10 : f32 to vector<32x128xf32>
      %c0_11 = arith.constant 0 : index
      %c0_12 = arith.constant 0 : index
      %13 = vector.load %arg6[%c0_11, %c0_12] : memref<32x128xf32, #tpu.memory_space<vmem>>, vector<32x128xf32>
      tpu.vector_store %arg6[%c0_11, %c0_12], %12 {strides = array<i32>} : memref<32x128xf32, #tpu.memory_space<vmem>>, vector<32x128xf32>,
    } else {
    }
    %c0 = arith.constant 0 : index
    %c0_1 = arith.constant 0 : index
    %3 = vector.load %arg6[%c0, %c0_1] : memref<32x128xf32, #tpu.memory_space<vmem>>, vector<32x128xf32>
    %c0_2 = arith.constant 0 : index
    %c0_3 = arith.constant 0 : index
    %4 = vector.load %arg3[%c0_2, %c0_3] : memref<32x512xbf16, #tpu.memory_space<vmem>>, vector<32x512xbf16>
    %c0_4 = arith.constant 0 : index
    %c0_5 = arith.constant 0 : index
    %5 = vector.load %arg4[%c0_4, %c0_5] : memref<512x128xbf16, #tpu.memory_space<vmem>>, vector<512x128xbf16>
    %cst = arith.constant dense<0.000000e+00> : vector<32x128xf32>
    %6 = tpu.matmul %4, %5, %cst {dimension_numbers = #tpu.dot_dimension_numbers<[1], [0], [0], [1], [0, 0, 1, 1], [], []>} : vector<32x512xbf16>, vector<512x128xbf16>, vector<32x128xf32> -> vector<32x128xf32>
    %7 = arith.addf %3, %6 : vector<32x128xf32>
    %c0_6 = arith.constant 0 : index
    %c0_7 = arith.constant 0 : index
    %8 = vector.load %arg6[%c0_6, %c0_7] : memref<32x128xf32, #tpu.memory_space<vmem>>, vector<32x128xf32>
    tpu.vector_store %arg6[%c0_6, %c0_7], %7 {strides = array<i32>} : memref<32x128xf32, #tpu.memory_space<vmem>>, vector<32x128xf32>,
    %c0_i32_8 = arith.constant 0 : i32
    %9 = arith.cmpi eq, %arg2, %c0_i32_8 : i32
    %10 = arith.extui %9 : i1 to i32
    %c0_i32_9 = arith.constant 0 : i32
    %11 = arith.cmpi ne, %10, %c0_i32_9 : i32
    scf.if %11 {
      %c0_10 = arith.constant 0 : index
      %c0_11 = arith.constant 0 : index
      %12 = vector.load %arg6[%c0_10, %c0_11] : memref<32x128xf32, #tpu.memory_space<vmem>>, vector<32x128xf32>
      %c0_12 = arith.constant 0 : index
      %c0_13 = arith.constant 0 : index
      %13 = vector.load %arg5[%c0_12, %c0_13] : memref<1x128xf32, #tpu.memory_space<vmem>>, vector<1x128xf32>
      %14 = vector.broadcast %13 : vector<1x128xf32> to vector<32x128xf32>
      %15 = arith.addf %12, %14 : vector<32x128xf32>
      %c0_14 = arith.constant 0 : index
      %c0_15 = arith.constant 0 : index
      %16 = vector.load %arg6[%c0_14, %c0_15] : memref<32x128xf32, #tpu.memory_space<vmem>>, vector<32x128xf32>
      tpu.vector_store %arg6[%c0_14, %c0_15], %15 {strides = array<i32>} : memref<32x128xf32, #tpu.memory_space<vmem>>, vector<32x128xf32>,
      %cst_16 = arith.constant dense<0.000000e+00> : vector<128xf32>
      %17 = vector.multi_reduction <add>, %15, %cst_16 [0] : vector<32x128xf32> to vector<128xf32>
      %18 = vector.shape_cast %17 : vector<128xf32> to vector<1x128xf32>
      %19 = vector.shape_cast %18 : vector<1x128xf32> to vector<1x1x128xf32>
      %c0_17 = arith.constant 0 : index
      %c0_18 = arith.constant 0 : index
      %c0_19 = arith.constant 0 : index
      %20 = vector.load %arg7[%c0_17, %c0_18, %c0_19] : memref<1x1x128xf32, #tpu.memory_space<vmem>>, vector<1x1x128xf32>
      tpu.vector_store %arg7[%c0_17, %c0_18, %c0_19], %19 {strides = array<i32>} : memref<1x1x128xf32, #tpu.memory_space<vmem>>, vector<1x1x128xf32>,
      %21 = arith.mulf %15, %15 : vector<32x128xf32>
      %cst_20 = arith.constant dense<0.000000e+00> : vector<128xf32>
      %22 = vector.multi_reduction <add>, %21, %cst_20 [0] : vector<32x128xf32> to vector<128xf32>
      %23 = vector.shape_cast %22 : vector<128xf32> to vector<1x128xf32>
      %24 = vector.shape_cast %23 : vector<1x128xf32> to vector<1x1x128xf32>
      %c0_21 = arith.constant 0 : index
      %c0_22 = arith.constant 0 : index
      %c0_23 = arith.constant 0 : index
      %25 = vector.load %arg8[%c0_21, %c0_22, %c0_23] : memref<1x1x128xf32, #tpu.memory_space<vmem>>, vector<1x1x128xf32>
      tpu.vector_store %arg8[%c0_21, %c0_22, %c0_23], %24 {strides = array<i32>} : memref<1x1x128xf32, #tpu.memory_space<vmem>>, vector<1x1x128xf32>,
    } else {
    }
    return
  }
  func.func @transform_0(%arg0: i32, %arg1: i32, %arg2: i32) -> (i32, i32) {
    %c0_i32 = arith.constant 0 : i32
    return %arg0, %arg2 : i32, i32
  }
  func.func @transform_1(%arg0: i32, %arg1: i32, %arg2: i32) -> (i32, i32) {
    %c0_i32 = arith.constant 0 : i32
    return %arg2, %arg1 : i32, i32
  }
  func.func @transform_2(%arg0: i32, %arg1: i32, %arg2: i32) -> (i32, i32) {
    %c0_i32 = arith.constant 0 : i32
    %c0_i32_0 = arith.constant 0 : i32
    return %c0_i32, %arg1 : i32, i32
  }
  func.func @transform_3(%arg0: i32, %arg1: i32, %arg2: i32) -> (i32, i32) {
    %c0_i32 = arith.constant 0 : i32
    return %arg0, %arg1 : i32, i32
  }
  func.func @transform_4(%arg0: i32, %arg1: i32, %arg2: i32) -> (i32, i32, i32) {
    %c0_i32 = arith.constant 0 : i32
    %c0_i32_0 = arith.constant 0 : i32
    return %arg0, %c0_i32, %arg1 : i32, i32, i32
  }
  func.func @transform_5(%arg0: i32, %arg1: i32, %arg2: i32) -> (i32, i32, i32) {
    %c0_i32 = arith.constant 0 : i32
    %c0_i32_0 = arith.constant 0 : i32
    return %arg0, %c0_i32, %arg1 : i32, i32, i32
  }
}

module attributes {stable_mosaic.version = 11 : i64} {
  func.func @_affine_lrelu_kernel(%arg0: i32, %arg1: memref<32x128xf32, #tpu.memory_space<vmem>>, %arg2: memref<1x128xf32, #tpu.memory_space<vmem>>, %arg3: memref<1x128xf32, #tpu.memory_space<vmem>>, %arg4: memref<32x128xf32, #tpu.memory_space<vmem>>) attributes {dimension_semantics = [#tpu.dimension_semantics<parallel>], iteration_bounds = array<i64: 1>, scalar_prefetch = 0 : i64, scratch_operands = 0 : i64, tpu.core_type = #tpu.core_type<tc>, window_params = [{transform_indices = @transform_0, window_bounds = array<i64: 32, 128>}, {pipeline_mode = #tpu.pipeline_mode<synchronous>, transform_indices = @transform_1, window_bounds = array<i64: 1, 128>}, {pipeline_mode = #tpu.pipeline_mode<synchronous>, transform_indices = @transform_2, window_bounds = array<i64: 1, 128>}, {transform_indices = @transform_3, window_bounds = array<i64: 32, 128>}]} {
    %c0 = arith.constant 0 : index
    %c0_0 = arith.constant 0 : index
    %0 = vector.load %arg1[%c0, %c0_0] : memref<32x128xf32, #tpu.memory_space<vmem>>, vector<32x128xf32>
    %c0_1 = arith.constant 0 : index
    %c0_2 = arith.constant 0 : index
    %1 = vector.load %arg2[%c0_1, %c0_2] : memref<1x128xf32, #tpu.memory_space<vmem>>, vector<1x128xf32>
    %2 = vector.broadcast %1 : vector<1x128xf32> to vector<32x128xf32>
    %3 = arith.mulf %0, %2 : vector<32x128xf32>
    %c0_3 = arith.constant 0 : index
    %c0_4 = arith.constant 0 : index
    %4 = vector.load %arg3[%c0_3, %c0_4] : memref<1x128xf32, #tpu.memory_space<vmem>>, vector<1x128xf32>
    %5 = vector.broadcast %4 : vector<1x128xf32> to vector<32x128xf32>
    %6 = arith.addf %3, %5 : vector<32x128xf32>
    %cst = arith.constant 0.000000e+00 : f32
    %7 = vector.broadcast %cst : f32 to vector<32x128xf32>
    %8 = arith.cmpf oge, %6, %7 : vector<32x128xf32>
    %cst_5 = arith.constant 2.000000e-01 : f32
    %9 = vector.broadcast %cst_5 : f32 to vector<32x128xf32>
    %10 = arith.mulf %9, %6 : vector<32x128xf32>
    %11 = arith.select %8, %6, %10 : vector<32x128xi1>, vector<32x128xf32>
    %c0_6 = arith.constant 0 : index
    %c0_7 = arith.constant 0 : index
    %12 = vector.load %arg4[%c0_6, %c0_7] : memref<32x128xf32, #tpu.memory_space<vmem>>, vector<32x128xf32>
    tpu.vector_store %arg4[%c0_6, %c0_7], %11 {strides = array<i32>} : memref<32x128xf32, #tpu.memory_space<vmem>>, vector<32x128xf32>,
    return
  }
  func.func @transform_0(%arg0: i32) -> (i32, i32) {
    %c0_i32 = arith.constant 0 : i32
    %c0_i32_0 = arith.constant 0 : i32
    return %arg0, %c0_i32 : i32, i32
  }
  func.func @transform_1(%arg0: i32) -> (i32, i32) {
    %c0_i32 = arith.constant 0 : i32
    %c0_i32_0 = arith.constant 0 : i32
    %c0_i32_1 = arith.constant 0 : i32
    return %c0_i32, %c0_i32_0 : i32, i32
  }
  func.func @transform_2(%arg0: i32) -> (i32, i32) {
    %c0_i32 = arith.constant 0 : i32
    %c0_i32_0 = arith.constant 0 : i32
    %c0_i32_1 = arith.constant 0 : i32
    return %c0_i32, %c0_i32_0 : i32, i32
  }
  func.func @transform_3(%arg0: i32) -> (i32, i32) {
    %c0_i32 = arith.constant 0 : i32
    %c0_i32_0 = arith.constant 0 : i32
    return %arg0, %c0_i32 : i32, i32
  }
}

module attributes {stable_mosaic.version = 11 : i64} {
  func.func @_gemm_fused_kernel(%arg0: i32, %arg1: i32, %arg2: i32, %arg3: memref<24x512xbf16, #tpu.memory_space<vmem>>, %arg4: memref<512x128xbf16, #tpu.memory_space<vmem>>, %arg5: memref<1x128xf32, #tpu.memory_space<vmem>>, %arg6: memref<24x128xf32, #tpu.memory_space<vmem>>) attributes {dimension_semantics = [#tpu.dimension_semantics<parallel>, #tpu.dimension_semantics<parallel>, #tpu.dimension_semantics<arbitrary>], iteration_bounds = array<i64: 1, 1, 2>, scalar_prefetch = 0 : i64, scratch_operands = 0 : i64, tpu.core_type = #tpu.core_type<tc>, window_params = [{transform_indices = @transform_0, window_bounds = array<i64: 24, 512>}, {transform_indices = @transform_1, window_bounds = array<i64: 512, 128>}, {transform_indices = @transform_2, window_bounds = array<i64: 1, 128>}, {transform_indices = @transform_3, window_bounds = array<i64: 24, 128>}]} {
    %c0_i32 = arith.constant 0 : i32
    %0 = arith.cmpi eq, %arg2, %c0_i32 : i32
    %1 = arith.extui %0 : i1 to i32
    %c0_i32_0 = arith.constant 0 : i32
    %2 = arith.cmpi ne, %1, %c0_i32_0 : i32
    scf.if %2 {
      %cst_9 = arith.constant 0.000000e+00 : f32
      %12 = vector.broadcast %cst_9 : f32 to vector<24x128xf32>
      %c0_10 = arith.constant 0 : index
      %c0_11 = arith.constant 0 : index
      %13 = vector.load %arg6[%c0_10, %c0_11] : memref<24x128xf32, #tpu.memory_space<vmem>>, vector<24x128xf32>
      tpu.vector_store %arg6[%c0_10, %c0_11], %12 {strides = array<i32>} : memref<24x128xf32, #tpu.memory_space<vmem>>, vector<24x128xf32>,
    } else {
    }
    %c0 = arith.constant 0 : index
    %c0_1 = arith.constant 0 : index
    %3 = vector.load %arg6[%c0, %c0_1] : memref<24x128xf32, #tpu.memory_space<vmem>>, vector<24x128xf32>
    %c0_2 = arith.constant 0 : index
    %c0_3 = arith.constant 0 : index
    %4 = vector.load %arg3[%c0_2, %c0_3] : memref<24x512xbf16, #tpu.memory_space<vmem>>, vector<24x512xbf16>
    %c0_4 = arith.constant 0 : index
    %c0_5 = arith.constant 0 : index
    %5 = vector.load %arg4[%c0_4, %c0_5] : memref<512x128xbf16, #tpu.memory_space<vmem>>, vector<512x128xbf16>
    %cst = arith.constant dense<0.000000e+00> : vector<24x128xf32>
    %6 = tpu.matmul %4, %5, %cst {dimension_numbers = #tpu.dot_dimension_numbers<[1], [0], [0], [1], [0, 0, 1, 1], [], []>} : vector<24x512xbf16>, vector<512x128xbf16>, vector<24x128xf32> -> vector<24x128xf32>
    %7 = arith.addf %3, %6 : vector<24x128xf32>
    %c0_6 = arith.constant 0 : index
    %c0_7 = arith.constant 0 : index
    %8 = vector.load %arg6[%c0_6, %c0_7] : memref<24x128xf32, #tpu.memory_space<vmem>>, vector<24x128xf32>
    tpu.vector_store %arg6[%c0_6, %c0_7], %7 {strides = array<i32>} : memref<24x128xf32, #tpu.memory_space<vmem>>, vector<24x128xf32>,
    %c1_i32 = arith.constant 1 : i32
    %9 = arith.cmpi eq, %arg2, %c1_i32 : i32
    %10 = arith.extui %9 : i1 to i32
    %c0_i32_8 = arith.constant 0 : i32
    %11 = arith.cmpi ne, %10, %c0_i32_8 : i32
    scf.if %11 {
      %c0_9 = arith.constant 0 : index
      %c0_10 = arith.constant 0 : index
      %12 = vector.load %arg6[%c0_9, %c0_10] : memref<24x128xf32, #tpu.memory_space<vmem>>, vector<24x128xf32>
      %c0_11 = arith.constant 0 : index
      %c0_12 = arith.constant 0 : index
      %13 = vector.load %arg5[%c0_11, %c0_12] : memref<1x128xf32, #tpu.memory_space<vmem>>, vector<1x128xf32>
      %14 = vector.broadcast %13 : vector<1x128xf32> to vector<24x128xf32>
      %15 = arith.addf %12, %14 : vector<24x128xf32>
      %c0_13 = arith.constant 0 : index
      %c0_14 = arith.constant 0 : index
      %16 = vector.load %arg6[%c0_13, %c0_14] : memref<24x128xf32, #tpu.memory_space<vmem>>, vector<24x128xf32>
      tpu.vector_store %arg6[%c0_13, %c0_14], %15 {strides = array<i32>} : memref<24x128xf32, #tpu.memory_space<vmem>>, vector<24x128xf32>,
    } else {
    }
    return
  }
  func.func @transform_0(%arg0: i32, %arg1: i32, %arg2: i32) -> (i32, i32) {
    %c0_i32 = arith.constant 0 : i32
    return %arg0, %arg2 : i32, i32
  }
  func.func @transform_1(%arg0: i32, %arg1: i32, %arg2: i32) -> (i32, i32) {
    %c0_i32 = arith.constant 0 : i32
    return %arg2, %arg1 : i32, i32
  }
  func.func @transform_2(%arg0: i32, %arg1: i32, %arg2: i32) -> (i32, i32) {
    %c0_i32 = arith.constant 0 : i32
    %c0_i32_0 = arith.constant 0 : i32
    return %c0_i32, %arg1 : i32, i32
  }
  func.func @transform_3(%arg0: i32, %arg1: i32, %arg2: i32) -> (i32, i32) {
    %c0_i32 = arith.constant 0 : i32
    return %arg0, %arg1 : i32, i32
  }
}

</mosaic_0001>

<bundles_post_ra>
// kernel: discriminator_forward.8
= control target key start
LH: loop header
LB: loop body
LE: loop exit
PB: predicated region body
PF: predicated region fallthrough
CT: control target
= control target key end

     0   :  { %s1817_s12 = smov 0   ;;  %s1819_s13 = smov 0   ;;  %s2050_s0 = inlined_call_operand.vmem [shape: bf16[2048,128], index: 0, kind: input, shape index: {}]   ;;  %s2051_s1 = inlined_call_operand.vmem [shape: bf16[128,128], index: 1, kind: input, shape index: {}]   ;;  %s2052_s2 = inlined_call_operand.vmem [shape: f32[1,128], index: 2, kind: input, shape index: {}]   ;;  %s2053_s3 = inlined_call_operand.vmem [shape: f32[2048,128], index: 3, kind: output, shape index: {}]  }
   0x1   :  { %s1821_s14 = smov 0  }
   0x2 LB: > { %s32_s15 = sadd.s32 1, %s1791_s13  ;;  %p1516_p0 = scmp.ge.s32.totalorder %s1795_s14, 1  ;;  %s1795_s14 = sphi %s1821_s14, %s13_s14   ;;  %s1791_s13 = sphi %s1819_s13, %s2055_s13   ;;  %s1787_s12 = sphi %s1817_s12, %s2054_s12  }
   0x3   : > { %p34_p1 = scmp.ge.s32.totalorder %s32_s15, 4  ;;  %p188_p2 = scmp.lt.s32.totalorder %s1795_s14, 5 }
   0x5   : > { %s2057_s15 = smov (%p34_p1, %s32_s15), 0  ;;  %p189_p3 = pnand %p1516_p0, %p188_p2 }
   0x6   : > { %s1517_s24 = sshll.u32 (!%p189_p3), %s1787_s12, 6 }
   0x7   : > { %192 = sbr.rel (%p189_p3) target bundleno = 304 (0x130), region = 32  ;;  %p230_p4 = scmp.lt.s32.totalorder (!%p189_p3), %s1517_s24, 255 }
   0xc   : > { %v1722_v0 = vld [vmem:[%s2051_s1 + $0x38] sm:$0xff]  ;;  %v1721_v1 = vld [vmem:[%s2051_s1 + $0x30] sm:$0xff]  ;;  %v1720_v2 = vld [vmem:[%s2051_s1 + $0x28] sm:$0xff]  ;;  %s2059_s24 = smov (!%p230_p4, %s1517_s24), 255 }
   0xd   : > { %711 = vmatpush.bf16.msra.mxu0 %v1722_v0  ;;  %1723 = vmatpush.bf16.msra.mxu1 %v1722_v0  ;;  %v1719_v3 = vld [vmem:[%s2051_s1 + $0x20] sm:$0xff]  ;;  %v1718_v4 = vld [vmem:[%s2051_s1 + $0x18] sm:$0xff]  ;;  %v1717_v5 = vld [vmem:[%s2051_s1 + $0x10] sm:$0xff]  ;;  %s1518_s4 = sshll.u32 %s2059_s24, 2  ;;  %s1520_s12 = sshll.u32 %s2059_s24, 3 }
   0xe   : > { %1724 = vmatpush.bf16.msra.mxu2 %v1722_v0  ;;  %1725 = vmatpush.bf16.msra.mxu3 %v1722_v0  ;;  %v1716_v6 = vld [vmem:[%s2051_s1 + $0x8] sm:$0xff]  ;;  %v1715_v7 = vld [vmem:[%s2051_s1] sm:$0xff]  ;;  %s1868_s9 = scalar_lea.vmem %s2050_s0, %s1518_s4  ;;  %s1913_s18 = scalar_lea.vmem %s2053_s3, %s1520_s12 }
   0xf   : > { %v1683_v8 = vld [vmem:[%s1868_s9] sm:$0xff]  ;;  %v1684_v12 = vld [vmem:[%s1868_s9 + $0x8] sm:$0xff]  ;;  %v1685_v16 = vld [vmem:[%s1868_s9 + $0x10] sm:$0xff] }
  0x10   : > { %v1691_v9 = vld [vmem:[%s1868_s9 + $0x40] sm:$0xff]  ;;  %v1692_v13 = vld [vmem:[%s1868_s9 + $0x48] sm:$0xff]  ;;  %v1693_v17 = vld [vmem:[%s1868_s9 + $0x50] sm:$0xff] }
  0x11   : > { %712 = vmatpush.bf16.msra.mxu0 %v1721_v1  ;;  %1726 = vmatpush.bf16.msra.mxu1 %v1721_v1  ;;  %v1699_v10 = vld [vmem:[%s1868_s9 + $0x80] sm:$0xff]  ;;  %v1700_v14 = vld [vmem:[%s1868_s9 + $0x88] sm:$0xff]  ;;  %v1701_v18 = vld [vmem:[%s1868_s9 + $0x90] sm:$0xff] }
  0x12   : > { %1727 = vmatpush.bf16.msra.mxu2 %v1721_v1  ;;  %1728 = vmatpush.bf16.msra.mxu3 %v1721_v1  ;;  %v1707_v11 = vld [vmem:[%s1868_s9 + $0xc0] sm:$0xff]  ;;  %v1708_v15 = vld [vmem:[%s1868_s9 + $0xc8] sm:$0xff]  ;;  %v1709_v19 = vld [vmem:[%s1868_s9 + $0xd0] sm:$0xff] }
  0x13   : > { %v1686_v20 = vld [vmem:[%s1868_s9 + $0x18] sm:$0xff]  ;;  %v1687_v24 = vld [vmem:[%s1868_s9 + $0x20] sm:$0xff]  ;;  %v1688_v28 = vld [vmem:[%s1868_s9 + $0x28] sm:$0xff] }
  0x14   : > { %v1694_v21 = vld [vmem:[%s1868_s9 + $0x58] sm:$0xff]  ;;  %v1695_v25 = vld [vmem:[%s1868_s9 + $0x60] sm:$0xff]  ;;  %v1696_v29 = vld [vmem:[%s1868_s9 + $0x68] sm:$0xff] }
  0x15   : > { %713 = vmatpush.bf16.msra.mxu0 %v1720_v2  ;;  %1729 = vmatpush.bf16.msra.mxu1 %v1720_v2  ;;  %v1702_v22 = vld [vmem:[%s1868_s9 + $0x98] sm:$0xff]  ;;  %v1703_v26 = vld [vmem:[%s1868_s9 + $0xa0] sm:$0xff]  ;;  %v1704_v30 = vld [vmem:[%s1868_s9 + $0xa8] sm:$0xff] }
  0x16   : > { %1730 = vmatpush.bf16.msra.mxu2 %v1720_v2  ;;  %1731 = vmatpush.bf16.msra.mxu3 %v1720_v2  ;;  %v1710_v23 = vld [vmem:[%s1868_s9 + $0xd8] sm:$0xff]  ;;  %v1711_v27 = vld [vmem:[%s1868_s9 + $0xe0] sm:$0xff]  ;;  %v1712_v31 = vld [vmem:[%s1868_s9 + $0xe8] sm:$0xff] }
  0x17   : > { %v1689_v32 = vld [vmem:[%s1868_s9 + $0x30] sm:$0xff]  ;;  %v1690_v36 = vld [vmem:[%s1868_s9 + $0x38] sm:$0xff]  ;;  %v1905_v40 = vld [vmem:[%s2052_s2] ss:$0 sm:$0xff] }
  0x18   : > { %v1697_v33 = vld [vmem:[%s1868_s9 + $0x70] sm:$0xff]  ;;  %v1698_v37 = vld [vmem:[%s1868_s9 + $0x78] sm:$0xff] }
  0x19   : > { %714 = vmatpush.bf16.msra.mxu0 %v1719_v3  ;;  %1732 = vmatpush.bf16.msra.mxu1 %v1719_v3  ;;  %v1705_v34 = vld [vmem:[%s1868_s9 + $0xb0] sm:$0xff]  ;;  %v1706_v38 = vld [vmem:[%s1868_s9 + $0xb8] sm:$0xff] }
  0x1a   : > { %1733 = vmatpush.bf16.msra.mxu2 %v1719_v3  ;;  %1734 = vmatpush.bf16.msra.mxu3 %v1719_v3  ;;  %v1713_v35 = vld [vmem:[%s1868_s9 + $0xf0] sm:$0xff]  ;;  %v1714_v39 = vld [vmem:[%s1868_s9 + $0xf8] sm:$0xff] }
  0x1d   : > { %715 = vmatpush.bf16.msra.mxu0 %v1718_v4  ;;  %1735 = vmatpush.bf16.msra.mxu1 %v1718_v4 }
  0x1e   : > { %1736 = vmatpush.bf16.msra.mxu2 %v1718_v4  ;;  %1737 = vmatpush.bf16.msra.mxu3 %v1718_v4 }
  0x21   : > { %716 = vmatpush.bf16.msra.mxu0 %v1717_v5  ;;  %1738 = vmatpush.bf16.msra.mxu1 %v1717_v5 }
  0x22   : > { %1739 = vmatpush.bf16.msra.mxu2 %v1717_v5  ;;  %1740 = vmatpush.bf16.msra.mxu3 %v1717_v5 }
  0x25   : > { %717 = vmatpush.bf16.msra.mxu0 %v1716_v6  ;;  %1741 = vmatpush.bf16.msra.mxu1 %v1716_v6 }
  0x26   : > { %1742 = vmatpush.bf16.msra.mxu2 %v1716_v6  ;;  %1743 = vmatpush.bf16.msra.mxu3 %v1716_v6 }
  0x29   : > { %718 = vmatpush.bf16.msra.mxu0 %v1715_v7  ;;  %1744 = vmatpush.bf16.msra.mxu1 %v1715_v7 }
  0x2a   : > { %1745 = vmatpush.bf16.msra.mxu2 %v1715_v7  ;;  %1746 = vmatpush.bf16.msra.mxu3 %v1715_v7 }
  0x2c   : > { %719 = vmatmul.bf16.vlgmr.msra.gmra.mxu0 %v1683_v8  ;;  %759 = vmatmul.bf16.vlgmr.msra.gmra.mxu1 %v1691_v9 }
  0x2d   : > { %799 = vmatmul.bf16.vlgmr.msra.gmra.mxu2 %v1699_v10  ;;  %839 = vmatmul.bf16.vlgmr.msra.gmra.mxu3 %v1707_v11 }
  0x3c   : > { %724 = vmatmul.bf16.gmra.mxu0 %v1684_v12  ;;  %764 = vmatmul.bf16.gmra.mxu1 %v1692_v13 }
  0x3d   : > { %804 = vmatmul.bf16.gmra.mxu2 %v1700_v14  ;;  %844 = vmatmul.bf16.gmra.mxu3 %v1708_v15 }
  0x4c   : > { %729 = vmatmul.bf16.gmra.mxu0 %v1685_v16  ;;  %769 = vmatmul.bf16.gmra.mxu1 %v1693_v17 }
  0x4d   : > { %809 = vmatmul.bf16.gmra.mxu2 %v1701_v18  ;;  %849 = vmatmul.bf16.gmra.mxu3 %v1709_v19 }
  0x5c   : > { %734 = vmatmul.bf16.gmra.mxu0 %v1686_v20  ;;  %774 = vmatmul.bf16.gmra.mxu1 %v1694_v21 }
  0x5d   : > { %814 = vmatmul.bf16.gmra.mxu2 %v1702_v22  ;;  %854 = vmatmul.bf16.gmra.mxu3 %v1710_v23 }
  0x6c   : > { %739 = vmatmul.bf16.gmra.mxu0 %v1687_v24  ;;  %779 = vmatmul.bf16.gmra.mxu1 %v1695_v25 }
  0x6d   : > { %819 = vmatmul.bf16.gmra.mxu2 %v1703_v26  ;;  %859 = vmatmul.bf16.gmra.mxu3 %v1711_v27 }
  0x7c   : > { %744 = vmatmul.bf16.gmra.mxu0 %v1688_v28  ;;  %784 = vmatmul.bf16.gmra.mxu1 %v1696_v29 }
  0x7d   : > { %824 = vmatmul.bf16.gmra.mxu2 %v1704_v30  ;;  %864 = vmatmul.bf16.gmra.mxu3 %v1712_v31 }
  0x8c   : > { %749 = vmatmul.bf16.gmra.mxu0 %v1689_v32  ;;  %789 = vmatmul.bf16.gmra.mxu1 %v1697_v33 }
  0x8d   : > { %829 = vmatmul.bf16.gmra.mxu2 %v1705_v34  ;;  %869 = vmatmul.bf16.gmra.mxu3 %v1713_v35 }
  0x9c   : > { %754 = vmatmul.bf16.gmra.mxu0 %v1690_v36  ;;  %794 = vmatmul.bf16.gmra.mxu1 %v1698_v37 }
  0x9d   : > { %834 = vmatmul.bf16.gmra.mxu2 %v1706_v38  ;;  %874 = vmatmul.bf16.gmra.mxu3 %v1714_v39 }
  0xa9   : > { %v720_v41 = vpop.f32.mrf.mxu0  ;;  %v760_v42 = vpop.f32.mrf.mxu1 }
  0xaa   : > { %v1079_v43 = vadd.f32 %v1905_v40, %v720_v41  ;;  %v1095_v44 = vadd.f32 %v1905_v40, %v760_v42 }
  0xac   : > { %vm1143_vm0 = vcmp.ge.f32.partialorder %v1079_v43, 0.0  ;;  %v1207_v45 = vmul.f32 0.2, %v1079_v43  ;;  %vm1159_vm1 = vcmp.ge.f32.partialorder %v1095_v44, 0.0  ;;  %v1223_v46 = vmul.f32 0.2, %v1095_v44 }
  0xae   : > { %v1271_v47 = vsel %vm1143_vm0, %v1079_v43, %v1207_v45  ;;  %v1287_v48 = vsel %vm1159_vm1, %v1095_v44, %v1223_v46 }
  0xaf   : > { %1335 = vst [vmem:[%s1913_s18] sm:$0xff] %v1271_v47 }
  0xb0   : > { %v800_v49 = vpop.f32.mrf.mxu2  ;;  %v840_v50 = vpop.f32.mrf.mxu3  ;;  %1351 = vst [vmem:[%s1913_s18 + $0x80] sm:$0xff] %v1287_v48 }
  0xb1   : > { %v722_v51 = vpop.f32.mrf.mxu0  ;;  %v762_v52 = vpop.f32.mrf.mxu1  ;;  %v1111_v53 = vadd.f32 %v1905_v40, %v800_v49  ;;  %v1127_v54 = vadd.f32 %v1905_v40, %v840_v50 }
  0xb2   : > { %v1080_v55 = vadd.f32 %v1905_v40, %v722_v51  ;;  %v1096_v56 = vadd.f32 %v1905_v40, %v762_v52 }
  0xb3   : > { %vm1175_vm2 = vcmp.ge.f32.partialorder %v1111_v53, 0.0  ;;  %v1239_v57 = vmul.f32 0.2, %v1111_v53  ;;  %vm1191_vm3 = vcmp.ge.f32.partialorder %v1127_v54, 0.0  ;;  %v1255_v58 = vmul.f32 0.2, %v1127_v54 }
  0xb4   : > { %vm1144_vm4 = vcmp.ge.f32.partialorder %v1080_v55, 0.0  ;;  %v1208_v59 = vmul.f32 0.2, %v1080_v55  ;;  %vm1160_vm5 = vcmp.ge.f32.partialorder %v1096_v56, 0.0  ;;  %v1224_v60 = vmul.f32 0.2, %v1096_v56 }
  0xb5   : > { %v1303_v61 = vsel %vm1175_vm2, %v1111_v53, %v1239_v57  ;;  %v1319_v62 = vsel %vm1191_vm3, %v1127_v54, %v1255_v58 }
  0xb6   : > { %1367 = vst [vmem:[%s1913_s18 + $0x100] sm:$0xff] %v1303_v61  ;;  %v1272_v63 = vsel %vm1144_vm4, %v1080_v55, %v1208_v59  ;;  %v1288_v0 = vsel %vm1160_vm5, %v1096_v56, %v1224_v60 }
  0xb7   : > { %1383 = vst [vmem:[%s1913_s18 + $0x180] sm:$0xff] %v1319_v62 }
  0xb8   : > { %v802_v1 = vpop.f32.mrf.mxu2  ;;  %v842_v2 = vpop.f32.mrf.mxu3  ;;  %1336 = vst [vmem:[%s1913_s18 + $0x8] sm:$0xff] %v1272_v63 }
  0xb9   : > { %v725_v3 = vpop.f32.mrf.mxu0  ;;  %v765_v4 = vpop.f32.mrf.mxu1  ;;  %1352 = vst [vmem:[%s1913_s18 + $0x88] sm:$0xff] %v1288_v0  ;;  %v1112_v5 = vadd.f32 %v1905_v40, %v802_v1  ;;  %v1128_v6 = vadd.f32 %v1905_v40, %v842_v2 }
  0xba   : > { %v1081_v7 = vadd.f32 %v1905_v40, %v725_v3  ;;  %v1097_v8 = vadd.f32 %v1905_v40, %v765_v4 }
  0xbb   : > { %vm1176_vm6 = vcmp.ge.f32.partialorder %v1112_v5, 0.0  ;;  %v1240_v9 = vmul.f32 0.2, %v1112_v5  ;;  %vm1192_vm7 = vcmp.ge.f32.partialorder %v1128_v6, 0.0  ;;  %v1256_v10 = vmul.f32 0.2, %v1128_v6 }
  0xbc   : > { %vm1145_vm8 = vcmp.ge.f32.partialorder %v1081_v7, 0.0  ;;  %v1209_v11 = vmul.f32 0.2, %v1081_v7  ;;  %vm1161_vm9 = vcmp.ge.f32.partialorder %v1097_v8, 0.0  ;;  %v1225_v12 = vmul.f32 0.2, %v1097_v8 }
  0xbd   : > { %v1304_v13 = vsel %vm1176_vm6, %v1112_v5, %v1240_v9  ;;  %v1320_v14 = vsel %vm1192_vm7, %v1128_v6, %v1256_v10 }
  0xbe   : > { %1368 = vst [vmem:[%s1913_s18 + $0x108] sm:$0xff] %v1304_v13  ;;  %v1273_v15 = vsel %vm1145_vm8, %v1081_v7, %v1209_v11  ;;  %v1289_v16 = vsel %vm1161_vm9, %v1097_v8, %v1225_v12 }
  0xbf   : > { %1384 = vst [vmem:[%s1913_s18 + $0x188] sm:$0xff] %v1320_v14 }
  0xc0   : > { %v805_v17 = vpop.f32.mrf.mxu2  ;;  %v845_v18 = vpop.f32.mrf.mxu3  ;;  %1337 = vst [vmem:[%s1913_s18 + $0x10] sm:$0xff] %v1273_v15 }
  0xc1   : > { %v727_v19 = vpop.f32.mrf.mxu0  ;;  %v767_v20 = vpop.f32.mrf.mxu1  ;;  %1353 = vst [vmem:[%s1913_s18 + $0x90] sm:$0xff] %v1289_v16  ;;  %v1113_v21 = vadd.f32 %v1905_v40, %v805_v17  ;;  %v1129_v22 = vadd.f32 %v1905_v40, %v845_v18 }
  0xc2   : > { %v1082_v23 = vadd.f32 %v1905_v40, %v727_v19  ;;  %v1098_v24 = vadd.f32 %v1905_v40, %v767_v20 }
  0xc3   : > { %vm1177_vm10 = vcmp.ge.f32.partialorder %v1113_v21, 0.0  ;;  %v1241_v25 = vmul.f32 0.2, %v1113_v21  ;;  %vm1193_vm11 = vcmp.ge.f32.partialorder %v1129_v22, 0.0  ;;  %v1257_v26 = vmul.f32 0.2, %v1129_v22 }
  0xc4   : > { %vm1146_vm12 = vcmp.ge.f32.partialorder %v1082_v23, 0.0  ;;  %v1210_v27 = vmul.f32 0.2, %v1082_v23  ;;  %vm1162_vm13 = vcmp.ge.f32.partialorder %v1098_v24, 0.0  ;;  %v1226_v28 = vmul.f32 0.2, %v1098_v24 }
  0xc5   : > { %v1305_v29 = vsel %vm1177_vm10, %v1113_v21, %v1241_v25  ;;  %v1321_v30 = vsel %vm1193_vm11, %v1129_v22, %v1257_v26 }
  0xc6   : > { %1369 = vst [vmem:[%s1913_s18 + $0x110] sm:$0xff] %v1305_v29  ;;  %v1274_v31 = vsel %vm1146_vm12, %v1082_v23, %v1210_v27  ;;  %v1290_v32 = vsel %vm1162_vm13, %v1098_v24, %v1226_v28 }
  0xc7   : > { %1385 = vst [vmem:[%s1913_s18 + $0x190] sm:$0xff] %v1321_v30 }
  0xc8   : > { %v807_v33 = vpop.f32.mrf.mxu2  ;;  %v847_v34 = vpop.f32.mrf.mxu3  ;;  %1338 = vst [vmem:[%s1913_s18 + $0x18] sm:$0xff] %v1274_v31 }
  0xc9   : > { %v730_v35 = vpop.f32.mrf.mxu0  ;;  %v770_v36 = vpop.f32.mrf.mxu1  ;;  %1354 = vst [vmem:[%s1913_s18 + $0x98] sm:$0xff] %v1290_v32  ;;  %v1114_v37 = vadd.f32 %v1905_v40, %v807_v33  ;;  %v1130_v38 = vadd.f32 %v1905_v40, %v847_v34 }
  0xca   : > { %v1083_v39 = vadd.f32 %v1905_v40, %v730_v35  ;;  %v1099_v41 = vadd.f32 %v1905_v40, %v770_v36 }
  0xcb   : > { %vm1178_vm14 = vcmp.ge.f32.partialorder %v1114_v37, 0.0  ;;  %v1242_v42 = vmul.f32 0.2, %v1114_v37  ;;  %vm1194_vm15 = vcmp.ge.f32.partialorder %v1130_v38, 0.0  ;;  %v1258_v43 = vmul.f32 0.2, %v1130_v38 }
  0xcc   : > { %vm1147_vm0 = vcmp.ge.f32.partialorder %v1083_v39, 0.0  ;;  %v1211_v44 = vmul.f32 0.2, %v1083_v39  ;;  %vm1163_vm1 = vcmp.ge.f32.partialorder %v1099_v41, 0.0  ;;  %v1227_v45 = vmul.f32 0.2, %v1099_v41 }
  0xcd   : > { %v1306_v46 = vsel %vm1178_vm14, %v1114_v37, %v1242_v42  ;;  %v1322_v47 = vsel %vm1194_vm15, %v1130_v38, %v1258_v43 }
  0xce   : > { %1370 = vst [vmem:[%s1913_s18 + $0x118] sm:$0xff] %v1306_v46  ;;  %v1275_v48 = vsel %vm1147_vm0, %v1083_v39, %v1211_v44  ;;  %v1291_v49 = vsel %vm1163_vm1, %v1099_v41, %v1227_v45 }
  0xcf   : > { %1386 = vst [vmem:[%s1913_s18 + $0x198] sm:$0xff] %v1322_v47 }
  0xd0   : > { %v810_v50 = vpop.f32.mrf.mxu2  ;;  %v850_v51 = vpop.f32.mrf.mxu3  ;;  %1339 = vst [vmem:[%s1913_s18 + $0x20] sm:$0xff] %v1275_v48 }
  0xd1   : > { %v732_v52 = vpop.f32.mrf.mxu0  ;;  %v772_v53 = vpop.f32.mrf.mxu1  ;;  %1355 = vst [vmem:[%s1913_s18 + $0xa0] sm:$0xff] %v1291_v49  ;;  %v1115_v54 = vadd.f32 %v1905_v40, %v810_v50  ;;  %v1131_v55 = vadd.f32 %v1905_v40, %v850_v51 }
  0xd2   : > { %v1084_v56 = vadd.f32 %v1905_v40, %v732_v52  ;;  %v1100_v57 = vadd.f32 %v1905_v40, %v772_v53 }
  0xd3   : > { %vm1179_vm2 = vcmp.ge.f32.partialorder %v1115_v54, 0.0  ;;  %v1243_v58 = vmul.f32 0.2, %v1115_v54  ;;  %vm1195_vm3 = vcmp.ge.f32.partialorder %v1131_v55, 0.0  ;;  %v1259_v59 = vmul.f32 0.2, %v1131_v55 }
  0xd4   : > { %vm1148_vm4 = vcmp.ge.f32.partialorder %v1084_v56, 0.0  ;;  %v1212_v60 = vmul.f32 0.2, %v1084_v56  ;;  %vm1164_vm5 = vcmp.ge.f32.partialorder %v1100_v57, 0.0  ;;  %v1228_v61 = vmul.f32 0.2, %v1100_v57 }
  0xd5   : > { %v1307_v62 = vsel %vm1179_vm2, %v1115_v54, %v1243_v58  ;;  %v1323_v63 = vsel %vm1195_vm3, %v1131_v55, %v1259_v59 }
  0xd6   : > { %1371 = vst [vmem:[%s1913_s18 + $0x120] sm:$0xff] %v1307_v62  ;;  %v1276_v0 = vsel %vm1148_vm4, %v1084_v56, %v1212_v60  ;;  %v1292_v1 = vsel %vm1164_vm5, %v1100_v57, %v1228_v61 }
  0xd7   : > { %1387 = vst [vmem:[%s1913_s18 + $0x1a0] sm:$0xff] %v1323_v63 }
  0xd8   : > { %v812_v2 = vpop.f32.mrf.mxu2  ;;  %v852_v3 = vpop.f32.mrf.mxu3  ;;  %1340 = vst [vmem:[%s1913_s18 + $0x28] sm:$0xff] %v1276_v0 }
  0xd9   : > { %v735_v4 = vpop.f32.mrf.mxu0  ;;  %v775_v5 = vpop.f32.mrf.mxu1  ;;  %1356 = vst [vmem:[%s1913_s18 + $0xa8] sm:$0xff] %v1292_v1  ;;  %v1116_v6 = vadd.f32 %v1905_v40, %v812_v2  ;;  %v1132_v7 = vadd.f32 %v1905_v40, %v852_v3 }
  0xda   : > { %v1085_v8 = vadd.f32 %v1905_v40, %v735_v4  ;;  %v1101_v9 = vadd.f32 %v1905_v40, %v775_v5 }
  0xdb   : > { %vm1180_vm6 = vcmp.ge.f32.partialorder %v1116_v6, 0.0  ;;  %v1244_v10 = vmul.f32 0.2, %v1116_v6  ;;  %vm1196_vm7 = vcmp.ge.f32.partialorder %v1132_v7, 0.0  ;;  %v1260_v11 = vmul.f32 0.2, %v1132_v7 }
  0xdc   : > { %vm1149_vm8 = vcmp.ge.f32.partialorder %v1085_v8, 0.0  ;;  %v1213_v12 = vmul.f32 0.2, %v1085_v8  ;;  %vm1165_vm9 = vcmp.ge.f32.partialorder %v1101_v9, 0.0  ;;  %v1229_v13 = vmul.f32 0.2, %v1101_v9 }
  0xdd   : > { %v1308_v14 = vsel %vm1180_vm6, %v1116_v6, %v1244_v10  ;;  %v1324_v15 = vsel %vm1196_vm7, %v1132_v7, %v1260_v11 }
  0xde   : > { %1372 = vst [vmem:[%s1913_s18 + $0x128] sm:$0xff] %v1308_v14  ;;  %v1277_v16 = vsel %vm1149_vm8, %v1085_v8, %v1213_v12  ;;  %v1293_v17 = vsel %vm1165_vm9, %v1101_v9, %v1229_v13 }
  0xdf   : > { %1388 = vst [vmem:[%s1913_s18 + $0x1a8] sm:$0xff] %v1324_v15 }
  0xe0   : > { %v815_v18 = vpop.f32.mrf.mxu2  ;;  %v855_v19 = vpop.f32.mrf.mxu3  ;;  %1341 = vst [vmem:[%s1913_s18 + $0x30] sm:$0xff] %v1277_v16 }
  0xe1   : > { %v737_v20 = vpop.f32.mrf.mxu0  ;;  %v777_v21 = vpop.f32.mrf.mxu1  ;;  %1357 = vst [vmem:[%s1913_s18 + $0xb0] sm:$0xff] %v1293_v17  ;;  %v1117_v22 = vadd.f32 %v1905_v40, %v815_v18  ;;  %v1133_v23 = vadd.f32 %v1905_v40, %v855_v19 }
  0xe2   : > { %v1086_v24 = vadd.f32 %v1905_v40, %v737_v20  ;;  %v1102_v25 = vadd.f32 %v1905_v40, %v777_v21 }
  0xe3   : > { %vm1181_vm10 = vcmp.ge.f32.partialorder %v1117_v22, 0.0  ;;  %v1245_v26 = vmul.f32 0.2, %v1117_v22  ;;  %vm1197_vm11 = vcmp.ge.f32.partialorder %v1133_v23, 0.0  ;;  %v1261_v27 = vmul.f32 0.2, %v1133_v23 }
  0xe4   : > { %vm1150_vm12 = vcmp.ge.f32.partialorder %v1086_v24, 0.0  ;;  %v1214_v28 = vmul.f32 0.2, %v1086_v24  ;;  %vm1166_vm13 = vcmp.ge.f32.partialorder %v1102_v25, 0.0  ;;  %v1230_v29 = vmul.f32 0.2, %v1102_v25 }
  0xe5   : > { %v1309_v30 = vsel %vm1181_vm10, %v1117_v22, %v1245_v26  ;;  %v1325_v31 = vsel %vm1197_vm11, %v1133_v23, %v1261_v27 }
  0xe6   : > { %1373 = vst [vmem:[%s1913_s18 + $0x130] sm:$0xff] %v1309_v30  ;;  %v1278_v32 = vsel %vm1150_vm12, %v1086_v24, %v1214_v28  ;;  %v1294_v33 = vsel %vm1166_vm13, %v1102_v25, %v1230_v29 }
  0xe7   : > { %1389 = vst [vmem:[%s1913_s18 + $0x1b0] sm:$0xff] %v1325_v31 }
  0xe8   : > { %v817_v34 = vpop.f32.mrf.mxu2  ;;  %v857_v35 = vpop.f32.mrf.mxu3  ;;  %1342 = vst [vmem:[%s1913_s18 + $0x38] sm:$0xff] %v1278_v32 }
  0xe9   : > { %v740_v36 = vpop.f32.mrf.mxu0  ;;  %v780_v37 = vpop.f32.mrf.mxu1  ;;  %1358 = vst [vmem:[%s1913_s18 + $0xb8] sm:$0xff] %v1294_v33  ;;  %v1118_v38 = vadd.f32 %v1905_v40, %v817_v34  ;;  %v1134_v39 = vadd.f32 %v1905_v40, %v857_v35 }
  0xea   : > { %v1087_v41 = vadd.f32 %v1905_v40, %v740_v36  ;;  %v1103_v42 = vadd.f32 %v1905_v40, %v780_v37 }
  0xeb   : > { %vm1182_vm14 = vcmp.ge.f32.partialorder %v1118_v38, 0.0  ;;  %v1246_v43 = vmul.f32 0.2, %v1118_v38  ;;  %vm1198_vm15 = vcmp.ge.f32.partialorder %v1134_v39, 0.0  ;;  %v1262_v44 = vmul.f32 0.2, %v1134_v39 }
  0xec   : > { %vm1151_vm0 = vcmp.ge.f32.partialorder %v1087_v41, 0.0  ;;  %v1215_v45 = vmul.f32 0.2, %v1087_v41  ;;  %vm1167_vm1 = vcmp.ge.f32.partialorder %v1103_v42, 0.0  ;;  %v1231_v46 = vmul.f32 0.2, %v1103_v42 }
  0xed   : > { %v1310_v47 = vsel %vm1182_vm14, %v1118_v38, %v1246_v43  ;;  %v1326_v48 = vsel %vm1198_vm15, %v1134_v39, %v1262_v44 }
  0xee   : > { %1374 = vst [vmem:[%s1913_s18 + $0x138] sm:$0xff] %v1310_v47  ;;  %v1279_v49 = vsel %vm1151_vm0, %v1087_v41, %v1215_v45  ;;  %v1295_v50 = vsel %vm1167_vm1, %v1103_v42, %v1231_v46 }
  0xef   : > { %1390 = vst [vmem:[%s1913_s18 + $0x1b8] sm:$0xff] %v1326_v48 }
  0xf0   : > { %v820_v51 = vpop.f32.mrf.mxu2  ;;  %v860_v52 = vpop.f32.mrf.mxu3  ;;  %1343 = vst [vmem:[%s1913_s18 + $0x40] sm:$0xff] %v1279_v49 }
  0xf1   : > { %v742_v53 = vpop.f32.mrf.mxu0  ;;  %v782_v54 = vpop.f32.mrf.mxu1  ;;  %1359 = vst [vmem:[%s1913_s18 + $0xc0] sm:$0xff] %v1295_v50  ;;  %v1119_v55 = vadd.f32 %v1905_v40, %v820_v51  ;;  %v1135_v56 = vadd.f32 %v1905_v40, %v860_v52 }
  0xf2   : > { %v1088_v57 = vadd.f32 %v1905_v40, %v742_v53  ;;  %v1104_v58 = vadd.f32 %v1905_v40, %v782_v54 }
  0xf3   : > { %vm1183_vm2 = vcmp.ge.f32.partialorder %v1119_v55, 0.0  ;;  %v1247_v59 = vmul.f32 0.2, %v1119_v55  ;;  %vm1199_vm3 = vcmp.ge.f32.partialorder %v1135_v56, 0.0  ;;  %v1263_v60 = vmul.f32 0.2, %v1135_v56 }
  0xf4   : > { %vm1152_vm4 = vcmp.ge.f32.partialorder %v1088_v57, 0.0  ;;  %v1216_v61 = vmul.f32 0.2, %v1088_v57  ;;  %vm1168_vm5 = vcmp.ge.f32.partialorder %v1104_v58, 0.0  ;;  %v1232_v62 = vmul.f32 0.2, %v1104_v58 }
  0xf5   : > { %v1311_v63 = vsel %vm1183_vm2, %v1119_v55, %v1247_v59  ;;  %v1327_v0 = vsel %vm1199_vm3, %v1135_v56, %v1263_v60 }
  0xf6   : > { %1375 = vst [vmem:[%s1913_s18 + $0x140] sm:$0xff] %v1311_v63  ;;  %v1280_v1 = vsel %vm1152_vm4, %v1088_v57, %v1216_v61  ;;  %v1296_v2 = vsel %vm1168_vm5, %v1104_v58, %v1232_v62 }
  0xf7   : > { %1391 = vst [vmem:[%s1913_s18 + $0x1c0] sm:$0xff] %v1327_v0 }
  0xf8   : > { %v822_v3 = vpop.f32.mrf.mxu2  ;;  %v862_v4 = vpop.f32.mrf.mxu3  ;;  %1344 = vst [vmem:[%s1913_s18 + $0x48] sm:$0xff] %v1280_v1 }
  0xf9   : > { %v745_v5 = vpop.f32.mrf.mxu0  ;;  %v785_v6 = vpop.f32.mrf.mxu1  ;;  %1360 = vst [vmem:[%s1913_s18 + $0xc8] sm:$0xff] %v1296_v2  ;;  %v1120_v7 = vadd.f32 %v1905_v40, %v822_v3  ;;  %v1136_v8 = vadd.f32 %v1905_v40, %v862_v4 }
  0xfa   : > { %v1089_v9 = vadd.f32 %v1905_v40, %v745_v5  ;;  %v1105_v10 = vadd.f32 %v1905_v40, %v785_v6 }
  0xfb   : > { %vm1184_vm6 = vcmp.ge.f32.partialorder %v1120_v7, 0.0  ;;  %v1248_v11 = vmul.f32 0.2, %v1120_v7  ;;  %vm1200_vm7 = vcmp.ge.f32.partialorder %v1136_v8, 0.0  ;;  %v1264_v12 = vmul.f32 0.2, %v1136_v8 }
  0xfc   : > { %vm1153_vm8 = vcmp.ge.f32.partialorder %v1089_v9, 0.0  ;;  %v1217_v13 = vmul.f32 0.2, %v1089_v9  ;;  %vm1169_vm9 = vcmp.ge.f32.partialorder %v1105_v10, 0.0  ;;  %v1233_v14 = vmul.f32 0.2, %v1105_v10 }
  0xfd   : > { %v1312_v15 = vsel %vm1184_vm6, %v1120_v7, %v1248_v11  ;;  %v1328_v16 = vsel %vm1200_vm7, %v1136_v8, %v1264_v12 }
  0xfe   : > { %1376 = vst [vmem:[%s1913_s18 + $0x148] sm:$0xff] %v1312_v15  ;;  %v1281_v17 = vsel %vm1153_vm8, %v1089_v9, %v1217_v13  ;;  %v1297_v18 = vsel %vm1169_vm9, %v1105_v10, %v1233_v14 }
  0xff   : > { %1392 = vst [vmem:[%s1913_s18 + $0x1c8] sm:$0xff] %v1328_v16 }
 0x100   : > { %v825_v19 = vpop.f32.mrf.mxu2  ;;  %v865_v20 = vpop.f32.mrf.mxu3  ;;  %1345 = vst [vmem:[%s1913_s18 + $0x50] sm:$0xff] %v1281_v17 }
 0x101   : > { %v747_v21 = vpop.f32.mrf.mxu0  ;;  %v787_v22 = vpop.f32.mrf.mxu1  ;;  %1361 = vst [vmem:[%s1913_s18 + $0xd0] sm:$0xff] %v1297_v18  ;;  %v1121_v23 = vadd.f32 %v1905_v40, %v825_v19  ;;  %v1137_v24 = vadd.f32 %v1905_v40, %v865_v20 }
 0x102   : > { %v1090_v25 = vadd.f32 %v1905_v40, %v747_v21  ;;  %v1106_v26 = vadd.f32 %v1905_v40, %v787_v22 }
 0x103   : > { %vm1185_vm10 = vcmp.ge.f32.partialorder %v1121_v23, 0.0  ;;  %v1249_v27 = vmul.f32 0.2, %v1121_v23  ;;  %vm1201_vm11 = vcmp.ge.f32.partialorder %v1137_v24, 0.0  ;;  %v1265_v28 = vmul.f32 0.2, %v1137_v24 }
 0x104   : > { %vm1154_vm12 = vcmp.ge.f32.partialorder %v1090_v25, 0.0  ;;  %v1218_v29 = vmul.f32 0.2, %v1090_v25  ;;  %vm1170_vm13 = vcmp.ge.f32.partialorder %v1106_v26, 0.0  ;;  %v1234_v30 = vmul.f32 0.2, %v1106_v26 }
 0x105   : > { %v1313_v31 = vsel %vm1185_vm10, %v1121_v23, %v1249_v27  ;;  %v1329_v32 = vsel %vm1201_vm11, %v1137_v24, %v1265_v28 }
 0x106   : > { %1377 = vst [vmem:[%s1913_s18 + $0x150] sm:$0xff] %v1313_v31  ;;  %v1282_v33 = vsel %vm1154_vm12, %v1090_v25, %v1218_v29  ;;  %v1298_v34 = vsel %vm1170_vm13, %v1106_v26, %v1234_v30 }
 0x107   : > { %1393 = vst [vmem:[%s1913_s18 + $0x1d0] sm:$0xff] %v1329_v32 }
 0x108   : > { %v827_v35 = vpop.f32.mrf.mxu2  ;;  %v867_v36 = vpop.f32.mrf.mxu3  ;;  %1346 = vst [vmem:[%s1913_s18 + $0x58] sm:$0xff] %v1282_v33 }
 0x109   : > { %v750_v37 = vpop.f32.mrf.mxu0  ;;  %v790_v38 = vpop.f32.mrf.mxu1  ;;  %1362 = vst [vmem:[%s1913_s18 + $0xd8] sm:$0xff] %v1298_v34  ;;  %v1122_v39 = vadd.f32 %v1905_v40, %v827_v35  ;;  %v1138_v41 = vadd.f32 %v1905_v40, %v867_v36 }
 0x10a   : > { %v1091_v42 = vadd.f32 %v1905_v40, %v750_v37  ;;  %v1107_v43 = vadd.f32 %v1905_v40, %v790_v38 }
 0x10b   : > { %vm1186_vm14 = vcmp.ge.f32.partialorder %v1122_v39, 0.0  ;;  %v1250_v44 = vmul.f32 0.2, %v1122_v39  ;;  %vm1202_vm15 = vcmp.ge.f32.partialorder %v1138_v41, 0.0  ;;  %v1266_v45 = vmul.f32 0.2, %v1138_v41 }
 0x10c   : > { %vm1155_vm0 = vcmp.ge.f32.partialorder %v1091_v42, 0.0  ;;  %v1219_v46 = vmul.f32 0.2, %v1091_v42  ;;  %vm1171_vm1 = vcmp.ge.f32.partialorder %v1107_v43, 0.0  ;;  %v1235_v47 = vmul.f32 0.2, %v1107_v43 }
 0x10d   : > { %v1314_v48 = vsel %vm1186_vm14, %v1122_v39, %v1250_v44  ;;  %v1330_v49 = vsel %vm1202_vm15, %v1138_v41, %v1266_v45 }
 0x10e   : > { %1378 = vst [vmem:[%s1913_s18 + $0x158] sm:$0xff] %v1314_v48  ;;  %v1283_v50 = vsel %vm1155_vm0, %v1091_v42, %v1219_v46  ;;  %v1299_v51 = vsel %vm1171_vm1, %v1107_v43, %v1235_v47 }
 0x10f   : > { %1394 = vst [vmem:[%s1913_s18 + $0x1d8] sm:$0xff] %v1330_v49 }
 0x110   : > { %v830_v52 = vpop.f32.mrf.mxu2  ;;  %v870_v53 = vpop.f32.mrf.mxu3  ;;  %1347 = vst [vmem:[%s1913_s18 + $0x60] sm:$0xff] %v1283_v50 }
 0x111   : > { %v752_v54 = vpop.f32.mrf.mxu0  ;;  %v792_v55 = vpop.f32.mrf.mxu1  ;;  %1363 = vst [vmem:[%s1913_s18 + $0xe0] sm:$0xff] %v1299_v51  ;;  %v1123_v56 = vadd.f32 %v1905_v40, %v830_v52  ;;  %v1139_v57 = vadd.f32 %v1905_v40, %v870_v53 }
 0x112   : > { %v1092_v58 = vadd.f32 %v1905_v40, %v752_v54  ;;  %v1108_v59 = vadd.f32 %v1905_v40, %v792_v55 }
 0x113   : > { %vm1187_vm2 = vcmp.ge.f32.partialorder %v1123_v56, 0.0  ;;  %v1251_v60 = vmul.f32 0.2, %v1123_v56  ;;  %vm1203_vm3 = vcmp.ge.f32.partialorder %v1139_v57, 0.0  ;;  %v1267_v61 = vmul.f32 0.2, %v1139_v57 }
 0x114   : > { %vm1156_vm4 = vcmp.ge.f32.partialorder %v1092_v58, 0.0  ;;  %v1220_v62 = vmul.f32 0.2, %v1092_v58  ;;  %vm1172_vm5 = vcmp.ge.f32.partialorder %v1108_v59, 0.0  ;;  %v1236_v63 = vmul.f32 0.2, %v1108_v59 }
 0x115   : > { %v1315_v0 = vsel %vm1187_vm2, %v1123_v56, %v1251_v60  ;;  %v1331_v1 = vsel %vm1203_vm3, %v1139_v57, %v1267_v61 }
 0x116   : > { %1379 = vst [vmem:[%s1913_s18 + $0x160] sm:$0xff] %v1315_v0  ;;  %v1284_v2 = vsel %vm1156_vm4, %v1092_v58, %v1220_v62  ;;  %v1300_v3 = vsel %vm1172_vm5, %v1108_v59, %v1236_v63 }
 0x117   : > { %1395 = vst [vmem:[%s1913_s18 + $0x1e0] sm:$0xff] %v1331_v1 }
 0x118   : > { %v832_v4 = vpop.f32.mrf.mxu2  ;;  %v872_v5 = vpop.f32.mrf.mxu3  ;;  %1348 = vst [vmem:[%s1913_s18 + $0x68] sm:$0xff] %v1284_v2 }
 0x119   : > { %v755_v6 = vpop.f32.mrf.mxu0  ;;  %v795_v7 = vpop.f32.mrf.mxu1  ;;  %1364 = vst [vmem:[%s1913_s18 + $0xe8] sm:$0xff] %v1300_v3  ;;  %v1124_v8 = vadd.f32 %v1905_v40, %v832_v4  ;;  %v1140_v9 = vadd.f32 %v1905_v40, %v872_v5 }
 0x11a   : > { %v1093_v10 = vadd.f32 %v1905_v40, %v755_v6  ;;  %v1109_v11 = vadd.f32 %v1905_v40, %v795_v7 }
 0x11b   : > { %vm1188_vm6 = vcmp.ge.f32.partialorder %v1124_v8, 0.0  ;;  %v1252_v12 = vmul.f32 0.2, %v1124_v8  ;;  %vm1204_vm7 = vcmp.ge.f32.partialorder %v1140_v9, 0.0  ;;  %v1268_v13 = vmul.f32 0.2, %v1140_v9 }
 0x11c   : > { %vm1157_vm8 = vcmp.ge.f32.partialorder %v1093_v10, 0.0  ;;  %v1221_v14 = vmul.f32 0.2, %v1093_v10  ;;  %vm1173_vm9 = vcmp.ge.f32.partialorder %v1109_v11, 0.0  ;;  %v1237_v15 = vmul.f32 0.2, %v1109_v11 }
 0x11d   : > { %v1316_v16 = vsel %vm1188_vm6, %v1124_v8, %v1252_v12  ;;  %v1332_v17 = vsel %vm1204_vm7, %v1140_v9, %v1268_v13 }
 0x11e   : > { %1380 = vst [vmem:[%s1913_s18 + $0x168] sm:$0xff] %v1316_v16  ;;  %v1285_v18 = vsel %vm1157_vm8, %v1093_v10, %v1221_v14  ;;  %v1301_v19 = vsel %vm1173_vm9, %v1109_v11, %v1237_v15 }
 0x11f   : > { %1396 = vst [vmem:[%s1913_s18 + $0x1e8] sm:$0xff] %v1332_v17 }
 0x120   : > { %v835_v20 = vpop.f32.mrf.mxu2  ;;  %v875_v21 = vpop.f32.mrf.mxu3  ;;  %1349 = vst [vmem:[%s1913_s18 + $0x70] sm:$0xff] %v1285_v18 }
 0x121   : > { %v757_v22 = vpop.f32.mrf.mxu0  ;;  %v797_v23 = vpop.f32.mrf.mxu1  ;;  %1365 = vst [vmem:[%s1913_s18 + $0xf0] sm:$0xff] %v1301_v19  ;;  %v1125_v24 = vadd.f32 %v1905_v40, %v835_v20  ;;  %v1141_v25 = vadd.f32 %v1905_v40, %v875_v21 }
 0x122   : > { %v1094_v26 = vadd.f32 %v1905_v40, %v757_v22  ;;  %v1110_v27 = vadd.f32 %v1905_v40, %v797_v23 }
 0x123   : > { %vm1189_vm10 = vcmp.ge.f32.partialorder %v1125_v24, 0.0  ;;  %v1253_v28 = vmul.f32 0.2, %v1125_v24  ;;  %vm1205_vm11 = vcmp.ge.f32.partialorder %v1141_v25, 0.0  ;;  %v1269_v29 = vmul.f32 0.2, %v1141_v25 }
 0x124   : > { %vm1158_vm12 = vcmp.ge.f32.partialorder %v1094_v26, 0.0  ;;  %v1222_v30 = vmul.f32 0.2, %v1094_v26  ;;  %vm1174_vm13 = vcmp.ge.f32.partialorder %v1110_v27, 0.0  ;;  %v1238_v31 = vmul.f32 0.2, %v1110_v27 }
 0x125   : > { %v1317_v32 = vsel %vm1189_vm10, %v1125_v24, %v1253_v28  ;;  %v1333_v33 = vsel %vm1205_vm11, %v1141_v25, %v1269_v29 }
 0x126   : > { %1381 = vst [vmem:[%s1913_s18 + $0x170] sm:$0xff] %v1317_v32  ;;  %v1286_v34 = vsel %vm1158_vm12, %v1094_v26, %v1222_v30  ;;  %v1302_v35 = vsel %vm1174_vm13, %v1110_v27, %v1238_v31 }
 0x127   : > { %1397 = vst [vmem:[%s1913_s18 + $0x1f0] sm:$0xff] %v1333_v33 }
 0x128   : > { %v837_v36 = vpop.f32.mrf.mxu2  ;;  %v877_v37 = vpop.f32.mrf.mxu3  ;;  %1350 = vst [vmem:[%s1913_s18 + $0x78] sm:$0xff] %v1286_v34 }
 0x129   : > { %1366 = vst [vmem:[%s1913_s18 + $0xf8] sm:$0xff] %v1302_v35  ;;  %v1126_v38 = vadd.f32 %v1905_v40, %v837_v36  ;;  %v1142_v39 = vadd.f32 %v1905_v40, %v877_v37 }
 0x12b   : > { %vm1190_vm14 = vcmp.ge.f32.partialorder %v1126_v38, 0.0  ;;  %v1254_v41 = vmul.f32 0.2, %v1126_v38  ;;  %vm1206_vm15 = vcmp.ge.f32.partialorder %v1142_v39, 0.0  ;;  %v1270_v42 = vmul.f32 0.2, %v1142_v39 }
 0x12d   : > { %v1318_v43 = vsel %vm1190_vm14, %v1126_v38, %v1254_v41  ;;  %v1334_v44 = vsel %vm1206_vm15, %v1142_v39, %v1270_v42 }
 0x12e   : > { %1382 = vst [vmem:[%s1913_s18 + $0x178] sm:$0xff] %v1318_v43 }
 0x12f   : > { %1398 = vst [vmem:[%s1913_s18 + $0x1f8] sm:$0xff] %v1334_v44 }
 0x130 PF: > { %s13_s14 = sadd.s32 1, %s1795_s14   ;;  %s2054_s12 = smov %s1791_s13 }
 0x131   : > { %p10_p5 = scmp.ge.s32.totalorder %s13_s14, 6   ;;  %s2055_s13 = smov %s2057_s15 }
 0x133   :  { %12 = sbr.rel (!%p10_p5) target bundleno = 2 (0x2), region = 76 }

// kernel: discriminator_forward.9
= control target key start
LH: loop header
LB: loop body
LE: loop exit
PB: predicated region body
PF: predicated region fallthrough
CT: control target
= control target key end

     0   :  { %s2148_s1 = inlined_call_operand.vmem [shape: bf16[128,128], index: 1, kind: input, shape index: {}]   ;;  %s2149_s2 = inlined_call_operand.vmem [shape: f32[1,128], index: 2, kind: input, shape index: {}]   ;;  %s2150_s0 = inlined_call_operand.vmem [shape: bf16[512,128], index: 0, kind: input, shape index: {}]   ;;  %s2151_s3 = inlined_call_operand.vmem [shape: f32[512,128], index: 3, kind: output, shape index: {0}]   ;;  %s2152_s4 = inlined_call_operand.vmem [shape: f32[1,1,128], index: 4, kind: output, shape index: {1}]   ;;  %s2153_s5 = inlined_call_operand.vmem [shape: f32[1,1,128], index: 5, kind: output, shape index: {2}]  }
   0x1   :  { %v1380_v0 = vld [vmem:[%s2148_s1 + $0x38] sm:$0xff]  ;;  %v1379_v1 = vld [vmem:[%s2148_s1 + $0x30] sm:$0xff]  ;;  %v1378_v2 = vld [vmem:[%s2148_s1 + $0x28] sm:$0xff] }
   0x2   :  { %469 = vmatpush.bf16.msra.mxu0 %v1380_v0  ;;  %1381 = vmatpush.bf16.msra.mxu1 %v1380_v0  ;;  %v1377_v3 = vld [vmem:[%s2148_s1 + $0x20] sm:$0xff]  ;;  %v1376_v4 = vld [vmem:[%s2148_s1 + $0x18] sm:$0xff]  ;;  %v1375_v5 = vld [vmem:[%s2148_s1 + $0x10] sm:$0xff] }
   0x3   :  { %1382 = vmatpush.bf16.msra.mxu2 %v1380_v0  ;;  %1383 = vmatpush.bf16.msra.mxu3 %v1380_v0  ;;  %v1374_v6 = vld [vmem:[%s2148_s1 + $0x8] sm:$0xff]  ;;  %v1373_v7 = vld [vmem:[%s2148_s1] sm:$0xff]  ;;  %v1343_v13 = vld [vmem:[%s2150_s0 + $0x10] sm:$0xff] }
   0x4   :  { %v1341_v8 = vld [vmem:[%s2150_s0] sm:$0xff]  ;;  %v1342_v10 = vld [vmem:[%s2150_s0 + $0x8] sm:$0xff]  ;;  %v1351_v14 = vld [vmem:[%s2150_s0 + $0x50] sm:$0xff] }
   0x5   :  { %v1349_v9 = vld [vmem:[%s2150_s0 + $0x40] sm:$0xff]  ;;  %v1350_v11 = vld [vmem:[%s2150_s0 + $0x48] sm:$0xff]  ;;  %v1344_v16 = vld [vmem:[%s2150_s0 + $0x18] sm:$0xff] }
   0x6   :  { %470 = vmatpush.bf16.msra.mxu0 %v1379_v1  ;;  %1384 = vmatpush.bf16.msra.mxu1 %v1379_v1  ;;  %v1357_v12 = vld [vmem:[%s2150_s0 + $0x80] sm:$0xff]  ;;  %v1358_v15 = vld [vmem:[%s2150_s0 + $0x88] sm:$0xff]  ;;  %v1352_v17 = vld [vmem:[%s2150_s0 + $0x58] sm:$0xff] }
   0x7   :  { %1385 = vmatpush.bf16.msra.mxu2 %v1379_v1  ;;  %1386 = vmatpush.bf16.msra.mxu3 %v1379_v1  ;;  %v1359_v18 = vld [vmem:[%s2150_s0 + $0x90] sm:$0xff]  ;;  %v1365_v19 = vld [vmem:[%s2150_s0 + $0xc0] sm:$0xff]  ;;  %v1360_v22 = vld [vmem:[%s2150_s0 + $0x98] sm:$0xff] }
   0x8   :  { %v1345_v20 = vld [vmem:[%s2150_s0 + $0x20] sm:$0xff]  ;;  %v1366_v23 = vld [vmem:[%s2150_s0 + $0xc8] sm:$0xff]  ;;  %v1367_v27 = vld [vmem:[%s2150_s0 + $0xd0] sm:$0xff] }
   0x9   :  { %v1353_v21 = vld [vmem:[%s2150_s0 + $0x60] sm:$0xff]  ;;  %v1346_v24 = vld [vmem:[%s2150_s0 + $0x28] sm:$0xff]  ;;  %v1347_v28 = vld [vmem:[%s2150_s0 + $0x30] sm:$0xff] }
   0xa   :  { %471 = vmatpush.bf16.msra.mxu0 %v1378_v2  ;;  %1387 = vmatpush.bf16.msra.mxu1 %v1378_v2  ;;  %v1354_v25 = vld [vmem:[%s2150_s0 + $0x68] sm:$0xff]  ;;  %v1361_v26 = vld [vmem:[%s2150_s0 + $0xa0] sm:$0xff]  ;;  %v1355_v29 = vld [vmem:[%s2150_s0 + $0x70] sm:$0xff] }
   0xb   :  { %1388 = vmatpush.bf16.msra.mxu2 %v1378_v2  ;;  %1389 = vmatpush.bf16.msra.mxu3 %v1378_v2  ;;  %v1362_v30 = vld [vmem:[%s2150_s0 + $0xa8] sm:$0xff]  ;;  %v1368_v31 = vld [vmem:[%s2150_s0 + $0xd8] sm:$0xff]  ;;  %v1363_v34 = vld [vmem:[%s2150_s0 + $0xb0] sm:$0xff] }
   0xc   :  { %v1348_v32 = vld [vmem:[%s2150_s0 + $0x38] sm:$0xff]  ;;  %v1369_v35 = vld [vmem:[%s2150_s0 + $0xe0] sm:$0xff]  ;;  %v1370_v42 = vld [vmem:[%s2150_s0 + $0xe8] sm:$0xff] }
   0xd   :  { %v1356_v33 = vld [vmem:[%s2150_s0 + $0x78] sm:$0xff]  ;;  %v1548_v36 = vld [vmem:[%s2149_s2] ss:$0 sm:$0xff]  ;;  %v1371_v55 = vld [vmem:[%s2150_s0 + $0xf0] sm:$0xff] }
   0xe   :  { %472 = vmatpush.bf16.msra.mxu0 %v1377_v3  ;;  %1390 = vmatpush.bf16.msra.mxu1 %v1377_v3  ;;  %v1364_v41 = vld [vmem:[%s2150_s0 + $0xb8] sm:$0xff] }
   0xf   :  { %1391 = vmatpush.bf16.msra.mxu2 %v1377_v3  ;;  %1392 = vmatpush.bf16.msra.mxu3 %v1377_v3 }
  0x12   :  { %473 = vmatpush.bf16.msra.mxu0 %v1376_v4  ;;  %1393 = vmatpush.bf16.msra.mxu1 %v1376_v4 }
  0x13   :  { %1394 = vmatpush.bf16.msra.mxu2 %v1376_v4  ;;  %1395 = vmatpush.bf16.msra.mxu3 %v1376_v4 }
  0x16   :  { %474 = vmatpush.bf16.msra.mxu0 %v1375_v5  ;;  %1396 = vmatpush.bf16.msra.mxu1 %v1375_v5 }
  0x17   :  { %1397 = vmatpush.bf16.msra.mxu2 %v1375_v5  ;;  %1398 = vmatpush.bf16.msra.mxu3 %v1375_v5 }
  0x1a   :  { %475 = vmatpush.bf16.msra.mxu0 %v1374_v6  ;;  %1399 = vmatpush.bf16.msra.mxu1 %v1374_v6 }
  0x1b   :  { %1400 = vmatpush.bf16.msra.mxu2 %v1374_v6  ;;  %1401 = vmatpush.bf16.msra.mxu3 %v1374_v6 }
  0x1e   :  { %476 = vmatpush.bf16.msra.mxu0 %v1373_v7  ;;  %1402 = vmatpush.bf16.msra.mxu1 %v1373_v7 }
  0x1f   :  { %1403 = vmatpush.bf16.msra.mxu2 %v1373_v7  ;;  %1404 = vmatpush.bf16.msra.mxu3 %v1373_v7 }
  0x21   :  { %477 = vmatmul.bf16.vlgmr.msra.gmra.mxu0 %v1341_v8  ;;  %517 = vmatmul.bf16.vlgmr.msra.gmra.mxu1 %v1349_v9  ;;  %v1372_v9 = vld [vmem:[%s2150_s0 + $0xf8] sm:$0xff] }
  0x22   :  { %557 = vmatmul.bf16.vlgmr.msra.gmra.mxu2 %v1357_v12  ;;  %597 = vmatmul.bf16.vlgmr.msra.gmra.mxu3 %v1365_v19 }
  0x31   :  { %482 = vmatmul.bf16.gmra.mxu0 %v1342_v10  ;;  %522 = vmatmul.bf16.gmra.mxu1 %v1350_v11 }
  0x32   :  { %562 = vmatmul.bf16.gmra.mxu2 %v1358_v15  ;;  %602 = vmatmul.bf16.gmra.mxu3 %v1366_v23 }
  0x41   :  { %487 = vmatmul.bf16.gmra.mxu0 %v1343_v13  ;;  %527 = vmatmul.bf16.gmra.mxu1 %v1351_v14 }
  0x42   :  { %567 = vmatmul.bf16.gmra.mxu2 %v1359_v18  ;;  %607 = vmatmul.bf16.gmra.mxu3 %v1367_v27 }
  0x51   :  { %492 = vmatmul.bf16.gmra.mxu0 %v1344_v16  ;;  %532 = vmatmul.bf16.gmra.mxu1 %v1352_v17 }
  0x52   :  { %572 = vmatmul.bf16.gmra.mxu2 %v1360_v22  ;;  %612 = vmatmul.bf16.gmra.mxu3 %v1368_v31 }
  0x61   :  { %497 = vmatmul.bf16.gmra.mxu0 %v1345_v20  ;;  %537 = vmatmul.bf16.gmra.mxu1 %v1353_v21 }
  0x62   :  { %577 = vmatmul.bf16.gmra.mxu2 %v1361_v26  ;;  %617 = vmatmul.bf16.gmra.mxu3 %v1369_v35 }
  0x71   :  { %502 = vmatmul.bf16.gmra.mxu0 %v1346_v24  ;;  %542 = vmatmul.bf16.gmra.mxu1 %v1354_v25 }
  0x72   :  { %582 = vmatmul.bf16.gmra.mxu2 %v1362_v30  ;;  %622 = vmatmul.bf16.gmra.mxu3 %v1370_v42 }
  0x81   :  { %507 = vmatmul.bf16.gmra.mxu0 %v1347_v28  ;;  %547 = vmatmul.bf16.gmra.mxu1 %v1355_v29 }
  0x82   :  { %587 = vmatmul.bf16.gmra.mxu2 %v1363_v34  ;;  %627 = vmatmul.bf16.gmra.mxu3 %v1371_v55 }
  0x91   :  { %512 = vmatmul.bf16.gmra.mxu0 %v1348_v32  ;;  %552 = vmatmul.bf16.gmra.mxu1 %v1356_v33 }
  0x92   :  { %592 = vmatmul.bf16.gmra.mxu2 %v1364_v41  ;;  %632 = vmatmul.bf16.gmra.mxu3 %v1372_v9 }
  0x9e   :  { %v478_v37 = vpop.f32.mrf.mxu0  ;;  %v518_v38 = vpop.f32.mrf.mxu1 }
  0x9f   :  { %v837_v39 = vadd.f32 %v1548_v36, %v478_v37  ;;  %v1552_v40 = vadd.f32 %v1548_v36, %v518_v38 }
  0xa1   :  { %901 = vst [vmem:[%s2151_s3] sm:$0xff] %v837_v39  ;;  %v1035_v47 = vmul.f32 %v837_v39, %v837_v39 }
  0xa2   :  { %917 = vst [vmem:[%s2151_s3 + $0x80] sm:$0xff] %v1552_v40 }
  0xa5   :  { %v558_v61 = vpop.f32.mrf.mxu2  ;;  %v598_v29 = vpop.f32.mrf.mxu3 }
  0xa6   :  { %v480_v43 = vpop.f32.mrf.mxu0  ;;  %v520_v44 = vpop.f32.mrf.mxu1  ;;  %v1604_v5 = vadd.f32 %v1548_v36, %v558_v61  ;;  %v1695_v35 = vadd.f32 %v1548_v36, %v598_v29 }
  0xa7   :  { %v838_v45 = vadd.f32 %v1548_v36, %v480_v43  ;;  %v1569_v46 = vadd.f32 %v1548_v36, %v520_v44 }
  0xa8   :  { %933 = vst [vmem:[%s2151_s3 + $0x100] sm:$0xff] %v1604_v5 }
  0xa9   :  { %902 = vst [vmem:[%s2151_s3 + $0x8] sm:$0xff] %v838_v45  ;;  %v965_v48 = vadd.f32 %v838_v45, %v837_v39  ;;  %v1036_v49 = vmul.f32 %v838_v45, %v838_v45 }
  0xaa   :  { %918 = vst [vmem:[%s2151_s3 + $0x88] sm:$0xff] %v1569_v46 }
  0xab   :  { %v1099_v50 = vadd.f32 %v1036_v49, %v1035_v47  ;;  %949 = vst [vmem:[%s2151_s3 + $0x180] sm:$0xff] %v1695_v35 }
  0xad   :  { %v560_v6 = vpop.f32.mrf.mxu2  ;;  %v600_v38 = vpop.f32.mrf.mxu3 }
  0xae   :  { %v483_v51 = vpop.f32.mrf.mxu0  ;;  %v523_v52 = vpop.f32.mrf.mxu1  ;;  %v1618_v10 = vadd.f32 %v1548_v36, %v560_v6  ;;  %v1715_v43 = vadd.f32 %v1548_v36, %v600_v38 }
  0xaf   :  { %v839_v53 = vadd.f32 %v1548_v36, %v483_v51  ;;  %v1580_v54 = vadd.f32 %v1548_v36, %v523_v52 }
  0xb0   :  { %934 = vst [vmem:[%s2151_s3 + $0x108] sm:$0xff] %v1618_v10 }
  0xb1   :  { %903 = vst [vmem:[%s2151_s3 + $0x10] sm:$0xff] %v839_v53  ;;  %v966_v56 = vadd.f32 %v965_v48, %v839_v53  ;;  %v1037_v57 = vmul.f32 %v839_v53, %v839_v53 }
  0xb2   :  { %919 = vst [vmem:[%s2151_s3 + $0x90] sm:$0xff] %v1580_v54 }
  0xb3   :  { %v1100_v58 = vadd.f32 %v1099_v50, %v1037_v57  ;;  %950 = vst [vmem:[%s2151_s3 + $0x188] sm:$0xff] %v1715_v43 }
  0xb5   :  { %v563_v16 = vpop.f32.mrf.mxu2  ;;  %v603_v48 = vpop.f32.mrf.mxu3 }
  0xb6   :  { %v485_v59 = vpop.f32.mrf.mxu0  ;;  %v525_v60 = vpop.f32.mrf.mxu1  ;;  %v1650_v21 = vadd.f32 %v1548_v36, %v563_v16  ;;  %v1751_v55 = vadd.f32 %v1548_v36, %v603_v48 }
  0xb7   :  { %v840_v62 = vadd.f32 %v1548_v36, %v485_v59  ;;  %v1594_v63 = vadd.f32 %v1548_v36, %v525_v60 }
  0xb8   :  { %935 = vst [vmem:[%s2151_s3 + $0x110] sm:$0xff] %v1650_v21 }
  0xb9   :  { %904 = vst [vmem:[%s2151_s3 + $0x18] sm:$0xff] %v840_v62  ;;  %v967_v0 = vadd.f32 %v966_v56, %v840_v62  ;;  %v1038_v1 = vmul.f32 %v840_v62, %v840_v62 }
  0xba   :  { %920 = vst [vmem:[%s2151_s3 + $0x98] sm:$0xff] %v1594_v63 }
  0xbb   :  { %v1101_v2 = vadd.f32 %v1100_v58, %v1038_v1  ;;  %951 = vst [vmem:[%s2151_s3 + $0x190] sm:$0xff] %v1751_v55 }
  0xbd   :  { %v565_v22 = vpop.f32.mrf.mxu2  ;;  %v605_v57 = vpop.f32.mrf.mxu3 }
  0xbe   :  { %v488_v3 = vpop.f32.mrf.mxu0  ;;  %v528_v4 = vpop.f32.mrf.mxu1  ;;  %v1663_v25 = vadd.f32 %v1548_v36, %v565_v22  ;;  %v1771_v61 = vadd.f32 %v1548_v36, %v605_v57 }
  0xbf   :  { %v841_v7 = vadd.f32 %v1548_v36, %v488_v3  ;;  %v1608_v8 = vadd.f32 %v1548_v36, %v528_v4 }
  0xc0   :  { %936 = vst [vmem:[%s2151_s3 + $0x118] sm:$0xff] %v1663_v25 }
  0xc1   :  { %905 = vst [vmem:[%s2151_s3 + $0x20] sm:$0xff] %v841_v7  ;;  %v1623_v11 = vadd.f32 %v967_v0, %v841_v7  ;;  %v1039_v12 = vmul.f32 %v841_v7, %v841_v7 }
  0xc2   :  { %921 = vst [vmem:[%s2151_s3 + $0xa0] sm:$0xff] %v1608_v8 }
  0xc3   :  { %v1629_v13 = vadd.f32 %v1101_v2, %v1039_v12  ;;  %952 = vst [vmem:[%s2151_s3 + $0x198] sm:$0xff] %v1771_v61 }
  0xc5   :  { %v568_v28 = vpop.f32.mrf.mxu2  ;;  %v608_v2 = vpop.f32.mrf.mxu3 }
  0xc6   :  { %v490_v14 = vpop.f32.mrf.mxu0  ;;  %v530_v15 = vpop.f32.mrf.mxu1  ;;  %v1692_v34 = vadd.f32 %v1548_v36, %v568_v28 }
  0xc7   :  { %v1636_v17 = vadd.f32 %v1548_v36, %v490_v14  ;;  %v1639_v18 = vadd.f32 %v1548_v36, %v530_v15 }
  0xc8   :  { %937 = vst [vmem:[%s2151_s3 + $0x120] sm:$0xff] %v1692_v34 }
  0xc9   :  { %906 = vst [vmem:[%s2151_s3 + $0x28] sm:$0xff] %v1636_v17  ;;  %v1040_v22 = vmul.f32 %v1636_v17, %v1636_v17 }
  0xca   :  { %922 = vst [vmem:[%s2151_s3 + $0xa8] sm:$0xff] %v1639_v18 }
  0xcb   :  { %v1103_v38 = vadd.f32 %v1629_v13, %v1040_v22 }
  0xcd   :  { %v570_v37 = vpop.f32.mrf.mxu2  ;;  %v610_v12 = vpop.f32.mrf.mxu3 }
  0xce   :  { %v493_v19 = vpop.f32.mrf.mxu0  ;;  %v533_v20 = vpop.f32.mrf.mxu1  ;;  %v1712_v42 = vadd.f32 %v1548_v36, %v570_v37 }
  0xcf   :  { %v1653_v23 = vadd.f32 %v1548_v36, %v493_v19  ;;  %v1656_v24 = vadd.f32 %v1548_v36, %v533_v20  ;;  %v1808_v19 = vadd.f32 %v1548_v36, %v608_v2 }
  0xd0   :  { %938 = vst [vmem:[%s2151_s3 + $0x128] sm:$0xff] %v1712_v42 }
  0xd1   :  { %907 = vst [vmem:[%s2151_s3 + $0x30] sm:$0xff] %v1653_v23  ;;  %v1041_v28 = vmul.f32 %v1653_v23, %v1653_v23 }
  0xd2   :  { %923 = vst [vmem:[%s2151_s3 + $0xb0] sm:$0xff] %v1656_v24 }
  0xd3   :  { %953 = vst [vmem:[%s2151_s3 + $0x1a0] sm:$0xff] %v1808_v19 }
  0xd5   :  { %v573_v47 = vpop.f32.mrf.mxu2  ;;  %v613_v37 = vpop.f32.mrf.mxu3 }
  0xd6   :  { %v495_v26 = vpop.f32.mrf.mxu0  ;;  %v535_v27 = vpop.f32.mrf.mxu1  ;;  %v1748_v53 = vadd.f32 %v1548_v36, %v573_v47  ;;  %v1104_v47 = vadd.f32 %v1103_v38, %v1041_v28  ;;  %v1878_v28 = vadd.f32 %v1548_v36, %v613_v37 }
  0xd7   :  { %v1678_v30 = vadd.f32 %v1548_v36, %v495_v26  ;;  %v1681_v31 = vadd.f32 %v1548_v36, %v535_v27  ;;  %v1823_v26 = vadd.f32 %v1548_v36, %v610_v12  ;;  %v969_v27 = vadd.f32 %v1623_v11, %v1636_v17 }
  0xd8   :  { %939 = vst [vmem:[%s2151_s3 + $0x130] sm:$0xff] %v1748_v53 }
  0xd9   :  { %908 = vst [vmem:[%s2151_s3 + $0x38] sm:$0xff] %v1678_v30  ;;  %v970_v11 = vadd.f32 %v969_v27, %v1653_v23  ;;  %v1042_v17 = vmul.f32 %v1678_v30, %v1678_v30 }
  0xda   :  { %924 = vst [vmem:[%s2151_s3 + $0xb8] sm:$0xff] %v1681_v31 }
  0xdb   :  { %954 = vst [vmem:[%s2151_s3 + $0x1a8] sm:$0xff] %v1823_v26  ;;  %v971_v48 = vadd.f32 %v970_v11, %v1678_v30  ;;  %v1105_v23 = vadd.f32 %v1104_v47, %v1042_v17 }
  0xdc   :  { %955 = vst [vmem:[%s2151_s3 + $0x1b0] sm:$0xff] %v1878_v28 }
  0xdd   :  { %v575_v56 = vpop.f32.mrf.mxu2  ;;  %v615_v2 = vpop.f32.mrf.mxu3 }
  0xde   :  { %v498_v32 = vpop.f32.mrf.mxu0  ;;  %v538_v33 = vpop.f32.mrf.mxu1  ;;  %v1768_v60 = vadd.f32 %v1548_v36, %v575_v56 }
  0xdf   :  { %v1698_v39 = vadd.f32 %v1548_v36, %v498_v32  ;;  %v1701_v41 = vadd.f32 %v1548_v36, %v538_v33 }
  0xe0   :  { %940 = vst [vmem:[%s2151_s3 + $0x138] sm:$0xff] %v1768_v60 }
  0xe1   :  { %909 = vst [vmem:[%s2151_s3 + $0x40] sm:$0xff] %v1698_v39  ;;  %v1043_v13 = vmul.f32 %v1698_v39, %v1698_v39 }
  0xe2   :  { %925 = vst [vmem:[%s2151_s3 + $0xc0] sm:$0xff] %v1701_v41 }
  0xe3   :  { %v1106_v56 = vadd.f32 %v1105_v23, %v1043_v13 }
  0xe5   :  { %v578_v1 = vpop.f32.mrf.mxu2  ;;  %v618_v13 = vpop.f32.mrf.mxu3 }
  0xe6   :  { %v500_v44 = vpop.f32.mrf.mxu0  ;;  %v540_v45 = vpop.f32.mrf.mxu1  ;;  %v1805_v16 = vadd.f32 %v1548_v36, %v578_v1 }
  0xe7   :  { %v1734_v49 = vadd.f32 %v1548_v36, %v500_v44  ;;  %v1737_v50 = vadd.f32 %v1548_v36, %v540_v45 }
  0xe8   :  { %941 = vst [vmem:[%s2151_s3 + $0x140] sm:$0xff] %v1805_v16 }
  0xe9   :  { %910 = vst [vmem:[%s2151_s3 + $0x48] sm:$0xff] %v1734_v49 }
  0xea   :  { %926 = vst [vmem:[%s2151_s3 + $0xc8] sm:$0xff] %v1737_v50 }
  0xed   :  { %v580_v9 = vpop.f32.mrf.mxu2 }
  0xee   :  { %v503_v51 = vpop.f32.mrf.mxu0  ;;  %v543_v52 = vpop.f32.mrf.mxu1  ;;  %v1814_v20 = vadd.f32 %v1548_v36, %v580_v9 }
  0xef   :  { %v1754_v58 = vadd.f32 %v1548_v36, %v503_v51  ;;  %v1757_v59 = vadd.f32 %v1548_v36, %v543_v52  ;;  %v972_v51 = vadd.f32 %v971_v48, %v1698_v39  ;;  %v1044_v52 = vmul.f32 %v1734_v49, %v1734_v49 }
  0xf0   :  { %942 = vst [vmem:[%s2151_s3 + $0x148] sm:$0xff] %v1814_v20 }
  0xf1   :  { %911 = vst [vmem:[%s2151_s3 + $0x50] sm:$0xff] %v1754_v58  ;;  %v973_v30 = vadd.f32 %v972_v51, %v1734_v49  ;;  %v1045_v57 = vmul.f32 %v1754_v58, %v1754_v58 }
  0xf2   :  { %927 = vst [vmem:[%s2151_s3 + $0xd0] sm:$0xff] %v1757_v59 }
  0xf5   :  { %v583_v33 = vpop.f32.mrf.mxu2 }
  0xf6   :  { %v505_v62 = vpop.f32.mrf.mxu0  ;;  %v545_v0 = vpop.f32.mrf.mxu1  ;;  %v1875_v22 = vadd.f32 %v1548_v36, %v583_v33  ;;  %v1891_v33 = vadd.f32 %v1548_v36, %v615_v2  ;;  %v1052_v2 = vmul.f32 %v1569_v46, %v1569_v46 }
  0xf7   :  { %v848_v3 = vadd.f32 %v1548_v36, %v505_v62  ;;  %v1791_v4 = vadd.f32 %v1548_v36, %v545_v0 }
  0xf8   :  { %943 = vst [vmem:[%s2151_s3 + $0x150] sm:$0xff] %v1875_v22 }
  0xf9   :  { %912 = vst [vmem:[%s2151_s3 + $0x58] sm:$0xff] %v848_v3  ;;  %v1046_v39 = vmul.f32 %v848_v3, %v848_v3 }
  0xfa   :  { %928 = vst [vmem:[%s2151_s3 + $0xd8] sm:$0xff] %v1791_v4 }
  0xfb   :  { %956 = vst [vmem:[%s2151_s3 + $0x1b8] sm:$0xff] %v1891_v33 }
  0xfd   :  { %v585_v1 = vpop.f32.mrf.mxu2 }
  0xfe   :  { %v508_v6 = vpop.f32.mrf.mxu0  ;;  %v548_v7 = vpop.f32.mrf.mxu1 }
  0xff   :  { %v849_v14 = vadd.f32 %v1548_v36, %v508_v6  ;;  %v1802_v15 = vadd.f32 %v1548_v36, %v548_v7  ;;  %v1107_v6 = vadd.f32 %v1106_v56, %v1044_v52  ;;  %v974_v7 = vadd.f32 %v973_v30, %v1754_v58 }
 0x100   :  { %v1884_v58 = vadd.f32 %v1548_v36, %v585_v1 }
 0x101   :  { %913 = vst [vmem:[%s2151_s3 + $0x60] sm:$0xff] %v849_v14  ;;  %v1108_v49 = vadd.f32 %v1107_v6, %v1045_v57  ;;  %v1047_v27 = vmul.f32 %v849_v14, %v849_v14 }
 0x102   :  { %929 = vst [vmem:[%s2151_s3 + $0xe0] sm:$0xff] %v1802_v15 }
 0x103   :  { %944 = vst [vmem:[%s2151_s3 + $0x158] sm:$0xff] %v1884_v58 }
 0x106   :  { %v510_v29 = vpop.f32.mrf.mxu0  ;;  %v550_v32 = vpop.f32.mrf.mxu1 }
 0x107   :  { %v850_v44 = vadd.f32 %v1548_v36, %v510_v29  ;;  %v1851_v45 = vadd.f32 %v1548_v36, %v550_v32  ;;  %v975_v29 = vadd.f32 %v974_v7, %v848_v3  ;;  %v1109_v32 = vadd.f32 %v1108_v49, %v1046_v39 }
 0x108   :  { %v1053_v49 = vmul.f32 %v1580_v54, %v1580_v54 }
 0x109   :  { %914 = vst [vmem:[%s2151_s3 + $0x68] sm:$0xff] %v850_v44  ;;  %v976_v38 = vadd.f32 %v975_v29, %v849_v14  ;;  %v1048_v37 = vmul.f32 %v850_v44, %v850_v44  ;;  %v1110_v3 = vadd.f32 %v1109_v32, %v1047_v27  ;;  %v588_v14 = vpop.f32.mrf.mxu2 }
 0x10a   :  { %930 = vst [vmem:[%s2151_s3 + $0xe8] sm:$0xff] %v1851_v45  ;;  %v1930_v32 = vadd.f32 %v1548_v36, %v588_v14 }
 0x10b   :  { %v977_v47 = vadd.f32 %v976_v38, %v850_v44  ;;  %v1111_v23 = vadd.f32 %v1110_v3, %v1048_v37  ;;  %v1054_v37 = vmul.f32 %v1594_v63, %v1594_v63 }
 0x10c   :  { %945 = vst [vmem:[%s2151_s3 + $0x160] sm:$0xff] %v1930_v32 }
 0x10e   :  { %v513_v62 = vpop.f32.mrf.mxu0  ;;  %v553_v0 = vpop.f32.mrf.mxu1 }
 0x10f   :  { %v851_v9 = vadd.f32 %v1548_v36, %v513_v62  ;;  %v1872_v12 = vadd.f32 %v1548_v36, %v553_v0  ;;  %v1051_v62 = vmul.f32 %v1552_v40, %v1552_v40 }
 0x111   :  { %915 = vst [vmem:[%s2151_s3 + $0x70] sm:$0xff] %v851_v9  ;;  %v1049_v48 = vmul.f32 %v851_v9, %v851_v9  ;;  %v978_v51 = vadd.f32 %v977_v47, %v851_v9  ;;  %v590_v7 = vpop.f32.mrf.mxu2  ;;  %v620_v9 = vpop.f32.mrf.mxu3 }
 0x112   :  { %931 = vst [vmem:[%s2151_s3 + $0xf0] sm:$0xff] %v1872_v12  ;;  %v1936_v38 = vadd.f32 %v1548_v36, %v590_v7  ;;  %v1061_v7 = vmul.f32 %v1757_v59, %v1757_v59 }
 0x113   :  { %v1112_v44 = vadd.f32 %v1111_v23, %v1049_v48 }
 0x114   :  { %946 = vst [vmem:[%s2151_s3 + $0x168] sm:$0xff] %v1936_v38 }
 0x116   :  { %v515_v11 = vpop.f32.mrf.mxu0  ;;  %v555_v17 = vpop.f32.mrf.mxu1 }
 0x117   :  { %v852_v52 = vadd.f32 %v1548_v36, %v515_v11  ;;  %v1911_v56 = vadd.f32 %v1548_v36, %v555_v17 }
 0x119   :  { %916 = vst [vmem:[%s2151_s3 + $0x78] sm:$0xff] %v852_v52  ;;  %v979_v30 = vadd.f32 %v978_v51, %v852_v52  ;;  %v1050_v57 = vmul.f32 %v852_v52, %v852_v52  ;;  %v623_v23 = vpop.f32.mrf.mxu3 }
 0x11a   :  { %932 = vst [vmem:[%s2151_s3 + $0xf8] sm:$0xff] %v1911_v56 }
 0x11b   :  { %v980_v0 = vadd.f32 %v979_v30, %v1552_v40  ;;  %v1113_v1 = vadd.f32 %v1112_v44, %v1050_v57  ;;  %v1933_v40 = vadd.f32 %v1548_v36, %v618_v13  ;;  %v593_v13 = vpop.f32.mrf.mxu2  ;;  %v1058_v44 = vmul.f32 %v1681_v31, %v1681_v31 }
 0x11d   :  { %v981_v6 = vadd.f32 %v980_v0, %v1569_v46  ;;  %v1114_v39 = vadd.f32 %v1113_v1, %v1051_v62  ;;  %v1939_v46 = vadd.f32 %v1548_v36, %v620_v9  ;;  %957 = vst [vmem:[%s2151_s3 + $0x1c0] sm:$0xff] %v1933_v40  ;;  %v1059_v62 = vmul.f32 %v1701_v41, %v1701_v41 }
 0x11e   :  { %v1060_v1 = vmul.f32 %v1737_v50, %v1737_v50 }
 0x11f   :  { %v982_v27 = vadd.f32 %v981_v6, %v1580_v54  ;;  %v1115_v29 = vadd.f32 %v1114_v39, %v1052_v2  ;;  %v1055_v54 = vmul.f32 %v1608_v8, %v1608_v8  ;;  %958 = vst [vmem:[%s2151_s3 + $0x1c8] sm:$0xff] %v1939_v46 }
 0x121   :  { %v983_v3 = vadd.f32 %v982_v27, %v1594_v63  ;;  %v1116_v11 = vadd.f32 %v1115_v29, %v1053_v49  ;;  %v1056_v63 = vmul.f32 %v1639_v18, %v1639_v18  ;;  %v1982_v49 = vadd.f32 %v1548_v36, %v593_v13 }
 0x122   :  { %v1062_v29 = vmul.f32 %v1791_v4, %v1791_v4 }
 0x123   :  { %v984_v17 = vadd.f32 %v983_v3, %v1608_v8  ;;  %v1117_v47 = vadd.f32 %v1116_v11, %v1054_v37  ;;  %v1057_v8 = vmul.f32 %v1656_v24, %v1656_v24  ;;  %v595_v39 = vpop.f32.mrf.mxu2  ;;  %947 = vst [vmem:[%s2151_s3 + $0x170] sm:$0xff] %v1982_v49  ;;  %v1063_v11 = vmul.f32 %v1802_v15, %v1802_v15 }
 0x124   :  { %v1988_v27 = vadd.f32 %v1548_v36, %v595_v39 }
 0x125   :  { %v985_v48 = vadd.f32 %v984_v17, %v1639_v18  ;;  %v1118_v14 = vadd.f32 %v1117_v47, %v1055_v54  ;;  %v1064_v47 = vmul.f32 %v1851_v45, %v1851_v45 }
 0x126   :  { %948 = vst [vmem:[%s2151_s3 + $0x178] sm:$0xff] %v1988_v27 }
 0x127   :  { %v1119_v51 = vadd.f32 %v1118_v14, %v1056_v63  ;;  %v986_v52 = vadd.f32 %v985_v48, %v1656_v24  ;;  %v625_v24 = vpop.f32.mrf.mxu3  ;;  %v1065_v14 = vmul.f32 %v1872_v12, %v1872_v12 }
 0x129   :  { %v987_v30 = vadd.f32 %v986_v52, %v1681_v31  ;;  %v1120_v57 = vadd.f32 %v1119_v51, %v1057_v8  ;;  %v1066_v8 = vmul.f32 %v1911_v56, %v1911_v56  ;;  %v1067_v51 = vmul.f32 %v1604_v5, %v1604_v5 }
 0x12b   :  { %v988_v18 = vadd.f32 %v987_v30, %v1701_v41  ;;  %v1121_v0 = vadd.f32 %v1120_v57, %v1058_v44  ;;  %v1985_v41 = vadd.f32 %v1548_v36, %v623_v23 }
 0x12d   :  { %v989_v2 = vadd.f32 %v988_v18, %v1737_v50  ;;  %v1122_v6 = vadd.f32 %v1121_v0, %v1059_v62  ;;  %v1991_v50 = vadd.f32 %v1548_v36, %v625_v24  ;;  %959 = vst [vmem:[%s2151_s3 + $0x1d0] sm:$0xff] %v1985_v41 }
 0x12f   :  { %v990_v31 = vadd.f32 %v989_v2, %v1757_v59  ;;  %v1123_v9 = vadd.f32 %v1122_v6, %v1060_v1  ;;  %960 = vst [vmem:[%s2151_s3 + $0x1d8] sm:$0xff] %v1991_v50  ;;  %v628_v63 = vpop.f32.mrf.mxu3 }
 0x131   :  { %v991_v37 = vadd.f32 %v990_v31, %v1791_v4  ;;  %v1124_v3 = vadd.f32 %v1123_v9, %v1061_v7  ;;  %v1073_v9 = vmul.f32 %v1748_v53, %v1748_v53 }
 0x133   :  { %v992_v59 = vadd.f32 %v991_v37, %v1802_v15  ;;  %v1125_v54 = vadd.f32 %v1124_v3, %v1062_v29  ;;  %v1074_v3 = vmul.f32 %v1768_v60, %v1768_v60 }
 0x135   :  { %v1126_v4 = vadd.f32 %v1125_v54, %v1063_v11  ;;  %v993_v17 = vadd.f32 %v992_v59, %v1851_v45  ;;  %v1068_v45 = vmul.f32 %v1618_v10, %v1618_v10  ;;  %v1075_v11 = vmul.f32 %v1805_v16, %v1805_v16 }
 0x137   :  { %v1127_v48 = vadd.f32 %v1126_v4, %v1064_v47  ;;  %v994_v15 = vadd.f32 %v993_v17, %v1872_v12  ;;  %v630_v62 = vpop.f32.mrf.mxu3  ;;  %v1069_v12 = vmul.f32 %v1650_v21, %v1650_v21 }
 0x138   :  { %v2037_v1 = vadd.f32 %v1548_v36, %v630_v62  ;;  %v1082_v62 = vmul.f32 %v1988_v27, %v1988_v27 }
 0x139   :  { %v1128_v13 = vadd.f32 %v1127_v48, %v1065_v14  ;;  %v995_v23 = vadd.f32 %v994_v15, %v1911_v56  ;;  %v2034_v56 = vadd.f32 %v1548_v36, %v628_v63  ;;  %v1077_v63 = vmul.f32 %v1875_v22, %v1875_v22 }
 0x13a   :  { %962 = vst [vmem:[%s2151_s3 + $0x1e8] sm:$0xff] %v2037_v1 }
 0x13b   :  { %v996_v52 = vadd.f32 %v995_v23, %v1604_v5  ;;  %v1129_v44 = vadd.f32 %v1128_v13, %v1066_v8  ;;  %v1070_v5 = vmul.f32 %v1663_v25, %v1663_v25  ;;  %961 = vst [vmem:[%s2151_s3 + $0x1e0] sm:$0xff] %v2034_v56  ;;  %v1078_v13 = vmul.f32 %v1884_v58, %v1884_v58 }
 0x13d   :  { %v997_v30 = vadd.f32 %v996_v52, %v1618_v10  ;;  %v1130_v57 = vadd.f32 %v1129_v44, %v1067_v51 }
 0x13f   :  { %v998_v18 = vadd.f32 %v997_v30, %v1650_v21  ;;  %v1131_v0 = vadd.f32 %v1130_v57, %v1068_v45  ;;  %v1071_v21 = vmul.f32 %v1692_v34, %v1692_v34  ;;  %v633_v31 = vpop.f32.mrf.mxu3  ;;  %v1081_v45 = vmul.f32 %v1982_v49, %v1982_v49 }
 0x140   :  { %v899_v15 = vadd.f32 %v1548_v36, %v633_v31 }
 0x141   :  { %v999_v2 = vadd.f32 %v998_v18, %v1663_v25  ;;  %v1132_v10 = vadd.f32 %v1131_v0, %v1069_v12  ;;  %v1072_v25 = vmul.f32 %v1712_v42, %v1712_v42 }
 0x142   :  { %963 = vst [vmem:[%s2151_s3 + $0x1f0] sm:$0xff] %v899_v15 }
 0x143   :  { %v1000_v6 = vadd.f32 %v999_v2, %v1692_v34  ;;  %v1133_v39 = vadd.f32 %v1132_v10, %v1070_v5 }
 0x145   :  { %v1134_v24 = vadd.f32 %v1133_v39, %v1071_v21  ;;  %v1001_v7 = vadd.f32 %v1000_v6, %v1712_v42  ;;  %v1076_v42 = vmul.f32 %v1814_v20, %v1814_v20 }
 0x147   :  { %v1002_v29 = vadd.f32 %v1001_v7, %v1748_v53  ;;  %v1135_v37 = vadd.f32 %v1134_v24, %v1072_v25  ;;  %v635_v53 = vpop.f32.mrf.mxu3 }
 0x148   :  { %v2073_v14 = vadd.f32 %v1548_v36, %v635_v53  ;;  %v1079_v36 = vmul.f32 %v1930_v32, %v1930_v32  ;;  %v1095_v53 = vmul.f32 %v2034_v56, %v2034_v56 }
 0x149   :  { %v1003_v59 = vadd.f32 %v1002_v29, %v1768_v60  ;;  %v1136_v34 = vadd.f32 %v1135_v37, %v1073_v9 }
 0x14a   :  { %964 = vst [vmem:[%s2151_s3 + $0x1f8] sm:$0xff] %v2073_v14 }
 0x14b   :  { %v1004_v54 = vadd.f32 %v1003_v59, %v1805_v16  ;;  %v1137_v4 = vadd.f32 %v1136_v34, %v1074_v3 }
 0x14d   :  { %v1005_v17 = vadd.f32 %v1004_v54, %v1814_v20  ;;  %v1138_v47 = vadd.f32 %v1137_v4, %v1075_v11 }
 0x14f   :  { %v1006_v48 = vadd.f32 %v1005_v17, %v1875_v22  ;;  %v1139_v60 = vadd.f32 %v1138_v47, %v1076_v42  ;;  %v1094_v42 = vmul.f32 %v1991_v50, %v1991_v50 }
 0x151   :  { %v1007_v16 = vadd.f32 %v1006_v48, %v1884_v58  ;;  %v1140_v23 = vadd.f32 %v1139_v60, %v1077_v63  ;;  %v1080_v58 = vmul.f32 %v1936_v38, %v1936_v38  ;;  %v1096_v48 = vmul.f32 %v2037_v1, %v2037_v1 }
 0x153   :  { %v1141_v20 = vadd.f32 %v1140_v23, %v1078_v13  ;;  %v1008_v22 = vadd.f32 %v1007_v16, %v1930_v32  ;;  %v1083_v32 = vmul.f32 %v1695_v35, %v1695_v35  ;;  %v1097_v16 = vmul.f32 %v899_v15, %v899_v15 }
 0x155   :  { %v1142_v8 = vadd.f32 %v1141_v20, %v1079_v36  ;;  %v1009_v51 = vadd.f32 %v1008_v22, %v1936_v38  ;;  %v1084_v38 = vmul.f32 %v1715_v43, %v1715_v43 }
 0x157   :  { %v1143_v52 = vadd.f32 %v1142_v8, %v1080_v58  ;;  %v1010_v44 = vadd.f32 %v1009_v51, %v1982_v49  ;;  %v1085_v49 = vmul.f32 %v1751_v55, %v1751_v55 }
 0x159   :  { %v1144_v30 = vadd.f32 %v1143_v52, %v1081_v45  ;;  %v1011_v57 = vadd.f32 %v1010_v44, %v1988_v27  ;;  %v1086_v27 = vmul.f32 %v1771_v61, %v1771_v61 }
 0x15b   :  { %v1012_v12 = vadd.f32 %v1011_v57, %v1695_v35  ;;  %v1145_v18 = vadd.f32 %v1144_v30, %v1082_v62  ;;  %v1087_v35 = vmul.f32 %v1808_v19, %v1808_v19 }
 0x15d   :  { %v1013_v0 = vadd.f32 %v1012_v12, %v1715_v43  ;;  %v1146_v5 = vadd.f32 %v1145_v18, %v1083_v32  ;;  %v1088_v43 = vmul.f32 %v1823_v26, %v1823_v26 }
 0x15f   :  { %v1014_v2 = vadd.f32 %v1013_v0, %v1751_v55  ;;  %v1147_v10 = vadd.f32 %v1146_v5, %v1084_v38  ;;  %v1089_v55 = vmul.f32 %v1878_v28, %v1878_v28 }
 0x161   :  { %v1015_v21 = vadd.f32 %v1014_v2, %v1771_v61  ;;  %v1148_v6 = vadd.f32 %v1147_v10, %v1085_v49  ;;  %v1090_v61 = vmul.f32 %v1891_v33, %v1891_v33 }
 0x163   :  { %v1016_v39 = vadd.f32 %v1015_v21, %v1808_v19  ;;  %v1149_v25 = vadd.f32 %v1148_v6, %v1086_v27  ;;  %v1091_v19 = vmul.f32 %v1933_v40, %v1933_v40 }
 0x165   :  { %v1150_v24 = vadd.f32 %v1149_v25, %v1087_v35  ;;  %v1017_v7 = vadd.f32 %v1016_v39, %v1823_v26  ;;  %v1092_v26 = vmul.f32 %v1939_v46, %v1939_v46 }
 0x167   :  { %v1018_v31 = vadd.f32 %v1017_v7, %v1878_v28  ;;  %v1151_v9 = vadd.f32 %v1150_v24, %v1088_v43  ;;  %v1093_v28 = vmul.f32 %v1985_v41, %v1985_v41 }
 0x169   :  { %v1019_v29 = vadd.f32 %v1018_v31, %v1891_v33  ;;  %v1152_v37 = vadd.f32 %v1151_v9, %v1089_v55 }
 0x16b   :  { %v1020_v3 = vadd.f32 %v1019_v29, %v1933_v40  ;;  %v1153_v59 = vadd.f32 %v1152_v37, %v1090_v61 }
 0x16d   :  { %v1021_v34 = vadd.f32 %v1020_v3, %v1939_v46  ;;  %v1154_v11 = vadd.f32 %v1153_v59, %v1091_v19 }
 0x16f   :  { %v1022_v54 = vadd.f32 %v1021_v34, %v1985_v41  ;;  %v1155_v4 = vadd.f32 %v1154_v11, %v1092_v26 }
 0x171   :  { %v1023_v33 = vadd.f32 %v1022_v54, %v1991_v50  ;;  %v1156_v17 = vadd.f32 %v1155_v4, %v1093_v28  ;;  %v1098_v50 = vmul.f32 %v2073_v14, %v2073_v14 }
 0x173   :  { %v1157_v40 = vadd.f32 %v1156_v17, %v1094_v42  ;;  %v1024_v47 = vadd.f32 %v1023_v33, %v2034_v56 }
 0x175   :  { %v1158_v46 = vadd.f32 %v1157_v40, %v1095_v53  ;;  %v1025_v63 = vadd.f32 %v1024_v47, %v2037_v1 }
 0x177   :  { %v1159_v41 = vadd.f32 %v1158_v46, %v1096_v48  ;;  %v1026_v60 = vadd.f32 %v1025_v63, %v899_v15 }
 0x179   :  { %v1160_v13 = vadd.f32 %v1159_v41, %v1097_v16  ;;  %v1027_v23 = vadd.f32 %v1026_v60, %v2073_v14 }
 0x17b   :  { %v1028_v20 = vrot.slane %v1027_v23, 4  ;;  %v1161_v22 = vadd.f32 %v1160_v13, %v1098_v50 }
 0x17d   :  { %v1029_v36 = vadd.f32 %v1028_v20, %v1027_v23  ;;  %v1162_v8 = vrot.slane %v1161_v22, 4 }
 0x17f   :  { %v1030_v56 = vrot.slane %v1029_v36, 2  ;;  %v1163_v51 = vadd.f32 %v1162_v8, %v1161_v22 }
 0x181   :  { %v1031_v58 = vadd.f32 %v1030_v56, %v1029_v36  ;;  %v1164_v52 = vrot.slane %v1163_v51, 2 }
 0x183   :  { %v1032_v44 = vrot.slane %v1031_v58, 1  ;;  %v1165_v45 = vadd.f32 %v1164_v52, %v1163_v51 }
 0x185   :  { %v1033_v1 = vadd.f32 %v1032_v44, %v1031_v58  ;;  %v1166_v30 = vrot.slane %v1165_v45, 1 }
 0x187   :  { %1034 = vst [vmem:[%s2152_s4] sm:$0x1] %v1033_v1  ;;  %v1167_v15 = vadd.f32 %v1166_v30, %v1165_v45 }
 0x189   :  { %1168 = vst [vmem:[%s2153_s5] sm:$0x1] %v1167_v15 }

// kernel: discriminator_forward.10
= control target key start
LH: loop header
LB: loop body
LE: loop exit
PB: predicated region body
PF: predicated region fallthrough
CT: control target
= control target key end

     0   :  { %s1020_s0 = inlined_call_operand.vmem [shape: f32[512,128], index: 0, kind: input, shape index: {}]   ;;  %s1021_s1 = inlined_call_operand.vmem [shape: f32[1,128], index: 1, kind: input, shape index: {}]   ;;  %s1022_s2 = inlined_call_operand.vmem [shape: f32[1,128], index: 2, kind: input, shape index: {}]   ;;  %s1023_s3 = inlined_call_operand.vmem [shape: f32[512,128], index: 3, kind: output, shape index: {}]  }
   0x1   :  { %v14_v0 = vld [vmem:[%s1020_s0] sm:$0xff]  ;;  %v15_v3 = vld [vmem:[%s1020_s0 + $0x8] sm:$0xff]  ;;  %v16_v6 = vld [vmem:[%s1020_s0 + $0x10] sm:$0xff] }
   0x2   :  { %v502_v1 = vld [vmem:[%s1021_s1] ss:$0 sm:$0xff]  ;;  %v17_v7 = vld [vmem:[%s1020_s0 + $0x18] sm:$0xff]  ;;  %v19_v12 = vld [vmem:[%s1020_s0 + $0x28] sm:$0xff] }
   0x3   :  { %v507_v2 = vld [vmem:[%s1022_s2] ss:$0 sm:$0xff]  ;;  %v82_v4 = vmul.f32 %v502_v1, %v14_v0  ;;  %v83_v5 = vmul.f32 %v502_v1, %v15_v3  ;;  %v84_v9 = vmul.f32 %v502_v1, %v16_v6  ;;  %v85_v10 = vmul.f32 %v502_v1, %v17_v7  ;;  %v20_v13 = vld [vmem:[%s1020_s0 + $0x30] sm:$0xff]  ;;  %v21_v14 = vld [vmem:[%s1020_s0 + $0x38] sm:$0xff] }
   0x4   :  { %v18_v8 = vld [vmem:[%s1020_s0 + $0x20] sm:$0xff]  ;;  %v87_v17 = vmul.f32 %v502_v1, %v19_v12  ;;  %v88_v18 = vmul.f32 %v502_v1, %v20_v13  ;;  %v89_v22 = vmul.f32 %v502_v1, %v21_v14  ;;  %v23_v24 = vld [vmem:[%s1020_s0 + $0x48] sm:$0xff]  ;;  %v24_v32 = vld [vmem:[%s1020_s0 + $0x50] sm:$0xff] }
   0x5   :  { %v86_v11 = vmul.f32 %v502_v1, %v18_v8  ;;  %v150_v15 = vadd.f32 %v507_v2, %v82_v4  ;;  %v151_v16 = vadd.f32 %v507_v2, %v83_v5  ;;  %v152_v19 = vadd.f32 %v507_v2, %v84_v9  ;;  %v22_v23 = vld [vmem:[%s1020_s0 + $0x40] sm:$0xff]  ;;  %v25_v41 = vld [vmem:[%s1020_s0 + $0x58] sm:$0xff]  ;;  %v27_v52 = vld [vmem:[%s1020_s0 + $0x68] sm:$0xff] }
   0x6   :  { %v153_v20 = vadd.f32 %v507_v2, %v85_v10  ;;  %v155_v35 = vadd.f32 %v507_v2, %v87_v17  ;;  %v156_v36 = vadd.f32 %v507_v2, %v88_v18  ;;  %v157_v38 = vadd.f32 %v507_v2, %v89_v22  ;;  %v26_v51 = vld [vmem:[%s1020_s0 + $0x60] sm:$0xff]  ;;  %v28_v56 = vld [vmem:[%s1020_s0 + $0x70] sm:$0xff]  ;;  %v29_v59 = vld [vmem:[%s1020_s0 + $0x78] sm:$0xff] }
   0x7   :  { %v154_v21 = vadd.f32 %v507_v2, %v86_v11  ;;  %vm214_vm0 = vcmp.ge.f32.partialorder %v150_v15, 0.0  ;;  %v278_v25 = vmul.f32 0.2, %v150_v15  ;;  %vm215_vm1 = vcmp.ge.f32.partialorder %v151_v16, 0.0  ;;  %v30_v0 = vld [vmem:[%s1020_s0 + $0x80] sm:$0xff]  ;;  %v31_v3 = vld [vmem:[%s1020_s0 + $0x88] sm:$0xff] }
   0x8   :  { %v279_v26 = vmul.f32 0.2, %v151_v16  ;;  %vm216_vm2 = vcmp.ge.f32.partialorder %v152_v19, 0.0  ;;  %v280_v27 = vmul.f32 0.2, %v152_v19  ;;  %vm217_vm3 = vcmp.ge.f32.partialorder %v153_v20, 0.0 }
   0x9   :  { %v281_v28 = vmul.f32 0.2, %v153_v20  ;;  %v342_v29 = vsel %vm214_vm0, %v150_v15, %v278_v25  ;;  %vm218_vm4 = vcmp.ge.f32.partialorder %v154_v21, 0.0  ;;  %v282_v31 = vmul.f32 0.2, %v154_v21  ;;  %v34_v25 = vld [vmem:[%s1020_s0 + $0xa0] sm:$0xff] }
   0xa   :  { %v343_v30 = vsel %vm215_vm1, %v151_v16, %v279_v26  ;;  %406 = vst [vmem:[%s1023_s3] sm:$0xff] %v342_v29  ;;  %v344_v33 = vsel %vm216_vm2, %v152_v19, %v280_v27  ;;  %v90_v39 = vmul.f32 %v502_v1, %v22_v23  ;;  %v91_v40 = vmul.f32 %v502_v1, %v23_v24  ;;  %v33_v24 = vld [vmem:[%s1020_s0 + $0x98] sm:$0xff]  ;;  %v35_v26 = vld [vmem:[%s1020_s0 + $0xa8] sm:$0xff] }
   0xb   :  { %v345_v34 = vsel %vm217_vm3, %v153_v20, %v281_v28  ;;  %407 = vst [vmem:[%s1023_s3 + $0x8] sm:$0xff] %v343_v30  ;;  %v346_v37 = vsel %vm218_vm4, %v154_v21, %v282_v31  ;;  %vm219_vm5 = vcmp.ge.f32.partialorder %v155_v35, 0.0  ;;  %v283_v42 = vmul.f32 0.2, %v155_v35  ;;  %v32_v20 = vld [vmem:[%s1020_s0 + $0x90] sm:$0xff]  ;;  %v37_v31 = vld [vmem:[%s1020_s0 + $0xb8] sm:$0xff] }
   0xc   :  { %408 = vst [vmem:[%s1023_s3 + $0x10] sm:$0xff] %v344_v33  ;;  %vm220_vm6 = vcmp.ge.f32.partialorder %v156_v36, 0.0  ;;  %v92_v43 = vmul.f32 %v502_v1, %v24_v32  ;;  %v284_v44 = vmul.f32 0.2, %v156_v36  ;;  %vm221_vm7 = vcmp.ge.f32.partialorder %v157_v38, 0.0  ;;  %v36_v30 = vld [vmem:[%s1020_s0 + $0xb0] sm:$0xff] }
   0xd   :  { %409 = vst [vmem:[%s1023_s3 + $0x18] sm:$0xff] %v345_v34  ;;  %v285_v45 = vmul.f32 0.2, %v157_v38  ;;  %v158_v46 = vadd.f32 %v507_v2, %v90_v39  ;;  %v347_v47 = vsel %vm219_vm5, %v155_v35, %v283_v42  ;;  %v159_v48 = vadd.f32 %v507_v2, %v91_v40  ;;  %v38_v35 = vld [vmem:[%s1020_s0 + $0xc0] sm:$0xff] }
   0xe   :  { %410 = vst [vmem:[%s1023_s3 + $0x20] sm:$0xff] %v346_v37  ;;  %v160_v49 = vadd.f32 %v507_v2, %v92_v43  ;;  %v93_v50 = vmul.f32 %v502_v1, %v25_v41  ;;  %v348_v53 = vsel %vm220_vm6, %v156_v36, %v284_v44  ;;  %v94_v62 = vmul.f32 %v502_v1, %v26_v51  ;;  %v39_v51 = vld [vmem:[%s1020_s0 + $0xc8] sm:$0xff] }
   0xf   :  { %411 = vst [vmem:[%s1023_s3 + $0x28] sm:$0xff] %v347_v47  ;;  %v349_v54 = vsel %vm221_vm7, %v157_v38, %v285_v45  ;;  %vm222_vm8 = vcmp.ge.f32.partialorder %v158_v46, 0.0  ;;  %v286_v55 = vmul.f32 0.2, %v158_v46  ;;  %vm223_vm9 = vcmp.ge.f32.partialorder %v159_v48, 0.0 }
  0x10   :  { %412 = vst [vmem:[%s1023_s3 + $0x30] sm:$0xff] %v348_v53  ;;  %v287_v57 = vmul.f32 0.2, %v159_v48  ;;  %vm224_vm10 = vcmp.ge.f32.partialorder %v160_v49, 0.0  ;;  %v161_v58 = vadd.f32 %v507_v2, %v93_v50  ;;  %v288_v61 = vmul.f32 0.2, %v160_v49 }
  0x11   :  { %413 = vst [vmem:[%s1023_s3 + $0x38] sm:$0xff] %v349_v54  ;;  %v350_v60 = vsel %vm222_vm8, %v158_v46, %v286_v55  ;;  %v95_v63 = vmul.f32 %v502_v1, %v27_v52  ;;  %v96_v6 = vmul.f32 %v502_v1, %v28_v56  ;;  %v162_v8 = vadd.f32 %v507_v2, %v94_v62  ;;  %v40_v52 = vld [vmem:[%s1020_s0 + $0xd0] sm:$0xff] }
  0x12   :  { %414 = vst [vmem:[%s1023_s3 + $0x40] sm:$0xff] %v350_v60  ;;  %v351_v4 = vsel %vm223_vm9, %v159_v48, %v287_v57  ;;  %vm225_vm11 = vcmp.ge.f32.partialorder %v161_v58, 0.0  ;;  %v289_v5 = vmul.f32 0.2, %v161_v58  ;;  %v352_v7 = vsel %vm224_vm10, %v160_v49, %v288_v61  ;;  %v41_v57 = vld [vmem:[%s1020_s0 + $0xd8] sm:$0xff] }
  0x13   :  { %415 = vst [vmem:[%s1023_s3 + $0x48] sm:$0xff] %v351_v4  ;;  %v163_v9 = vadd.f32 %v507_v2, %v95_v63  ;;  %v97_v10 = vmul.f32 %v502_v1, %v29_v59  ;;  %v164_v12 = vadd.f32 %v507_v2, %v96_v6  ;;  %v98_v13 = vmul.f32 %v502_v1, %v30_v0  ;;  %v43_v4 = vld [vmem:[%s1020_s0 + $0xe8] sm:$0xff] }
  0x14   :  { %416 = vst [vmem:[%s1023_s3 + $0x50] sm:$0xff] %v352_v7  ;;  %v353_v11 = vsel %vm225_vm11, %v161_v58, %v289_v5  ;;  %v99_v14 = vmul.f32 %v502_v1, %v31_v3  ;;  %vm226_vm12 = vcmp.ge.f32.partialorder %v162_v8, 0.0  ;;  %v290_v15 = vmul.f32 0.2, %v162_v8  ;;  %v42_v58 = vld [vmem:[%s1020_s0 + $0xe0] sm:$0xff] }
  0x15   :  { %417 = vst [vmem:[%s1023_s3 + $0x58] sm:$0xff] %v353_v11  ;;  %vm227_vm13 = vcmp.ge.f32.partialorder %v163_v9, 0.0  ;;  %v165_v16 = vadd.f32 %v507_v2, %v97_v10  ;;  %v291_v17 = vmul.f32 0.2, %v163_v9  ;;  %vm228_vm14 = vcmp.ge.f32.partialorder %v164_v12, 0.0 }
  0x16   :  { %v292_v18 = vmul.f32 0.2, %v164_v12  ;;  %v166_v19 = vadd.f32 %v507_v2, %v98_v13  ;;  %v354_v21 = vsel %vm226_vm12, %v162_v8, %v290_v15  ;;  %v167_v23 = vadd.f32 %v507_v2, %v99_v14 }
  0x17   :  { %vm229_vm15 = vcmp.ge.f32.partialorder %v165_v16, 0.0  ;;  %v293_v22 = vmul.f32 0.2, %v165_v16  ;;  %418 = vst [vmem:[%s1023_s3 + $0x60] sm:$0xff] %v354_v21  ;;  %v355_v27 = vsel %vm227_vm13, %v163_v9, %v291_v17  ;;  %v100_v34 = vmul.f32 %v502_v1, %v32_v20  ;;  %v44_v9 = vld [vmem:[%s1020_s0 + $0xf0] sm:$0xff]  ;;  %v45_v20 = vld [vmem:[%s1020_s0 + $0xf8] sm:$0xff] }
  0x18   :  { %v356_v28 = vsel %vm228_vm14, %v164_v12, %v292_v18  ;;  %vm230_vm0 = vcmp.ge.f32.partialorder %v166_v19, 0.0  ;;  %v294_v29 = vmul.f32 0.2, %v166_v19  ;;  %419 = vst [vmem:[%s1023_s3 + $0x68] sm:$0xff] %v355_v27  ;;  %vm231_vm1 = vcmp.ge.f32.partialorder %v167_v23, 0.0  ;;  %v46_v21 = vld [vmem:[%s1020_s0 + $0x100] sm:$0xff] }
  0x19   :  { %v357_v32 = vsel %vm229_vm15, %v165_v16, %v293_v22  ;;  %v295_v33 = vmul.f32 0.2, %v167_v23  ;;  %420 = vst [vmem:[%s1023_s3 + $0x70] sm:$0xff] %v356_v28  ;;  %v101_v37 = vmul.f32 %v502_v1, %v33_v24  ;;  %v102_v38 = vmul.f32 %v502_v1, %v34_v25 }
  0x1a   :  { %v358_v36 = vsel %vm230_vm0, %v166_v19, %v294_v29  ;;  %v103_v39 = vmul.f32 %v502_v1, %v35_v26  ;;  %421 = vst [vmem:[%s1023_s3 + $0x78] sm:$0xff] %v357_v32  ;;  %v168_v41 = vadd.f32 %v507_v2, %v100_v34  ;;  %v104_v42 = vmul.f32 %v502_v1, %v36_v30  ;;  %v48_v32 = vld [vmem:[%s1020_s0 + $0x110] sm:$0xff] }
  0x1b   :  { %v359_v40 = vsel %vm231_vm1, %v167_v23, %v295_v33  ;;  %v105_v43 = vmul.f32 %v502_v1, %v37_v31  ;;  %422 = vst [vmem:[%s1023_s3 + $0x80] sm:$0xff] %v358_v36  ;;  %v169_v44 = vadd.f32 %v507_v2, %v101_v37  ;;  %v170_v45 = vadd.f32 %v507_v2, %v102_v38  ;;  %v47_v31 = vld [vmem:[%s1020_s0 + $0x108] sm:$0xff]  ;;  %v49_v33 = vld [vmem:[%s1020_s0 + $0x118] sm:$0xff] }
  0x1c   :  { %v171_v46 = vadd.f32 %v507_v2, %v103_v39  ;;  %v106_v47 = vmul.f32 %v502_v1, %v38_v35  ;;  %423 = vst [vmem:[%s1023_s3 + $0x88] sm:$0xff] %v359_v40  ;;  %vm232_vm2 = vcmp.ge.f32.partialorder %v168_v41, 0.0  ;;  %v296_v48 = vmul.f32 0.2, %v168_v41 }
  0x1d   :  { %v172_v49 = vadd.f32 %v507_v2, %v104_v42  ;;  %v173_v50 = vadd.f32 %v507_v2, %v105_v43  ;;  %vm233_vm3 = vcmp.ge.f32.partialorder %v169_v44, 0.0  ;;  %v297_v53 = vmul.f32 0.2, %v169_v44 }
  0x1e   :  { %vm234_vm4 = vcmp.ge.f32.partialorder %v170_v45, 0.0  ;;  %v298_v54 = vmul.f32 0.2, %v170_v45  ;;  %v360_v55 = vsel %vm232_vm2, %v168_v41, %v296_v48  ;;  %vm235_vm5 = vcmp.ge.f32.partialorder %v171_v46, 0.0 }
  0x1f   :  { %v299_v56 = vmul.f32 0.2, %v171_v46  ;;  %vm236_vm6 = vcmp.ge.f32.partialorder %v172_v49, 0.0  ;;  %424 = vst [vmem:[%s1023_s3 + $0x90] sm:$0xff] %v360_v55  ;;  %v361_v59 = vsel %vm233_vm3, %v169_v44, %v297_v53  ;;  %v300_v61 = vmul.f32 0.2, %v172_v49 }
  0x20   :  { %v362_v60 = vsel %vm234_vm4, %v170_v45, %v298_v54  ;;  %vm237_vm7 = vcmp.ge.f32.partialorder %v173_v50, 0.0  ;;  %425 = vst [vmem:[%s1023_s3 + $0x98] sm:$0xff] %v361_v59  ;;  %v301_v63 = vmul.f32 0.2, %v173_v50  ;;  %v174_v0 = vadd.f32 %v507_v2, %v106_v47  ;;  %v50_v44 = vld [vmem:[%s1020_s0 + $0x120] sm:$0xff]  ;;  %v51_v45 = vld [vmem:[%s1020_s0 + $0x128] sm:$0xff] }
  0x21   :  { %v363_v62 = vsel %vm235_vm5, %v171_v46, %v299_v56  ;;  %v107_v3 = vmul.f32 %v502_v1, %v39_v51  ;;  %426 = vst [vmem:[%s1023_s3 + $0xa0] sm:$0xff] %v362_v60  ;;  %v364_v5 = vsel %vm236_vm6, %v172_v49, %v300_v61  ;;  %v108_v6 = vmul.f32 %v502_v1, %v40_v52  ;;  %v52_v46 = vld [vmem:[%s1020_s0 + $0x130] sm:$0xff] }
  0x22   :  { %v109_v7 = vmul.f32 %v502_v1, %v41_v57  ;;  %v110_v8 = vmul.f32 %v502_v1, %v42_v58  ;;  %427 = vst [vmem:[%s1023_s3 + $0xa8] sm:$0xff] %v363_v62  ;;  %v365_v10 = vsel %vm237_vm7, %v173_v50, %v301_v63  ;;  %vm238_vm8 = vcmp.ge.f32.partialorder %v174_v0, 0.0  ;;  %v53_v57 = vld [vmem:[%s1020_s0 + $0x138] sm:$0xff] }
  0x23   :  { %v302_v11 = vmul.f32 0.2, %v174_v0  ;;  %v175_v12 = vadd.f32 %v507_v2, %v107_v3  ;;  %428 = vst [vmem:[%s1023_s3 + $0xb0] sm:$0xff] %v364_v5  ;;  %v176_v13 = vadd.f32 %v507_v2, %v108_v6  ;;  %v111_v16 = vmul.f32 %v502_v1, %v43_v4  ;;  %v54_v5 = vld [vmem:[%s1020_s0 + $0x140] sm:$0xff]  ;;  %v55_v6 = vld [vmem:[%s1020_s0 + $0x148] sm:$0xff] }
  0x24   :  { %v177_v14 = vadd.f32 %v507_v2, %v109_v7  ;;  %v178_v15 = vadd.f32 %v507_v2, %v110_v8  ;;  %429 = vst [vmem:[%s1023_s3 + $0xb8] sm:$0xff] %v365_v10  ;;  %v112_v19 = vmul.f32 %v502_v1, %v44_v9  ;;  %v113_v29 = vmul.f32 %v502_v1, %v45_v20  ;;  %v56_v10 = vld [vmem:[%s1020_s0 + $0x150] sm:$0xff] }
  0x25   :  { %v366_v17 = vsel %vm238_vm8, %v174_v0, %v302_v11  ;;  %vm239_vm9 = vcmp.ge.f32.partialorder %v175_v12, 0.0  ;;  %v303_v18 = vmul.f32 0.2, %v175_v12  ;;  %vm240_vm10 = vcmp.ge.f32.partialorder %v176_v13, 0.0 }
  0x26   :  { %430 = vst [vmem:[%s1023_s3 + $0xc0] sm:$0xff] %v366_v17  ;;  %v304_v22 = vmul.f32 0.2, %v176_v13  ;;  %vm241_vm11 = vcmp.ge.f32.partialorder %v177_v14, 0.0  ;;  %vm242_vm12 = vcmp.ge.f32.partialorder %v178_v15, 0.0  ;;  %v179_v26 = vadd.f32 %v507_v2, %v111_v16 }
  0x27   :  { %v367_v23 = vsel %vm239_vm9, %v175_v12, %v303_v18  ;;  %v305_v24 = vmul.f32 0.2, %v177_v14  ;;  %v306_v25 = vmul.f32 0.2, %v178_v15  ;;  %v180_v28 = vadd.f32 %v507_v2, %v112_v19  ;;  %v58_v18 = vld [vmem:[%s1020_s0 + $0x160] sm:$0xff]  ;;  %v59_v19 = vld [vmem:[%s1020_s0 + $0x168] sm:$0xff] }
  0x28   :  { %431 = vst [vmem:[%s1023_s3 + $0xc8] sm:$0xff] %v367_v23  ;;  %v368_v27 = vsel %vm240_vm10, %v176_v13, %v304_v22  ;;  %v114_v30 = vmul.f32 %v502_v1, %v46_v21  ;;  %vm243_vm13 = vcmp.ge.f32.partialorder %v179_v26, 0.0  ;;  %v307_v36 = vmul.f32 0.2, %v179_v26  ;;  %v57_v13 = vld [vmem:[%s1020_s0 + $0x158] sm:$0xff] }
  0x29   :  { %432 = vst [vmem:[%s1023_s3 + $0xd0] sm:$0xff] %v368_v27  ;;  %v369_v34 = vsel %vm241_vm11, %v177_v14, %v305_v24  ;;  %v370_v35 = vsel %vm242_vm12, %v178_v15, %v306_v25  ;;  %vm244_vm14 = vcmp.ge.f32.partialorder %v180_v28, 0.0  ;;  %v308_v37 = vmul.f32 0.2, %v180_v28 }
  0x2a   :  { %433 = vst [vmem:[%s1023_s3 + $0xd8] sm:$0xff] %v369_v34  ;;  %v181_v38 = vadd.f32 %v507_v2, %v113_v29  ;;  %v182_v39 = vadd.f32 %v507_v2, %v114_v30  ;;  %v371_v40 = vsel %vm243_vm13, %v179_v26, %v307_v36  ;;  %v115_v41 = vmul.f32 %v502_v1, %v47_v31  ;;  %v60_v36 = vld [vmem:[%s1020_s0 + $0x170] sm:$0xff] }
  0x2b   :  { %434 = vst [vmem:[%s1023_s3 + $0xe0] sm:$0xff] %v370_v35  ;;  %v116_v42 = vmul.f32 %v502_v1, %v48_v32  ;;  %v117_v43 = vmul.f32 %v502_v1, %v49_v33  ;;  %v372_v47 = vsel %vm244_vm14, %v180_v28, %v308_v37  ;;  %v118_v54 = vmul.f32 %v502_v1, %v50_v44 }
  0x2c   :  { %435 = vst [vmem:[%s1023_s3 + $0xe8] sm:$0xff] %v371_v40  ;;  %vm245_vm15 = vcmp.ge.f32.partialorder %v181_v38, 0.0  ;;  %v309_v48 = vmul.f32 0.2, %v181_v38  ;;  %vm246_vm0 = vcmp.ge.f32.partialorder %v182_v39, 0.0  ;;  %v183_v50 = vadd.f32 %v507_v2, %v115_v41  ;;  %v61_v40 = vld [vmem:[%s1020_s0 + $0x178] sm:$0xff] }
  0x2d   :  { %436 = vst [vmem:[%s1023_s3 + $0xf0] sm:$0xff] %v372_v47  ;;  %v310_v49 = vmul.f32 0.2, %v182_v39  ;;  %v184_v51 = vadd.f32 %v507_v2, %v116_v42  ;;  %v185_v52 = vadd.f32 %v507_v2, %v117_v43  ;;  %v119_v55 = vmul.f32 %v502_v1, %v51_v45  ;;  %v62_v41 = vld [vmem:[%s1020_s0 + $0x180] sm:$0xff]  ;;  %v63_v42 = vld [vmem:[%s1020_s0 + $0x188] sm:$0xff]  ;;  %v65_v47 = vld [vmem:[%s1020_s0 + $0x198] sm:$0xff] }
  0x2e   :  { %v373_v53 = vsel %vm245_vm15, %v181_v38, %v309_v48  ;;  %v120_v56 = vmul.f32 %v502_v1, %v52_v46  ;;  %vm247_vm1 = vcmp.ge.f32.partialorder %v183_v50, 0.0  ;;  %v311_v59 = vmul.f32 0.2, %v183_v50  ;;  %v64_v46 = vld [vmem:[%s1020_s0 + $0x190] sm:$0xff] }
  0x2f   :  { %437 = vst [vmem:[%s1023_s3 + $0xf8] sm:$0xff] %v373_v53  ;;  %v374_v58 = vsel %vm246_vm0, %v182_v39, %v310_v49  ;;  %vm248_vm2 = vcmp.ge.f32.partialorder %v184_v51, 0.0  ;;  %v312_v60 = vmul.f32 0.2, %v184_v51  ;;  %vm249_vm3 = vcmp.ge.f32.partialorder %v185_v52, 0.0 }
  0x30   :  { %438 = vst [vmem:[%s1023_s3 + $0x100] sm:$0xff] %v374_v58  ;;  %v313_v61 = vmul.f32 0.2, %v185_v52  ;;  %v186_v62 = vadd.f32 %v507_v2, %v118_v54  ;;  %v375_v63 = vsel %vm247_vm1, %v183_v50, %v311_v59  ;;  %v187_v0 = vadd.f32 %v507_v2, %v119_v55 }
  0x31   :  { %v188_v3 = vadd.f32 %v507_v2, %v120_v56  ;;  %v121_v4 = vmul.f32 %v502_v1, %v53_v57  ;;  %439 = vst [vmem:[%s1023_s3 + $0x108] sm:$0xff] %v375_v63  ;;  %v376_v7 = vsel %vm248_vm2, %v184_v51, %v312_v60  ;;  %v122_v16 = vmul.f32 %v502_v1, %v54_v5  ;;  %v66_v51 = vld [vmem:[%s1020_s0 + $0x1a0] sm:$0xff]  ;;  %v67_v5 = vld [vmem:[%s1020_s0 + $0x1a8] sm:$0xff] }
  0x32   :  { %v377_v8 = vsel %vm249_vm3, %v185_v52, %v313_v61  ;;  %vm250_vm4 = vcmp.ge.f32.partialorder %v186_v62, 0.0  ;;  %v314_v9 = vmul.f32 0.2, %v186_v62  ;;  %440 = vst [vmem:[%s1023_s3 + $0x110] sm:$0xff] %v376_v7  ;;  %vm251_vm5 = vcmp.ge.f32.partialorder %v187_v0, 0.0 }
  0x33   :  { %v315_v11 = vmul.f32 0.2, %v187_v0  ;;  %vm252_vm6 = vcmp.ge.f32.partialorder %v188_v3, 0.0  ;;  %v189_v12 = vadd.f32 %v507_v2, %v121_v4  ;;  %441 = vst [vmem:[%s1023_s3 + $0x118] sm:$0xff] %v377_v8  ;;  %v316_v15 = vmul.f32 0.2, %v188_v3 }
  0x34   :  { %v378_v14 = vsel %vm250_vm4, %v186_v62, %v314_v9  ;;  %v123_v17 = vmul.f32 %v502_v1, %v55_v6  ;;  %v124_v22 = vmul.f32 %v502_v1, %v56_v10  ;;  %v190_v24 = vadd.f32 %v507_v2, %v122_v16  ;;  %v68_v6 = vld [vmem:[%s1020_s0 + $0x1b0] sm:$0xff] }
  0x35   :  { %442 = vst [vmem:[%s1023_s3 + $0x120] sm:$0xff] %v378_v14  ;;  %v379_v20 = vsel %vm251_vm5, %v187_v0, %v315_v11  ;;  %vm253_vm7 = vcmp.ge.f32.partialorder %v189_v12, 0.0  ;;  %v317_v21 = vmul.f32 0.2, %v189_v12  ;;  %v380_v23 = vsel %vm252_vm6, %v188_v3, %v316_v15  ;;  %v69_v11 = vld [vmem:[%s1020_s0 + $0x1b8] sm:$0xff] }
  0x36   :  { %443 = vst [vmem:[%s1023_s3 + $0x128] sm:$0xff] %v379_v20  ;;  %v191_v25 = vadd.f32 %v507_v2, %v123_v17  ;;  %v125_v26 = vmul.f32 %v502_v1, %v57_v13  ;;  %v192_v28 = vadd.f32 %v507_v2, %v124_v22  ;;  %v126_v29 = vmul.f32 %v502_v1, %v58_v18  ;;  %v71_v20 = vld [vmem:[%s1020_s0 + $0x1c8] sm:$0xff] }
  0x37   :  { %444 = vst [vmem:[%s1023_s3 + $0x130] sm:$0xff] %v380_v23  ;;  %v381_v27 = vsel %vm253_vm7, %v189_v12, %v317_v21  ;;  %v127_v30 = vmul.f32 %v502_v1, %v59_v19  ;;  %vm254_vm8 = vcmp.ge.f32.partialorder %v190_v24, 0.0  ;;  %v318_v31 = vmul.f32 0.2, %v190_v24  ;;  %v70_v12 = vld [vmem:[%s1020_s0 + $0x1c0] sm:$0xff] }
  0x38   :  { %445 = vst [vmem:[%s1023_s3 + $0x138] sm:$0xff] %v381_v27  ;;  %vm255_vm9 = vcmp.ge.f32.partialorder %v191_v25, 0.0  ;;  %v193_v32 = vadd.f32 %v507_v2, %v125_v26  ;;  %v319_v33 = vmul.f32 0.2, %v191_v25  ;;  %vm256_vm10 = vcmp.ge.f32.partialorder %v192_v28, 0.0 }
  0x39   :  { %v320_v34 = vmul.f32 0.2, %v192_v28  ;;  %v194_v35 = vadd.f32 %v507_v2, %v126_v29  ;;  %v382_v37 = vsel %vm254_vm8, %v190_v24, %v318_v31  ;;  %v195_v39 = vadd.f32 %v507_v2, %v127_v30 }
  0x3a   :  { %vm257_vm11 = vcmp.ge.f32.partialorder %v193_v32, 0.0  ;;  %v321_v38 = vmul.f32 0.2, %v193_v32  ;;  %446 = vst [vmem:[%s1023_s3 + $0x140] sm:$0xff] %v382_v37  ;;  %v383_v43 = vsel %vm255_vm9, %v191_v25, %v319_v33  ;;  %v128_v50 = vmul.f32 %v502_v1, %v60_v36  ;;  %v72_v25 = vld [vmem:[%s1020_s0 + $0x1d0] sm:$0xff]  ;;  %v73_v36 = vld [vmem:[%s1020_s0 + $0x1d8] sm:$0xff] }
  0x3b   :  { %v384_v44 = vsel %vm256_vm10, %v192_v28, %v320_v34  ;;  %vm258_vm12 = vcmp.ge.f32.partialorder %v194_v35, 0.0  ;;  %v322_v45 = vmul.f32 0.2, %v194_v35  ;;  %447 = vst [vmem:[%s1023_s3 + $0x148] sm:$0xff] %v383_v43  ;;  %vm259_vm13 = vcmp.ge.f32.partialorder %v195_v39, 0.0  ;;  %v74_v37 = vld [vmem:[%s1020_s0 + $0x1e0] sm:$0xff] }
  0x3c   :  { %v385_v48 = vsel %vm257_vm11, %v193_v32, %v321_v38  ;;  %v323_v49 = vmul.f32 0.2, %v195_v39  ;;  %448 = vst [vmem:[%s1023_s3 + $0x150] sm:$0xff] %v384_v44  ;;  %v129_v53 = vmul.f32 %v502_v1, %v61_v40  ;;  %v130_v54 = vmul.f32 %v502_v1, %v62_v41 }
  0x3d   :  { %v386_v52 = vsel %vm258_vm12, %v194_v35, %v322_v45  ;;  %v131_v55 = vmul.f32 %v502_v1, %v63_v42  ;;  %449 = vst [vmem:[%s1023_s3 + $0x158] sm:$0xff] %v385_v48  ;;  %v196_v57 = vadd.f32 %v507_v2, %v128_v50  ;;  %v132_v58 = vmul.f32 %v502_v1, %v64_v46  ;;  %v76_v48 = vld [vmem:[%s1020_s0 + $0x1f0] sm:$0xff] }
  0x3e   :  { %v387_v56 = vsel %vm259_vm13, %v195_v39, %v323_v49  ;;  %v133_v59 = vmul.f32 %v502_v1, %v65_v47  ;;  %450 = vst [vmem:[%s1023_s3 + $0x160] sm:$0xff] %v386_v52  ;;  %v197_v60 = vadd.f32 %v507_v2, %v129_v53  ;;  %v198_v61 = vadd.f32 %v507_v2, %v130_v54  ;;  %v75_v47 = vld [vmem:[%s1020_s0 + $0x1e8] sm:$0xff]  ;;  %v77_v49 = vld [vmem:[%s1020_s0 + $0x1f8] sm:$0xff] }
  0x3f   :  { %v199_v62 = vadd.f32 %v507_v2, %v131_v55  ;;  %v134_v63 = vmul.f32 %v502_v1, %v66_v51  ;;  %451 = vst [vmem:[%s1023_s3 + $0x168] sm:$0xff] %v387_v56  ;;  %vm260_vm14 = vcmp.ge.f32.partialorder %v196_v57, 0.0  ;;  %v324_v0 = vmul.f32 0.2, %v196_v57 }
  0x40   :  { %v200_v3 = vadd.f32 %v507_v2, %v132_v58  ;;  %v201_v4 = vadd.f32 %v507_v2, %v133_v59  ;;  %vm261_vm15 = vcmp.ge.f32.partialorder %v197_v60, 0.0  ;;  %v325_v7 = vmul.f32 0.2, %v197_v60 }
  0x41   :  { %vm262_vm0 = vcmp.ge.f32.partialorder %v198_v61, 0.0  ;;  %v326_v8 = vmul.f32 0.2, %v198_v61  ;;  %v388_v9 = vsel %vm260_vm14, %v196_v57, %v324_v0  ;;  %vm263_vm1 = vcmp.ge.f32.partialorder %v199_v62, 0.0 }
  0x42   :  { %v327_v10 = vmul.f32 0.2, %v199_v62  ;;  %vm264_vm2 = vcmp.ge.f32.partialorder %v200_v3, 0.0  ;;  %452 = vst [vmem:[%s1023_s3 + $0x170] sm:$0xff] %v388_v9  ;;  %v389_v13 = vsel %vm261_vm15, %v197_v60, %v325_v7  ;;  %v328_v15 = vmul.f32 0.2, %v200_v3 }
  0x43   :  { %v390_v14 = vsel %vm262_vm0, %v198_v61, %v326_v8  ;;  %vm265_vm3 = vcmp.ge.f32.partialorder %v201_v4, 0.0  ;;  %453 = vst [vmem:[%s1023_s3 + $0x178] sm:$0xff] %v389_v13  ;;  %v329_v17 = vmul.f32 0.2, %v201_v4  ;;  %v202_v18 = vadd.f32 %v507_v2, %v134_v63 }
  0x44   :  { %v391_v16 = vsel %vm263_vm1, %v199_v62, %v327_v10  ;;  %v135_v19 = vmul.f32 %v502_v1, %v67_v5  ;;  %454 = vst [vmem:[%s1023_s3 + $0x180] sm:$0xff] %v390_v14  ;;  %v392_v21 = vsel %vm264_vm2, %v200_v3, %v328_v15  ;;  %v136_v22 = vmul.f32 %v502_v1, %v68_v6 }
  0x45   :  { %v137_v23 = vmul.f32 %v502_v1, %v69_v11  ;;  %v138_v24 = vmul.f32 %v502_v1, %v70_v12  ;;  %455 = vst [vmem:[%s1023_s3 + $0x188] sm:$0xff] %v391_v16  ;;  %v393_v26 = vsel %vm265_vm3, %v201_v4, %v329_v17  ;;  %vm266_vm4 = vcmp.ge.f32.partialorder %v202_v18, 0.0 }
  0x46   :  { %v330_v27 = vmul.f32 0.2, %v202_v18  ;;  %v203_v28 = vadd.f32 %v507_v2, %v135_v19  ;;  %456 = vst [vmem:[%s1023_s3 + $0x190] sm:$0xff] %v392_v21  ;;  %v204_v29 = vadd.f32 %v507_v2, %v136_v22  ;;  %v139_v32 = vmul.f32 %v502_v1, %v71_v20 }
  0x47   :  { %v205_v30 = vadd.f32 %v507_v2, %v137_v23  ;;  %v206_v31 = vadd.f32 %v507_v2, %v138_v24  ;;  %457 = vst [vmem:[%s1023_s3 + $0x198] sm:$0xff] %v393_v26  ;;  %v140_v35 = vmul.f32 %v502_v1, %v72_v25  ;;  %v141_v45 = vmul.f32 %v502_v1, %v73_v36 }
  0x48   :  { %v394_v33 = vsel %vm266_vm4, %v202_v18, %v330_v27  ;;  %vm267_vm5 = vcmp.ge.f32.partialorder %v203_v28, 0.0  ;;  %v331_v34 = vmul.f32 0.2, %v203_v28  ;;  %vm268_vm6 = vcmp.ge.f32.partialorder %v204_v29, 0.0 }
  0x49   :  { %458 = vst [vmem:[%s1023_s3 + $0x1a0] sm:$0xff] %v394_v33  ;;  %v332_v38 = vmul.f32 0.2, %v204_v29  ;;  %vm269_vm7 = vcmp.ge.f32.partialorder %v205_v30, 0.0  ;;  %vm270_vm8 = vcmp.ge.f32.partialorder %v206_v31, 0.0  ;;  %v207_v42 = vadd.f32 %v507_v2, %v139_v32 }
  0x4a   :  { %v395_v39 = vsel %vm267_vm5, %v203_v28, %v331_v34  ;;  %v333_v40 = vmul.f32 0.2, %v205_v30  ;;  %v334_v41 = vmul.f32 0.2, %v206_v31  ;;  %v208_v44 = vadd.f32 %v507_v2, %v140_v35 }
  0x4b   :  { %459 = vst [vmem:[%s1023_s3 + $0x1a8] sm:$0xff] %v395_v39  ;;  %v396_v43 = vsel %vm268_vm6, %v204_v29, %v332_v38  ;;  %v142_v46 = vmul.f32 %v502_v1, %v74_v37  ;;  %vm271_vm9 = vcmp.ge.f32.partialorder %v207_v42, 0.0  ;;  %v335_v52 = vmul.f32 0.2, %v207_v42 }
  0x4c   :  { %460 = vst [vmem:[%s1023_s3 + $0x1b0] sm:$0xff] %v396_v43  ;;  %v397_v50 = vsel %vm269_vm7, %v205_v30, %v333_v40  ;;  %v398_v51 = vsel %vm270_vm8, %v206_v31, %v334_v41  ;;  %vm272_vm10 = vcmp.ge.f32.partialorder %v208_v44, 0.0  ;;  %v336_v53 = vmul.f32 0.2, %v208_v44 }
  0x4d   :  { %461 = vst [vmem:[%s1023_s3 + $0x1b8] sm:$0xff] %v397_v50  ;;  %v209_v54 = vadd.f32 %v507_v2, %v141_v45  ;;  %v210_v55 = vadd.f32 %v507_v2, %v142_v46  ;;  %v399_v56 = vsel %vm271_vm9, %v207_v42, %v335_v52  ;;  %v143_v57 = vmul.f32 %v502_v1, %v75_v47 }
  0x4e   :  { %462 = vst [vmem:[%s1023_s3 + $0x1c0] sm:$0xff] %v398_v51  ;;  %v144_v58 = vmul.f32 %v502_v1, %v76_v48  ;;  %v145_v59 = vmul.f32 %v502_v1, %v77_v49  ;;  %v400_v60 = vsel %vm272_vm10, %v208_v44, %v336_v53 }
  0x4f   :  { %463 = vst [vmem:[%s1023_s3 + $0x1c8] sm:$0xff] %v399_v56  ;;  %vm273_vm11 = vcmp.ge.f32.partialorder %v209_v54, 0.0  ;;  %v337_v61 = vmul.f32 0.2, %v209_v54  ;;  %vm274_vm12 = vcmp.ge.f32.partialorder %v210_v55, 0.0  ;;  %v211_v63 = vadd.f32 %v507_v2, %v143_v57 }
  0x50   :  { %464 = vst [vmem:[%s1023_s3 + $0x1d0] sm:$0xff] %v400_v60  ;;  %v338_v62 = vmul.f32 0.2, %v210_v55  ;;  %v212_v0 = vadd.f32 %v507_v2, %v144_v58  ;;  %v213_v3 = vadd.f32 %v507_v2, %v145_v59 }
  0x51   :  { %v401_v1 = vsel %vm273_vm11, %v209_v54, %v337_v61  ;;  %vm275_vm13 = vcmp.ge.f32.partialorder %v211_v63, 0.0  ;;  %v339_v5 = vmul.f32 0.2, %v211_v63 }
  0x52   :  { %465 = vst [vmem:[%s1023_s3 + $0x1d8] sm:$0xff] %v401_v1  ;;  %v402_v4 = vsel %vm274_vm12, %v210_v55, %v338_v62  ;;  %vm276_vm14 = vcmp.ge.f32.partialorder %v212_v0, 0.0  ;;  %v340_v6 = vmul.f32 0.2, %v212_v0  ;;  %vm277_vm15 = vcmp.ge.f32.partialorder %v213_v3, 0.0 }
  0x53   :  { %466 = vst [vmem:[%s1023_s3 + $0x1e0] sm:$0xff] %v402_v4  ;;  %v341_v7 = vmul.f32 0.2, %v213_v3  ;;  %v403_v8 = vsel %vm275_vm13, %v211_v63, %v339_v5 }
  0x54   :  { %467 = vst [vmem:[%s1023_s3 + $0x1e8] sm:$0xff] %v403_v8  ;;  %v404_v2 = vsel %vm276_vm14, %v212_v0, %v340_v6 }
  0x55   :  { %v405_v9 = vsel %vm277_vm15, %v213_v3, %v341_v7  ;;  %468 = vst [vmem:[%s1023_s3 + $0x1f0] sm:$0xff] %v404_v2 }
  0x56   :  { %469 = vst [vmem:[%s1023_s3 + $0x1f8] sm:$0xff] %v405_v9 }

// kernel: discriminator_forward.11
= control target key start
LH: loop header
LB: loop body
LE: loop exit
PB: predicated region body
PF: predicated region fallthrough
CT: control target
= control target key end

     0   :  { %s991_s1 = inlined_call_operand.vmem [shape: bf16[256,128], index: 1, kind: input, shape index: {}]   ;;  %s992_s0 = inlined_call_operand.vmem [shape: bf16[128,256], index: 0, kind: input, shape index: {}]   ;;  %s993_s2 = inlined_call_operand.vmem [shape: f32[1,128], index: 2, kind: input, shape index: {}]   ;;  %s994_s3 = inlined_call_operand.vmem [shape: f32[128,128], index: 3, kind: output, shape index: {0}]   ;;  %s995_s4 = inlined_call_operand.vmem [shape: f32[1,1,128], index: 4, kind: output, shape index: {1}]   ;;  %s996_s5 = inlined_call_operand.vmem [shape: f32[1,1,128], index: 5, kind: output, shape index: {2}]  }
   0x1   :  { %v685_v0 = vld [vmem:[%s991_s1 + $0x38] sm:$0xff]  ;;  %v684_v2 = vld [vmem:[%s991_s1 + $0x30] sm:$0xff]  ;;  %v683_v4 = vld [vmem:[%s991_s1 + $0x28] sm:$0xff] }
   0x2   :  { %v693_v1 = vld [vmem:[%s991_s1 + $0x78] sm:$0xff]  ;;  %277 = vmatpush.bf16.msra.mxu0 %v685_v0  ;;  %v692_v3 = vld [vmem:[%s991_s1 + $0x70] sm:$0xff]  ;;  %694 = vmatpush.bf16.msra.mxu2 %v685_v0  ;;  %v691_v5 = vld [vmem:[%s991_s1 + $0x68] sm:$0xff] }
   0x3   :  { %326 = vmatpush.bf16.msra.mxu1 %v693_v1  ;;  %702 = vmatpush.bf16.msra.mxu3 %v693_v1  ;;  %v682_v6 = vld [vmem:[%s991_s1 + $0x20] sm:$0xff]  ;;  %v681_v8 = vld [vmem:[%s991_s1 + $0x18] sm:$0xff]  ;;  %v680_v10 = vld [vmem:[%s991_s1 + $0x10] sm:$0xff] }
   0x4   :  { %v690_v7 = vld [vmem:[%s991_s1 + $0x60] sm:$0xff]  ;;  %v689_v9 = vld [vmem:[%s991_s1 + $0x58] sm:$0xff]  ;;  %v688_v11 = vld [vmem:[%s991_s1 + $0x50] sm:$0xff] }
   0x5   :  { %v679_v12 = vld [vmem:[%s991_s1 + $0x8] sm:$0xff]  ;;  %v678_v14 = vld [vmem:[%s991_s1] sm:$0xff]  ;;  %v544_v28 = vld [vmem:[%s992_s0 + $0x10] sm:$0xf] }
   0x6   :  { %278 = vmatpush.bf16.msra.mxu0 %v684_v2  ;;  %695 = vmatpush.bf16.msra.mxu2 %v684_v2  ;;  %v687_v13 = vld [vmem:[%s991_s1 + $0x48] sm:$0xff]  ;;  %v686_v15 = vld [vmem:[%s991_s1 + $0x40] sm:$0xff]  ;;  %v665_v29 = vld [vmem:[%s992_s0 + $0x14] sm:$0xf0] }
   0x7   :  { %327 = vmatpush.bf16.msra.mxu1 %v692_v3  ;;  %703 = vmatpush.bf16.msra.mxu3 %v692_v3  ;;  %v536_v16 = vld [vmem:[%s992_s0] sm:$0xf]  ;;  %v663_v17 = vld [vmem:[%s992_s0 + $0x4] sm:$0xf0]  ;;  %v662_v18 = vld [vmem:[%s992_s0 + $0x4] sm:$0xf]  ;;  %v545_v36 = vor.u32 %v665_v29, %v544_v28 }
   0x8   :  { %v538_v19 = vld [vmem:[%s992_s0 + $0x8] sm:$0xf0]  ;;  %v568_v20 = vld [vmem:[%s992_s0 + $0x40] sm:$0xf]  ;;  %v671_v21 = vld [vmem:[%s992_s0 + $0x44] sm:$0xf0]  ;;  %v537_v24 = vor.u32 %v663_v17, %v536_v16 }
   0x9   :  { %v670_v22 = vld [vmem:[%s992_s0 + $0x44] sm:$0xf]  ;;  %v570_v23 = vld [vmem:[%s992_s0 + $0x48] sm:$0xf0]  ;;  %v541_v25 = vor.u32 %v662_v18, %v538_v19  ;;  %v569_v26 = vor.u32 %v671_v21, %v568_v20  ;;  %v664_v30 = vld [vmem:[%s992_s0 + $0x14] sm:$0xf] }
   0xa   :  { %279 = vmatpush.bf16.msra.mxu0 %v683_v4  ;;  %696 = vmatpush.bf16.msra.mxu2 %v683_v4  ;;  %v573_v27 = vor.u32 %v670_v22, %v570_v23  ;;  %v546_v31 = vld [vmem:[%s992_s0 + $0x18] sm:$0xf0]  ;;  %v576_v32 = vld [vmem:[%s992_s0 + $0x50] sm:$0xf]  ;;  %v673_v33 = vld [vmem:[%s992_s0 + $0x54] sm:$0xf0] }
   0xb   :  { %328 = vmatpush.bf16.msra.mxu1 %v691_v5  ;;  %704 = vmatpush.bf16.msra.mxu3 %v691_v5  ;;  %v672_v34 = vld [vmem:[%s992_s0 + $0x54] sm:$0xf]  ;;  %v578_v35 = vld [vmem:[%s992_s0 + $0x58] sm:$0xf0]  ;;  %v549_v37 = vor.u32 %v664_v30, %v546_v31  ;;  %v577_v38 = vor.u32 %v673_v33, %v576_v32  ;;  %v552_v40 = vld [vmem:[%s992_s0 + $0x20] sm:$0xf] }
   0xc   :  { %v581_v39 = vor.u32 %v672_v34, %v578_v35  ;;  %v667_v41 = vld [vmem:[%s992_s0 + $0x24] sm:$0xf0]  ;;  %v666_v42 = vld [vmem:[%s992_s0 + $0x24] sm:$0xf]  ;;  %v554_v43 = vld [vmem:[%s992_s0 + $0x28] sm:$0xf0] }
   0xd   :  { %v584_v44 = vld [vmem:[%s992_s0 + $0x60] sm:$0xf]  ;;  %v675_v45 = vld [vmem:[%s992_s0 + $0x64] sm:$0xf0]  ;;  %v674_v46 = vld [vmem:[%s992_s0 + $0x64] sm:$0xf]  ;;  %v553_v48 = vor.u32 %v667_v41, %v552_v40  ;;  %v557_v49 = vor.u32 %v666_v42, %v554_v43 }
   0xe   :  { %280 = vmatpush.bf16.msra.mxu0 %v682_v6  ;;  %697 = vmatpush.bf16.msra.mxu2 %v682_v6  ;;  %v586_v47 = vld [vmem:[%s992_s0 + $0x68] sm:$0xf0]  ;;  %v585_v50 = vor.u32 %v675_v45, %v584_v44  ;;  %v560_v52 = vld [vmem:[%s992_s0 + $0x30] sm:$0xf]  ;;  %v669_v53 = vld [vmem:[%s992_s0 + $0x34] sm:$0xf0] }
   0xf   :  { %329 = vmatpush.bf16.msra.mxu1 %v690_v7  ;;  %705 = vmatpush.bf16.msra.mxu3 %v690_v7  ;;  %v589_v51 = vor.u32 %v674_v46, %v586_v47  ;;  %v668_v54 = vld [vmem:[%s992_s0 + $0x34] sm:$0xf]  ;;  %v562_v55 = vld [vmem:[%s992_s0 + $0x38] sm:$0xf0]  ;;  %v592_v56 = vld [vmem:[%s992_s0 + $0x70] sm:$0xf]  ;;  %v561_v60 = vor.u32 %v669_v53, %v560_v52 }
  0x10   :  { %v677_v57 = vld [vmem:[%s992_s0 + $0x74] sm:$0xf0]  ;;  %v676_v58 = vld [vmem:[%s992_s0 + $0x74] sm:$0xf]  ;;  %v594_v59 = vld [vmem:[%s992_s0 + $0x78] sm:$0xf0]  ;;  %v565_v61 = vor.u32 %v668_v54, %v562_v55 }
  0x11   :  { %v593_v62 = vor.u32 %v677_v57, %v592_v56  ;;  %v597_v63 = vor.u32 %v676_v58, %v594_v59  ;;  %v889_v3 = vld [vmem:[%s993_s2] ss:$0 sm:$0xff] }
  0x12   :  { %281 = vmatpush.bf16.msra.mxu0 %v681_v8  ;;  %698 = vmatpush.bf16.msra.mxu2 %v681_v8 }
  0x13   :  { %330 = vmatpush.bf16.msra.mxu1 %v689_v9  ;;  %706 = vmatpush.bf16.msra.mxu3 %v689_v9 }
  0x16   :  { %282 = vmatpush.bf16.msra.mxu0 %v680_v10  ;;  %699 = vmatpush.bf16.msra.mxu2 %v680_v10 }
  0x17   :  { %331 = vmatpush.bf16.msra.mxu1 %v688_v11  ;;  %707 = vmatpush.bf16.msra.mxu3 %v688_v11 }
  0x1a   :  { %283 = vmatpush.bf16.msra.mxu0 %v679_v12  ;;  %700 = vmatpush.bf16.msra.mxu2 %v679_v12 }
  0x1b   :  { %332 = vmatpush.bf16.msra.mxu1 %v687_v13  ;;  %708 = vmatpush.bf16.msra.mxu3 %v687_v13 }
  0x1e   :  { %284 = vmatpush.bf16.msra.mxu0 %v678_v14  ;;  %701 = vmatpush.bf16.msra.mxu2 %v678_v14 }
  0x1f   :  { %333 = vmatpush.bf16.msra.mxu1 %v686_v15  ;;  %709 = vmatpush.bf16.msra.mxu3 %v686_v15 }
  0x21   :  { %285 = vmatmul.bf16.vlgmr.msra.gmra.mxu0 %v537_v24  ;;  %305 = vmatmul.bf16.vlgmr.msra.gmra.mxu2 %v569_v26 }
  0x22   :  { %334 = vmatmul.bf16.vlgmr.msra.gmra.mxu1 %v541_v25  ;;  %354 = vmatmul.bf16.vlgmr.msra.gmra.mxu3 %v573_v27 }
  0x31   :  { %290 = vmatmul.bf16.gmra.mxu0 %v545_v36  ;;  %310 = vmatmul.bf16.gmra.mxu2 %v577_v38 }
  0x32   :  { %339 = vmatmul.bf16.gmra.mxu1 %v549_v37  ;;  %359 = vmatmul.bf16.gmra.mxu3 %v581_v39 }
  0x41   :  { %295 = vmatmul.bf16.gmra.mxu0 %v553_v48  ;;  %315 = vmatmul.bf16.gmra.mxu2 %v585_v50 }
  0x42   :  { %344 = vmatmul.bf16.gmra.mxu1 %v557_v49  ;;  %364 = vmatmul.bf16.gmra.mxu3 %v589_v51 }
  0x51   :  { %300 = vmatmul.bf16.gmra.mxu0 %v561_v60  ;;  %320 = vmatmul.bf16.gmra.mxu2 %v593_v62 }
  0x52   :  { %349 = vmatmul.bf16.gmra.mxu1 %v565_v61  ;;  %369 = vmatmul.bf16.gmra.mxu3 %v597_v63 }
  0x9e   :  { %v286_v0 = vpop.f32.mrf.mxu0 }
  0x9f   :  { %v335_v1 = vpop.f32.mrf.mxu1 }
  0xa0   :  { %v336_v2 = vadd.f32 %v335_v1, %v286_v0 }
  0xa2   :  { %v430_v4 = vadd.f32 %v889_v3, %v336_v2 }
  0xa4   :  { %446 = vst [vmem:[%s994_s3] sm:$0xff] %v430_v4  ;;  %v306_v5 = vpop.f32.mrf.mxu2  ;;  %v484_v52 = vmul.f32 %v430_v4, %v430_v4 }
  0xa5   :  { %v355_v6 = vpop.f32.mrf.mxu3 }
  0xa6   :  { %v288_v7 = vpop.f32.mrf.mxu0  ;;  %v356_v9 = vadd.f32 %v355_v6, %v306_v5 }
  0xa7   :  { %v337_v8 = vpop.f32.mrf.mxu1 }
  0xa8   :  { %v338_v10 = vadd.f32 %v337_v8, %v288_v7  ;;  %v896_v11 = vadd.f32 %v889_v3, %v356_v9 }
  0xaa   :  { %v431_v12 = vadd.f32 %v889_v3, %v338_v10  ;;  %454 = vst [vmem:[%s994_s3 + $0x40] sm:$0xff] %v896_v11 }
  0xac   :  { %447 = vst [vmem:[%s994_s3 + $0x8] sm:$0xff] %v431_v12  ;;  %v308_v13 = vpop.f32.mrf.mxu2  ;;  %v485_v50 = vmul.f32 %v431_v12, %v431_v12  ;;  %v462_v53 = vadd.f32 %v431_v12, %v430_v4 }
  0xad   :  { %v357_v14 = vpop.f32.mrf.mxu3 }
  0xae   :  { %v291_v15 = vpop.f32.mrf.mxu0  ;;  %v358_v17 = vadd.f32 %v357_v14, %v308_v13  ;;  %v500_v56 = vadd.f32 %v485_v50, %v484_v52 }
  0xaf   :  { %v340_v16 = vpop.f32.mrf.mxu1 }
  0xb0   :  { %v341_v18 = vadd.f32 %v340_v16, %v291_v15  ;;  %v907_v19 = vadd.f32 %v889_v3, %v358_v17 }
  0xb2   :  { %v432_v20 = vadd.f32 %v889_v3, %v341_v18  ;;  %455 = vst [vmem:[%s994_s3 + $0x48] sm:$0xff] %v907_v19 }
  0xb4   :  { %448 = vst [vmem:[%s994_s3 + $0x10] sm:$0xff] %v432_v20  ;;  %v311_v21 = vpop.f32.mrf.mxu2  ;;  %v486_v54 = vmul.f32 %v432_v20, %v432_v20  ;;  %v463_v57 = vadd.f32 %v462_v53, %v432_v20 }
  0xb5   :  { %v360_v22 = vpop.f32.mrf.mxu3 }
  0xb6   :  { %v293_v23 = vpop.f32.mrf.mxu0  ;;  %v361_v25 = vadd.f32 %v360_v22, %v311_v21  ;;  %v501_v60 = vadd.f32 %v500_v56, %v486_v54 }
  0xb7   :  { %v342_v24 = vpop.f32.mrf.mxu1 }
  0xb8   :  { %v343_v26 = vadd.f32 %v342_v24, %v293_v23  ;;  %v918_v27 = vadd.f32 %v889_v3, %v361_v25  ;;  %v492_v24 = vmul.f32 %v896_v11, %v896_v11 }
  0xba   :  { %v433_v28 = vadd.f32 %v889_v3, %v343_v26  ;;  %456 = vst [vmem:[%s994_s3 + $0x50] sm:$0xff] %v918_v27 }
  0xbc   :  { %449 = vst [vmem:[%s994_s3 + $0x18] sm:$0xff] %v433_v28  ;;  %v313_v29 = vpop.f32.mrf.mxu2  ;;  %v487_v58 = vmul.f32 %v433_v28, %v433_v28  ;;  %v464_v61 = vadd.f32 %v463_v57, %v433_v28  ;;  %v493_v28 = vmul.f32 %v907_v19, %v907_v19 }
  0xbd   :  { %v362_v30 = vpop.f32.mrf.mxu3 }
  0xbe   :  { %v296_v31 = vpop.f32.mrf.mxu0  ;;  %v363_v33 = vadd.f32 %v362_v30, %v313_v29  ;;  %v502_v5 = vadd.f32 %v501_v60, %v487_v58 }
  0xbf   :  { %v345_v32 = vpop.f32.mrf.mxu1 }
  0xc0   :  { %v346_v34 = vadd.f32 %v345_v32, %v296_v31  ;;  %v929_v35 = vadd.f32 %v889_v3, %v363_v33  ;;  %v494_v32 = vmul.f32 %v918_v27, %v918_v27 }
  0xc2   :  { %v434_v36 = vadd.f32 %v889_v3, %v346_v34  ;;  %457 = vst [vmem:[%s994_s3 + $0x58] sm:$0xff] %v929_v35 }
  0xc4   :  { %450 = vst [vmem:[%s994_s3 + $0x20] sm:$0xff] %v434_v36  ;;  %v316_v37 = vpop.f32.mrf.mxu2  ;;  %v488_v62 = vmul.f32 %v434_v36, %v434_v36  ;;  %v465_v6 = vadd.f32 %v464_v61, %v434_v36 }
  0xc5   :  { %v365_v38 = vpop.f32.mrf.mxu3 }
  0xc6   :  { %v298_v39 = vpop.f32.mrf.mxu0  ;;  %v366_v41 = vadd.f32 %v365_v38, %v316_v37  ;;  %v503_v9 = vadd.f32 %v502_v5, %v488_v62 }
  0xc7   :  { %v347_v40 = vpop.f32.mrf.mxu1 }
  0xc8   :  { %v348_v42 = vadd.f32 %v347_v40, %v298_v39  ;;  %v940_v43 = vadd.f32 %v889_v3, %v366_v41 }
  0xca   :  { %v435_v44 = vadd.f32 %v889_v3, %v348_v42  ;;  %458 = vst [vmem:[%s994_s3 + $0x60] sm:$0xff] %v940_v43 }
  0xcc   :  { %451 = vst [vmem:[%s994_s3 + $0x28] sm:$0xff] %v435_v44  ;;  %v318_v45 = vpop.f32.mrf.mxu2  ;;  %v489_v7 = vmul.f32 %v435_v44, %v435_v44  ;;  %v466_v10 = vadd.f32 %v465_v6, %v435_v44 }
  0xcd   :  { %v367_v46 = vpop.f32.mrf.mxu3 }
  0xce   :  { %v301_v47 = vpop.f32.mrf.mxu0  ;;  %v368_v49 = vadd.f32 %v367_v46, %v318_v45  ;;  %v504_v14 = vadd.f32 %v503_v9, %v489_v7 }
  0xcf   :  { %v350_v48 = vpop.f32.mrf.mxu1 }
  0xd0   :  { %v351_v51 = vadd.f32 %v350_v48, %v301_v47  ;;  %v443_v55 = vadd.f32 %v889_v3, %v368_v49 }
  0xd2   :  { %v436_v59 = vadd.f32 %v889_v3, %v351_v51  ;;  %459 = vst [vmem:[%s994_s3 + $0x68] sm:$0xff] %v443_v55  ;;  %v497_v39 = vmul.f32 %v443_v55, %v443_v55 }
  0xd4   :  { %452 = vst [vmem:[%s994_s3 + $0x30] sm:$0xff] %v436_v59  ;;  %v321_v63 = vpop.f32.mrf.mxu2  ;;  %v490_v12 = vmul.f32 %v436_v59, %v436_v59  ;;  %v467_v15 = vadd.f32 %v466_v10, %v436_v59 }
  0xd5   :  { %v370_v0 = vpop.f32.mrf.mxu3 }
  0xd6   :  { %v303_v1 = vpop.f32.mrf.mxu0  ;;  %v371_v4 = vadd.f32 %v370_v0, %v321_v63  ;;  %v505_v17 = vadd.f32 %v504_v14, %v490_v12 }
  0xd7   :  { %v352_v2 = vpop.f32.mrf.mxu1 }
  0xd8   :  { %v353_v8 = vadd.f32 %v352_v2, %v303_v1  ;;  %v444_v13 = vadd.f32 %v889_v3, %v371_v4 }
  0xda   :  { %v437_v16 = vadd.f32 %v889_v3, %v353_v8  ;;  %460 = vst [vmem:[%s994_s3 + $0x70] sm:$0xff] %v444_v13  ;;  %v498_v42 = vmul.f32 %v444_v13, %v444_v13 }
  0xdc   :  { %453 = vst [vmem:[%s994_s3 + $0x38] sm:$0xff] %v437_v16  ;;  %v468_v18 = vadd.f32 %v467_v15, %v437_v16  ;;  %v491_v20 = vmul.f32 %v437_v16, %v437_v16  ;;  %v323_v21 = vpop.f32.mrf.mxu2 }
  0xdd   :  { %v372_v22 = vpop.f32.mrf.mxu3 }
  0xde   :  { %v373_v23 = vadd.f32 %v372_v22, %v323_v21  ;;  %v469_v25 = vadd.f32 %v468_v18, %v896_v11  ;;  %v506_v26 = vadd.f32 %v505_v17, %v491_v20  ;;  %v495_v11 = vmul.f32 %v929_v35, %v929_v35 }
  0xe0   :  { %v470_v29 = vadd.f32 %v469_v25, %v907_v19  ;;  %v507_v30 = vadd.f32 %v506_v26, %v492_v24  ;;  %v445_v31 = vadd.f32 %v889_v3, %v373_v23  ;;  %v496_v19 = vmul.f32 %v940_v43, %v940_v43 }
  0xe2   :  { %v471_v33 = vadd.f32 %v470_v29, %v918_v27  ;;  %v508_v34 = vadd.f32 %v507_v30, %v493_v28  ;;  %461 = vst [vmem:[%s994_s3 + $0x78] sm:$0xff] %v445_v31  ;;  %v499_v47 = vmul.f32 %v445_v31, %v445_v31 }
  0xe4   :  { %v509_v36 = vadd.f32 %v508_v34, %v494_v32  ;;  %v472_v37 = vadd.f32 %v471_v33, %v929_v35 }
  0xe6   :  { %v473_v3 = vadd.f32 %v472_v37, %v940_v43  ;;  %v510_v38 = vadd.f32 %v509_v36, %v495_v11 }
  0xe8   :  { %v474_v40 = vadd.f32 %v473_v3, %v443_v55  ;;  %v511_v27 = vadd.f32 %v510_v38, %v496_v19 }
  0xea   :  { %v475_v41 = vadd.f32 %v474_v40, %v444_v13  ;;  %v512_v44 = vadd.f32 %v511_v27, %v497_v39 }
  0xec   :  { %v513_v45 = vadd.f32 %v512_v44, %v498_v42  ;;  %v476_v46 = vadd.f32 %v475_v41, %v445_v31 }
  0xee   :  { %v477_v48 = vrot.slane %v476_v46, 4  ;;  %v514_v49 = vadd.f32 %v513_v45, %v499_v47 }
  0xf0   :  { %v478_v50 = vadd.f32 %v477_v48, %v476_v46  ;;  %v515_v51 = vrot.slane %v514_v49, 4 }
  0xf2   :  { %v479_v35 = vrot.slane %v478_v50, 2  ;;  %v516_v52 = vadd.f32 %v515_v51, %v514_v49 }
  0xf4   :  { %v480_v53 = vadd.f32 %v479_v35, %v478_v50  ;;  %v517_v54 = vrot.slane %v516_v52, 2 }
  0xf6   :  { %v481_v56 = vrot.slane %v480_v53, 1  ;;  %v518_v43 = vadd.f32 %v517_v54, %v516_v52 }
  0xf8   :  { %v482_v57 = vadd.f32 %v481_v56, %v480_v53  ;;  %v519_v58 = vrot.slane %v518_v43, 1 }
  0xfa   :  { %483 = vst [vmem:[%s995_s4] sm:$0x1] %v482_v57  ;;  %v520_v55 = vadd.f32 %v519_v58, %v518_v43 }
  0xfc   :  { %521 = vst [vmem:[%s996_s5] sm:$0x1] %v520_v55 }

// kernel: discriminator_forward.12
= control target key start
LH: loop header
LB: loop body
LE: loop exit
PB: predicated region body
PF: predicated region fallthrough
CT: control target
= control target key end

     0   :  { %s298_s0 = inlined_call_operand.vmem [shape: f32[128,128], index: 0, kind: input, shape index: {}]   ;;  %s299_s1 = inlined_call_operand.vmem [shape: f32[1,128], index: 1, kind: input, shape index: {}]   ;;  %s300_s2 = inlined_call_operand.vmem [shape: f32[1,128], index: 2, kind: input, shape index: {}]   ;;  %s301_s3 = inlined_call_operand.vmem [shape: f32[128,128], index: 3, kind: output, shape index: {}]  }
   0x1   :  { %v14_v0 = vld [vmem:[%s298_s0] sm:$0xff]  ;;  %v15_v3 = vld [vmem:[%s298_s0 + $0x8] sm:$0xff]  ;;  %v16_v6 = vld [vmem:[%s298_s0 + $0x10] sm:$0xff] }
   0x2   :  { %v166_v1 = vld [vmem:[%s299_s1] ss:$0 sm:$0xff]  ;;  %v17_v7 = vld [vmem:[%s298_s0 + $0x18] sm:$0xff]  ;;  %v19_v12 = vld [vmem:[%s298_s0 + $0x28] sm:$0xff] }
   0x3   :  { %v171_v2 = vld [vmem:[%s300_s2] ss:$0 sm:$0xff]  ;;  %v34_v4 = vmul.f32 %v166_v1, %v14_v0  ;;  %v35_v5 = vmul.f32 %v166_v1, %v15_v3  ;;  %v36_v9 = vmul.f32 %v166_v1, %v16_v6  ;;  %v37_v10 = vmul.f32 %v166_v1, %v17_v7  ;;  %v20_v13 = vld [vmem:[%s298_s0 + $0x30] sm:$0xff]  ;;  %v21_v14 = vld [vmem:[%s298_s0 + $0x38] sm:$0xff] }
   0x4   :  { %v18_v8 = vld [vmem:[%s298_s0 + $0x20] sm:$0xff]  ;;  %v39_v17 = vmul.f32 %v166_v1, %v19_v12  ;;  %v40_v18 = vmul.f32 %v166_v1, %v20_v13  ;;  %v41_v22 = vmul.f32 %v166_v1, %v21_v14  ;;  %v23_v24 = vld [vmem:[%s298_s0 + $0x48] sm:$0xff]  ;;  %v24_v32 = vld [vmem:[%s298_s0 + $0x50] sm:$0xff] }
   0x5   :  { %v38_v11 = vmul.f32 %v166_v1, %v18_v8  ;;  %v54_v15 = vadd.f32 %v171_v2, %v34_v4  ;;  %v55_v16 = vadd.f32 %v171_v2, %v35_v5  ;;  %v56_v19 = vadd.f32 %v171_v2, %v36_v9  ;;  %v22_v23 = vld [vmem:[%s298_s0 + $0x40] sm:$0xff]  ;;  %v25_v41 = vld [vmem:[%s298_s0 + $0x58] sm:$0xff]  ;;  %v27_v52 = vld [vmem:[%s298_s0 + $0x68] sm:$0xff] }
   0x6   :  { %v57_v20 = vadd.f32 %v171_v2, %v37_v10  ;;  %v59_v35 = vadd.f32 %v171_v2, %v39_v17  ;;  %v60_v36 = vadd.f32 %v171_v2, %v40_v18  ;;  %v61_v38 = vadd.f32 %v171_v2, %v41_v22  ;;  %v26_v51 = vld [vmem:[%s298_s0 + $0x60] sm:$0xff]  ;;  %v28_v56 = vld [vmem:[%s298_s0 + $0x70] sm:$0xff]  ;;  %v29_v59 = vld [vmem:[%s298_s0 + $0x78] sm:$0xff] }
   0x7   :  { %v58_v21 = vadd.f32 %v171_v2, %v38_v11  ;;  %vm70_vm0 = vcmp.ge.f32.partialorder %v54_v15, 0.0  ;;  %v86_v25 = vmul.f32 0.2, %v54_v15  ;;  %vm71_vm1 = vcmp.ge.f32.partialorder %v55_v16, 0.0 }
   0x8   :  { %v87_v26 = vmul.f32 0.2, %v55_v16  ;;  %vm72_vm2 = vcmp.ge.f32.partialorder %v56_v19, 0.0  ;;  %v88_v27 = vmul.f32 0.2, %v56_v19  ;;  %vm73_vm3 = vcmp.ge.f32.partialorder %v57_v20, 0.0 }
   0x9   :  { %v89_v28 = vmul.f32 0.2, %v57_v20  ;;  %v102_v29 = vsel %vm70_vm0, %v54_v15, %v86_v25  ;;  %vm74_vm4 = vcmp.ge.f32.partialorder %v58_v21, 0.0  ;;  %v90_v31 = vmul.f32 0.2, %v58_v21 }
   0xa   :  { %v103_v30 = vsel %vm71_vm1, %v55_v16, %v87_v26  ;;  %118 = vst [vmem:[%s301_s3] sm:$0xff] %v102_v29  ;;  %v104_v33 = vsel %vm72_vm2, %v56_v19, %v88_v27  ;;  %v42_v39 = vmul.f32 %v166_v1, %v22_v23  ;;  %v43_v40 = vmul.f32 %v166_v1, %v23_v24 }
   0xb   :  { %v105_v34 = vsel %vm73_vm3, %v57_v20, %v89_v28  ;;  %119 = vst [vmem:[%s301_s3 + $0x8] sm:$0xff] %v103_v30  ;;  %v106_v37 = vsel %vm74_vm4, %v58_v21, %v90_v31  ;;  %vm75_vm5 = vcmp.ge.f32.partialorder %v59_v35, 0.0  ;;  %v91_v42 = vmul.f32 0.2, %v59_v35 }
   0xc   :  { %120 = vst [vmem:[%s301_s3 + $0x10] sm:$0xff] %v104_v33  ;;  %vm76_vm6 = vcmp.ge.f32.partialorder %v60_v36, 0.0  ;;  %v44_v43 = vmul.f32 %v166_v1, %v24_v32  ;;  %v92_v44 = vmul.f32 0.2, %v60_v36  ;;  %vm77_vm7 = vcmp.ge.f32.partialorder %v61_v38, 0.0 }
   0xd   :  { %121 = vst [vmem:[%s301_s3 + $0x18] sm:$0xff] %v105_v34  ;;  %v93_v45 = vmul.f32 0.2, %v61_v38  ;;  %v62_v46 = vadd.f32 %v171_v2, %v42_v39  ;;  %v107_v47 = vsel %vm75_vm5, %v59_v35, %v91_v42  ;;  %v63_v48 = vadd.f32 %v171_v2, %v43_v40 }
   0xe   :  { %122 = vst [vmem:[%s301_s3 + $0x20] sm:$0xff] %v106_v37  ;;  %v64_v49 = vadd.f32 %v171_v2, %v44_v43  ;;  %v45_v50 = vmul.f32 %v166_v1, %v25_v41  ;;  %v108_v53 = vsel %vm76_vm6, %v60_v36, %v92_v44  ;;  %v46_v62 = vmul.f32 %v166_v1, %v26_v51 }
   0xf   :  { %123 = vst [vmem:[%s301_s3 + $0x28] sm:$0xff] %v107_v47  ;;  %v109_v54 = vsel %vm77_vm7, %v61_v38, %v93_v45  ;;  %vm78_vm8 = vcmp.ge.f32.partialorder %v62_v46, 0.0  ;;  %v94_v55 = vmul.f32 0.2, %v62_v46  ;;  %vm79_vm9 = vcmp.ge.f32.partialorder %v63_v48, 0.0 }
  0x10   :  { %124 = vst [vmem:[%s301_s3 + $0x30] sm:$0xff] %v108_v53  ;;  %v95_v57 = vmul.f32 0.2, %v63_v48  ;;  %vm80_vm10 = vcmp.ge.f32.partialorder %v64_v49, 0.0  ;;  %v65_v58 = vadd.f32 %v171_v2, %v45_v50  ;;  %v96_v61 = vmul.f32 0.2, %v64_v49 }
  0x11   :  { %125 = vst [vmem:[%s301_s3 + $0x38] sm:$0xff] %v109_v54  ;;  %v110_v60 = vsel %vm78_vm8, %v62_v46, %v94_v55  ;;  %v47_v63 = vmul.f32 %v166_v1, %v27_v52  ;;  %v48_v4 = vmul.f32 %v166_v1, %v28_v56  ;;  %v66_v6 = vadd.f32 %v171_v2, %v46_v62 }
  0x12   :  { %126 = vst [vmem:[%s301_s3 + $0x40] sm:$0xff] %v110_v60  ;;  %v111_v0 = vsel %vm79_vm9, %v63_v48, %v95_v57  ;;  %vm81_vm11 = vcmp.ge.f32.partialorder %v65_v58, 0.0  ;;  %v97_v3 = vmul.f32 0.2, %v65_v58  ;;  %v112_v5 = vsel %vm80_vm10, %v64_v49, %v96_v61 }
  0x13   :  { %127 = vst [vmem:[%s301_s3 + $0x48] sm:$0xff] %v111_v0  ;;  %v67_v7 = vadd.f32 %v171_v2, %v47_v63  ;;  %v49_v8 = vmul.f32 %v166_v1, %v29_v59  ;;  %v68_v10 = vadd.f32 %v171_v2, %v48_v4  ;;  %vm82_vm12 = vcmp.ge.f32.partialorder %v66_v6, 0.0 }
  0x14   :  { %128 = vst [vmem:[%s301_s3 + $0x50] sm:$0xff] %v112_v5  ;;  %v113_v9 = vsel %vm81_vm11, %v65_v58, %v97_v3  ;;  %v98_v11 = vmul.f32 0.2, %v66_v6 }
  0x15   :  { %129 = vst [vmem:[%s301_s3 + $0x58] sm:$0xff] %v113_v9  ;;  %vm83_vm13 = vcmp.ge.f32.partialorder %v67_v7, 0.0  ;;  %v69_v12 = vadd.f32 %v171_v2, %v49_v8  ;;  %v99_v13 = vmul.f32 0.2, %v67_v7  ;;  %vm84_vm14 = vcmp.ge.f32.partialorder %v68_v10, 0.0 }
  0x16   :  { %v100_v14 = vmul.f32 0.2, %v68_v10  ;;  %v114_v1 = vsel %vm82_vm12, %v66_v6, %v98_v11 }
  0x17   :  { %vm85_vm15 = vcmp.ge.f32.partialorder %v69_v12, 0.0  ;;  %v101_v15 = vmul.f32 0.2, %v69_v12  ;;  %130 = vst [vmem:[%s301_s3 + $0x60] sm:$0xff] %v114_v1  ;;  %v115_v16 = vsel %vm83_vm13, %v67_v7, %v99_v13 }
  0x18   :  { %v116_v17 = vsel %vm84_vm14, %v68_v10, %v100_v14  ;;  %131 = vst [vmem:[%s301_s3 + $0x68] sm:$0xff] %v115_v16 }
  0x19   :  { %v117_v18 = vsel %vm85_vm15, %v69_v12, %v101_v15  ;;  %132 = vst [vmem:[%s301_s3 + $0x70] sm:$0xff] %v116_v17 }
  0x1a   :  { %133 = vst [vmem:[%s301_s3 + $0x78] sm:$0xff] %v117_v18 }

// kernel: discriminator_forward.14
= control target key start
LH: loop header
LB: loop body
LE: loop exit
PB: predicated region body
PF: predicated region fallthrough
CT: control target
= control target key end

     0   :  { %s106_s0 = inlined_call_operand.vmem [shape: f32[32,128], index: 0, kind: input, shape index: {}]   ;;  %s107_s1 = inlined_call_operand.vmem [shape: f32[1,128], index: 1, kind: input, shape index: {}]   ;;  %s108_s2 = inlined_call_operand.vmem [shape: f32[1,128], index: 2, kind: input, shape index: {}]   ;;  %s109_s3 = inlined_call_operand.vmem [shape: f32[32,128], index: 3, kind: output, shape index: {}]  }
   0x1   :  { %v14_v0 = vld [vmem:[%s106_s0] sm:$0xff]  ;;  %v15_v3 = vld [vmem:[%s106_s0 + $0x8] sm:$0xff]  ;;  %v16_v6 = vld [vmem:[%s106_s0 + $0x10] sm:$0xff] }
   0x2   :  { %v54_v1 = vld [vmem:[%s107_s1] ss:$0 sm:$0xff]  ;;  %v17_v7 = vld [vmem:[%s106_s0 + $0x18] sm:$0xff] }
   0x3   :  { %v55_v2 = vld [vmem:[%s108_s2] ss:$0 sm:$0xff]  ;;  %v22_v4 = vmul.f32 %v54_v1, %v14_v0  ;;  %v23_v5 = vmul.f32 %v54_v1, %v15_v3  ;;  %v24_v8 = vmul.f32 %v54_v1, %v16_v6  ;;  %v25_v9 = vmul.f32 %v54_v1, %v17_v7 }
   0x5   :  { %v30_v10 = vadd.f32 %v55_v2, %v22_v4  ;;  %v31_v11 = vadd.f32 %v55_v2, %v23_v5  ;;  %v32_v12 = vadd.f32 %v55_v2, %v24_v8  ;;  %v33_v13 = vadd.f32 %v55_v2, %v25_v9 }
   0x7   :  { %vm34_vm0 = vcmp.ge.f32.partialorder %v30_v10, 0.0  ;;  %v38_v14 = vmul.f32 0.2, %v30_v10  ;;  %vm35_vm1 = vcmp.ge.f32.partialorder %v31_v11, 0.0  ;;  %v39_v15 = vmul.f32 0.2, %v31_v11 }
   0x8   :  { %vm36_vm2 = vcmp.ge.f32.partialorder %v32_v12, 0.0  ;;  %v40_v16 = vmul.f32 0.2, %v32_v12  ;;  %vm37_vm3 = vcmp.ge.f32.partialorder %v33_v13, 0.0  ;;  %v41_v17 = vmul.f32 0.2, %v33_v13 }
   0x9   :  { %v42_v18 = vsel %vm34_vm0, %v30_v10, %v38_v14  ;;  %v43_v19 = vsel %vm35_vm1, %v31_v11, %v39_v15 }
   0xa   :  { %46 = vst [vmem:[%s109_s3] sm:$0xff] %v42_v18  ;;  %v44_v20 = vsel %vm36_vm2, %v32_v12, %v40_v16  ;;  %v45_v21 = vsel %vm37_vm3, %v33_v13, %v41_v17 }
   0xb   :  { %47 = vst [vmem:[%s109_s3 + $0x8] sm:$0xff] %v43_v19 }
   0xc   :  { %48 = vst [vmem:[%s109_s3 + $0x10] sm:$0xff] %v44_v20 }
   0xd   :  { %49 = vst [vmem:[%s109_s3 + $0x18] sm:$0xff] %v45_v21 }

// kernel: discriminator_forward.13
= control target key start
LH: loop header
LB: loop body
LE: loop exit
PB: predicated region body
PF: predicated region fallthrough
CT: control target
= control target key end

     0   :  { %s869_s1 = inlined_call_operand.vmem [shape: bf16[512,128], index: 1, kind: input, shape index: {}]   ;;  %s870_s0 = inlined_call_operand.vmem [shape: bf16[32,512], index: 0, kind: input, shape index: {}]   ;;  %s871_s2 = inlined_call_operand.vmem [shape: f32[1,128], index: 2, kind: input, shape index: {}]   ;;  %s872_s3 = inlined_call_operand.vmem [shape: f32[32,128], index: 3, kind: output, shape index: {0}]   ;;  %s873_s4 = inlined_call_operand.vmem [shape: f32[1,1,128], index: 4, kind: output, shape index: {1}]   ;;  %s874_s5 = inlined_call_operand.vmem [shape: f32[1,1,128], index: 5, kind: output, shape index: {2}]  }
   0x1   :  { %v647_v0 = vld [vmem:[%s869_s1 + $0x38] sm:$0xff]  ;;  %v646_v4 = vld [vmem:[%s869_s1 + $0x30] sm:$0xff]  ;;  %v645_v8 = vld [vmem:[%s869_s1 + $0x28] sm:$0xff] }
   0x2   :  { %v655_v1 = vld [vmem:[%s869_s1 + $0x78] sm:$0xff]  ;;  %333 = vmatpush.bf16.msra.mxu0 %v647_v0  ;;  %v654_v5 = vld [vmem:[%s869_s1 + $0x70] sm:$0xff]  ;;  %v653_v9 = vld [vmem:[%s869_s1 + $0x68] sm:$0xff] }
   0x3   :  { %v663_v2 = vld [vmem:[%s869_s1 + $0xb8] sm:$0xff]  ;;  %352 = vmatpush.bf16.msra.mxu1 %v655_v1  ;;  %v662_v6 = vld [vmem:[%s869_s1 + $0xb0] sm:$0xff]  ;;  %v661_v10 = vld [vmem:[%s869_s1 + $0xa8] sm:$0xff] }
   0x4   :  { %v671_v3 = vld [vmem:[%s869_s1 + $0xf8] sm:$0xff]  ;;  %371 = vmatpush.bf16.msra.mxu2 %v663_v2  ;;  %v670_v7 = vld [vmem:[%s869_s1 + $0xf0] sm:$0xff]  ;;  %v669_v11 = vld [vmem:[%s869_s1 + $0xe8] sm:$0xff] }
   0x5   :  { %390 = vmatpush.bf16.msra.mxu3 %v671_v3  ;;  %v644_v12 = vld [vmem:[%s869_s1 + $0x20] sm:$0xff]  ;;  %v643_v16 = vld [vmem:[%s869_s1 + $0x18] sm:$0xff]  ;;  %v642_v20 = vld [vmem:[%s869_s1 + $0x10] sm:$0xff] }
   0x6   :  { %334 = vmatpush.bf16.msra.mxu0 %v646_v4  ;;  %v652_v13 = vld [vmem:[%s869_s1 + $0x60] sm:$0xff]  ;;  %v651_v17 = vld [vmem:[%s869_s1 + $0x58] sm:$0xff]  ;;  %v650_v21 = vld [vmem:[%s869_s1 + $0x50] sm:$0xff] }
   0x7   :  { %353 = vmatpush.bf16.msra.mxu1 %v654_v5  ;;  %v660_v14 = vld [vmem:[%s869_s1 + $0xa0] sm:$0xff]  ;;  %v659_v18 = vld [vmem:[%s869_s1 + $0x98] sm:$0xff]  ;;  %v658_v22 = vld [vmem:[%s869_s1 + $0x90] sm:$0xff] }
   0x8   :  { %372 = vmatpush.bf16.msra.mxu2 %v662_v6  ;;  %v668_v15 = vld [vmem:[%s869_s1 + $0xe0] sm:$0xff]  ;;  %v667_v19 = vld [vmem:[%s869_s1 + $0xd8] sm:$0xff]  ;;  %v666_v23 = vld [vmem:[%s869_s1 + $0xd0] sm:$0xff] }
   0x9   :  { %391 = vmatpush.bf16.msra.mxu3 %v670_v7  ;;  %v641_v24 = vld [vmem:[%s869_s1 + $0x8] sm:$0xff]  ;;  %v640_v28 = vld [vmem:[%s869_s1] sm:$0xff]  ;;  %v634_v33 = vld [vmem:[%s870_s0 + $0xc] sm:$0xf0] }
   0xa   :  { %335 = vmatpush.bf16.msra.mxu0 %v645_v8  ;;  %v649_v25 = vld [vmem:[%s869_s1 + $0x48] sm:$0xff]  ;;  %v648_v29 = vld [vmem:[%s869_s1 + $0x40] sm:$0xff]  ;;  %v476_v35 = vld [vmem:[%s870_s0 + $0x10] sm:$0xf0] }
   0xb   :  { %354 = vmatpush.bf16.msra.mxu1 %v653_v9  ;;  %v657_v26 = vld [vmem:[%s869_s1 + $0x88] sm:$0xff]  ;;  %v656_v30 = vld [vmem:[%s869_s1 + $0x80] sm:$0xff]  ;;  %v635_v37 = vld [vmem:[%s870_s0 + $0x14] sm:$0xf0] }
   0xc   :  { %373 = vmatpush.bf16.msra.mxu2 %v661_v10  ;;  %v665_v27 = vld [vmem:[%s869_s1 + $0xc8] sm:$0xff]  ;;  %v664_v31 = vld [vmem:[%s869_s1 + $0xc0] sm:$0xff]  ;;  %v484_v39 = vld [vmem:[%s870_s0 + $0x18] sm:$0xf0] }
   0xd   :  { %392 = vmatpush.bf16.msra.mxu3 %v669_v11  ;;  %v474_v32 = vld [vmem:[%s870_s0] sm:$0xf]  ;;  %v632_v34 = vld [vmem:[%s870_s0 + $0x4] sm:$0xf]  ;;  %v482_v36 = vld [vmem:[%s870_s0 + $0x8] sm:$0xf] }
   0xe   :  { %336 = vmatpush.bf16.msra.mxu0 %v644_v12  ;;  %v633_v38 = vld [vmem:[%s870_s0 + $0xc] sm:$0xf]  ;;  %v475_v40 = vor.u32 %v634_v33, %v474_v32  ;;  %v479_v41 = vor.u32 %v632_v34, %v476_v35  ;;  %v483_v42 = vor.u32 %v635_v37, %v482_v36  ;;  %v490_v44 = vld [vmem:[%s870_s0 + $0x20] sm:$0xf]  ;;  %v638_v45 = vld [vmem:[%s870_s0 + $0x2c] sm:$0xf0] }
   0xf   :  { %355 = vmatpush.bf16.msra.mxu1 %v652_v13  ;;  %v487_v43 = vor.u32 %v633_v38, %v484_v39  ;;  %v636_v46 = vld [vmem:[%s870_s0 + $0x24] sm:$0xf]  ;;  %v492_v47 = vld [vmem:[%s870_s0 + $0x30] sm:$0xf0]  ;;  %v498_v48 = vld [vmem:[%s870_s0 + $0x28] sm:$0xf]  ;;  %v491_v52 = vor.u32 %v638_v45, %v490_v44 }
  0x10   :  { %374 = vmatpush.bf16.msra.mxu2 %v660_v14  ;;  %v639_v49 = vld [vmem:[%s870_s0 + $0x34] sm:$0xf0]  ;;  %v637_v50 = vld [vmem:[%s870_s0 + $0x2c] sm:$0xf]  ;;  %v500_v51 = vld [vmem:[%s870_s0 + $0x38] sm:$0xf0]  ;;  %v495_v53 = vor.u32 %v636_v46, %v492_v47 }
  0x11   :  { %393 = vmatpush.bf16.msra.mxu3 %v668_v15  ;;  %v499_v54 = vor.u32 %v639_v49, %v498_v48  ;;  %v503_v55 = vor.u32 %v637_v50, %v500_v51  ;;  %v673_v1 = vld [vmem:[%s871_s2] ss:$0 sm:$0xff] }
  0x12   :  { %337 = vmatpush.bf16.msra.mxu0 %v643_v16 }
  0x13   :  { %356 = vmatpush.bf16.msra.mxu1 %v651_v17 }
  0x14   :  { %375 = vmatpush.bf16.msra.mxu2 %v659_v18 }
  0x15   :  { %394 = vmatpush.bf16.msra.mxu3 %v667_v19 }
  0x16   :  { %338 = vmatpush.bf16.msra.mxu0 %v642_v20 }
  0x17   :  { %357 = vmatpush.bf16.msra.mxu1 %v650_v21 }
  0x18   :  { %376 = vmatpush.bf16.msra.mxu2 %v658_v22 }
  0x19   :  { %395 = vmatpush.bf16.msra.mxu3 %v666_v23 }
  0x1a   :  { %339 = vmatpush.bf16.msra.mxu0 %v641_v24 }
  0x1b   :  { %358 = vmatpush.bf16.msra.mxu1 %v649_v25 }
  0x1c   :  { %377 = vmatpush.bf16.msra.mxu2 %v657_v26 }
  0x1d   :  { %396 = vmatpush.bf16.msra.mxu3 %v665_v27 }
  0x1e   :  { %340 = vmatpush.bf16.msra.mxu0 %v640_v28 }
  0x1f   :  { %359 = vmatpush.bf16.msra.mxu1 %v648_v29 }
  0x20   :  { %378 = vmatpush.bf16.msra.mxu2 %v656_v30 }
  0x21   :  { %397 = vmatpush.bf16.msra.mxu3 %v664_v31  ;;  %341 = vmatmul.bf16.vlgmr.msra.gmra.mxu0 %v475_v40 }
  0x22   :  { %360 = vmatmul.bf16.vlgmr.msra.gmra.mxu1 %v479_v41 }
  0x23   :  { %379 = vmatmul.bf16.vlgmr.msra.gmra.mxu2 %v483_v42 }
  0x24   :  { %398 = vmatmul.bf16.vlgmr.msra.gmra.mxu3 %v487_v43 }
  0x31   :  { %346 = vmatmul.bf16.gmra.mxu0 %v491_v52 }
  0x32   :  { %365 = vmatmul.bf16.gmra.mxu1 %v495_v53 }
  0x33   :  { %384 = vmatmul.bf16.gmra.mxu2 %v499_v54 }
  0x34   :  { %403 = vmatmul.bf16.gmra.mxu3 %v503_v55 }
  0x9e   :  { %v342_v56 = vpop.f32.mrf.mxu0 }
  0x9f   :  { %v361_v57 = vpop.f32.mrf.mxu1 }
  0xa0   :  { %v362_v58 = vadd.f32 %v361_v57, %v342_v56 }
  0xa6   :  { %v380_v59 = vpop.f32.mrf.mxu2  ;;  %v344_v62 = vpop.f32.mrf.mxu0 }
  0xa7   :  { %v399_v60 = vpop.f32.mrf.mxu3  ;;  %v381_v61 = vadd.f32 %v380_v59, %v362_v58  ;;  %v363_v63 = vpop.f32.mrf.mxu1 }
  0xa8   :  { %v364_v3 = vadd.f32 %v363_v63, %v344_v62 }
  0xa9   :  { %v400_v0 = vadd.f32 %v399_v60, %v381_v61 }
  0xab   :  { %v428_v2 = vadd.f32 %v673_v1, %v400_v0 }
  0xad   :  { %432 = vst [vmem:[%s872_s3] sm:$0xff] %v428_v2  ;;  %v446_v25 = vmul.f32 %v428_v2, %v428_v2 }
  0xae   :  { %v382_v4 = vpop.f32.mrf.mxu2  ;;  %v347_v7 = vpop.f32.mrf.mxu0 }
  0xaf   :  { %v401_v5 = vpop.f32.mrf.mxu3  ;;  %v383_v6 = vadd.f32 %v382_v4, %v364_v3  ;;  %v366_v8 = vpop.f32.mrf.mxu1 }
  0xb0   :  { %v367_v10 = vadd.f32 %v366_v8, %v347_v7 }
  0xb1   :  { %v402_v9 = vadd.f32 %v401_v5, %v383_v6 }
  0xb3   :  { %v429_v11 = vadd.f32 %v673_v1, %v402_v9 }
  0xb5   :  { %433 = vst [vmem:[%s872_s3 + $0x8] sm:$0xff] %v429_v11  ;;  %v447_v23 = vmul.f32 %v429_v11, %v429_v11  ;;  %v436_v26 = vadd.f32 %v429_v11, %v428_v2 }
  0xb6   :  { %v385_v12 = vpop.f32.mrf.mxu2  ;;  %v349_v16 = vpop.f32.mrf.mxu0 }
  0xb7   :  { %v404_v13 = vpop.f32.mrf.mxu3  ;;  %v386_v14 = vadd.f32 %v385_v12, %v367_v10  ;;  %v368_v17 = vpop.f32.mrf.mxu1  ;;  %v450_v28 = vadd.f32 %v447_v23, %v446_v25 }
  0xb8   :  { %v369_v19 = vadd.f32 %v368_v17, %v349_v16 }
  0xb9   :  { %v405_v15 = vadd.f32 %v404_v13, %v386_v14 }
  0xbb   :  { %v430_v18 = vadd.f32 %v673_v1, %v405_v15 }
  0xbd   :  { %434 = vst [vmem:[%s872_s3 + $0x10] sm:$0xff] %v430_v18  ;;  %v448_v27 = vmul.f32 %v430_v18, %v430_v18  ;;  %v437_v29 = vadd.f32 %v436_v26, %v430_v18 }
  0xbe   :  { %v387_v20 = vpop.f32.mrf.mxu2 }
  0xbf   :  { %v388_v21 = vadd.f32 %v387_v20, %v369_v19  ;;  %v406_v22 = vpop.f32.mrf.mxu3  ;;  %v451_v31 = vadd.f32 %v450_v28, %v448_v27 }
  0xc1   :  { %v407_v24 = vadd.f32 %v406_v22, %v388_v21 }
  0xc3   :  { %v431_v30 = vadd.f32 %v673_v1, %v407_v24 }
  0xc5   :  { %435 = vst [vmem:[%s872_s3 + $0x18] sm:$0xff] %v431_v30  ;;  %v438_v32 = vadd.f32 %v437_v29, %v431_v30  ;;  %v449_v33 = vmul.f32 %v431_v30, %v431_v30 }
  0xc7   :  { %v439_v34 = vrot.slane %v438_v32, 4  ;;  %v452_v35 = vadd.f32 %v451_v31, %v449_v33 }
  0xc9   :  { %v440_v36 = vadd.f32 %v439_v34, %v438_v32  ;;  %v453_v37 = vrot.slane %v452_v35, 4 }
  0xcb   :  { %v441_v38 = vrot.slane %v440_v36, 2  ;;  %v454_v39 = vadd.f32 %v453_v37, %v452_v35 }
  0xcd   :  { %v442_v40 = vadd.f32 %v441_v38, %v440_v36  ;;  %v455_v41 = vrot.slane %v454_v39, 2 }
  0xcf   :  { %v443_v42 = vrot.slane %v442_v40, 1  ;;  %v456_v43 = vadd.f32 %v455_v41, %v454_v39 }
  0xd1   :  { %v444_v44 = vadd.f32 %v443_v42, %v442_v40  ;;  %v457_v45 = vrot.slane %v456_v43, 1 }
  0xd3   :  { %445 = vst [vmem:[%s873_s4] sm:$0x1] %v444_v44  ;;  %v458_v46 = vadd.f32 %v457_v45, %v456_v43 }
  0xd5   :  { %459 = vst [vmem:[%s874_s5] sm:$0x1] %v458_v46 }

// kernel: discriminator_forward.15
= control target key start
LH: loop header
LB: loop body
LE: loop exit
PB: predicated region body
PF: predicated region fallthrough
CT: control target
= control target key end

     0   :  { %s1096_s12 = smov 0   ;;  %s1098_s13 = smov 0   ;;  %s1257_s0 = inlined_call_operand.vmem [shape: bf16[24,1024], index: 0, kind: input, shape index: {}]   ;;  %s1258_s1 = inlined_call_operand.vmem [shape: bf16[1024,128], index: 1, kind: input, shape index: {}]   ;;  %s1259_s2 = inlined_call_operand.vmem [shape: f32[1,128], index: 2, kind: input, shape index: {}]   ;;  %s1260_s3 = inlined_call_operand.vmem [shape: f32[24,128], index: 3, kind: output, shape index: {}]  }
   0x1   :  { %s1100_s14 = smov 0   ;;  %s1102_s15 = smov 0  }
   0x2   :  { %s1104_s16 = smov 0  }
   0x3 LB: > { %s25_s17 = sadd.s32 1, %s1069_s15  ;;  %p48_p1 = scmp.ne.s32.totalorder %s1061_s13, %s1057_s12  ;;  %s1073_s16 = sphi %s1104_s16, %s13_s16   ;;  %s1069_s15 = sphi %s1102_s15, %s1264_s15   ;;  %s1065_s14 = sphi %s1100_s14, %s1263_s14   ;;  %s1061_s13 = sphi %s1098_s13, %s1262_s13   ;;  %s1057_s12 = sphi %s1096_s12, %s1261_s12  }
   0x4   : > { %p26_p0 = scmp.ge.s32.totalorder %s25_s17, 2  ;;  %p49_p2 = scmp.eq.s32.totalorder %s1073_s16, 0 }
   0x5   : > { %s41_s19 = sadd.s32 1, %s1061_s13  ;;  %p798_p5 = scmp.ge.s32.totalorder %s1073_s16, 2 }
   0x6   : > { %s1266_s17 = smov (%p26_p0, %s25_s17), 0  ;;  %p50_p3 = por %p49_p2, %p48_p1 }
   0x7   : > { %s37_s18 = ssub.s32 %s1069_s15, %s1266_s17  ;;  %162 = sbr.rel (%p798_p5) target bundleno = 22 (0x16), region = 20 }
   0x8   : > { %p39_p4 = scmp.eq.s32.totalorder %s37_s18, 0 }
   0xa   : > { %s1131_s20 = scalar_select %p39_p4, %s1061_s13, %s41_s19  }
   0xc   : > { %165 = sbr.rel (!%p50_p3) target bundleno = 22 (0x16), region = 24  ;;  %s167_s21 = sand.u32 (%p50_p3), 1, %s1061_s13  }
   0xd   : > { %s954_s22 = sshll.u32 (%p50_p3), %s1069_s15, 4  ;;  %s991_s23 = smul.u32 (%p50_p3), 48, %s167_s21 }
   0xe   : > { %s175_s26 = scalar_lea.vmem (%p50_p3), %s1257_s0, %s954_s22 }
   0xf   : > { %v188_v0 = vld [vmem:[%s175_s26] sm:$0xff] (%p50_p3)  ;;  %v190_v1 = vld [vmem:[%s175_s26 + $0x8] sm:$0xff] (%p50_p3)  ;;  %s169_s27 = scalar_lea.vmem (%p50_p3), [#allocation2], %s991_s23 }
  0x10   : > { %v192_v2 = vld [vmem:[%s175_s26 + $0x20] sm:$0xff] (%p50_p3)  ;;  %189 = vst [vmem:[%s169_s27] sm:$0xff] (%p50_p3), %v188_v0  ;;  %v194_v3 = vld [vmem:[%s175_s26 + $0x28] sm:$0xff] (%p50_p3) }
  0x11   : > { %191 = vst [vmem:[%s169_s27 + $0x8] sm:$0xff] %v190_v1  ;;  %v196_v4 = vld [vmem:[%s175_s26 + $0x40] sm:$0xff]  ;;  %v198_v5 = vld [vmem:[%s175_s26 + $0x48] sm:$0xff] }
  0x12   : > { %193 = vst [vmem:[%s169_s27 + $0x10] sm:$0xff] %v192_v2 }
  0x13   : > { %195 = vst [vmem:[%s169_s27 + $0x18] sm:$0xff] %v194_v3 }
  0x14   : > { %197 = vst [vmem:[%s169_s27 + $0x20] sm:$0xff] %v196_v4 }
  0x15   : > { %199 = vst [vmem:[%s169_s27 + $0x28] sm:$0xff] %v198_v5 }
  0x16 PF: > { %p801_p6 = scmp.ge.s32.totalorder %s1073_s16, 1  ;;  %p216_p7 = scmp.lt.s32.totalorder %s1073_s16, 3 }
  0x18   : > { %p217_p8 = pnand %p801_p6, %p216_p7 }
  0x19   : > { %s223_s28 = sand.u32 (!%p217_p8), 1, %s1057_s12   ;;  %s802_s29 = sshll.u32 (!%p217_p8), %s1065_s14, 6 }
  0x1a   : > { %220 = sbr.rel (%p217_p8) target bundleno = 239 (0xef), region = 51  ;;  %p263_p9 = scmp.lt.s32.totalorder (!%p217_p8), %s802_s29, 127 }
  0x1b   : > { %s992_s30 = smul.u32 (!%p217_p8), 48, %s223_s28  ;;  %p804_p10 = scmp.ne.s32.totalorder (!%p217_p8), %s1065_s14, 0 }
  0x1d   : > { %s1148_s8 = scalar_lea.vmem (!%p217_p8), [#allocation2], %s992_s30 }
  0x1f   : > { %s1268_s29 = smov (!%p263_p9, %s802_s29), 127  ;;  %286 = sbr.rel (%p804_p10) target bundleno = 40 (0x28), region = 59 }
  0x20   : > { %s803_s4 = sshll.u32 %s1268_s29, 2 }
  0x21   : > { %s1146_s7 = scalar_lea.vmem %s1258_s1, %s803_s4 }
  0x24   : > { %v1075_v6 = vmov 0.0  }
  0x25   : > { %287 = vst [vmem:[%s1260_s3] sm:$0xff] %v1075_v6 }
  0x26   : > { %288 = vst [vmem:[%s1260_s3 + $0x8] sm:$0xff] %v1075_v6 }
  0x27   : > { %289 = vst [vmem:[%s1260_s3 + $0x10] sm:$0xff] %v1075_v6 }
  0x28 PF: > { %v966_v7 = vld [vmem:[%s1146_s7 + $0x38] sm:$0xff]  ;;  %v965_v11 = vld [vmem:[%s1146_s7 + $0x30] sm:$0xff]  ;;  %v964_v15 = vld [vmem:[%s1146_s7 + $0x28] sm:$0xff]  ;;  %p949_p11 = scmp.ne.s32.totalorder %s1065_s14, 1 }
  0x29   : > { %v974_v8 = vld [vmem:[%s1146_s7 + $0x78] sm:$0xff]  ;;  %589 = vmatpush.bf16.msra.mxu0 %v966_v7  ;;  %v973_v12 = vld [vmem:[%s1146_s7 + $0x70] sm:$0xff]  ;;  %v972_v16 = vld [vmem:[%s1146_s7 + $0x68] sm:$0xff] }
  0x2a   : > { %v982_v9 = vld [vmem:[%s1146_s7 + $0xb8] sm:$0xff]  ;;  %607 = vmatpush.bf16.msra.mxu1 %v974_v8  ;;  %v981_v13 = vld [vmem:[%s1146_s7 + $0xb0] sm:$0xff]  ;;  %v980_v17 = vld [vmem:[%s1146_s7 + $0xa8] sm:$0xff] }
  0x2b   : > { %v990_v10 = vld [vmem:[%s1146_s7 + $0xf8] sm:$0xff]  ;;  %625 = vmatpush.bf16.msra.mxu2 %v982_v9  ;;  %v989_v14 = vld [vmem:[%s1146_s7 + $0xf0] sm:$0xff]  ;;  %v988_v18 = vld [vmem:[%s1146_s7 + $0xe8] sm:$0xff] }
  0x2c   : > { %643 = vmatpush.bf16.msra.mxu3 %v990_v10  ;;  %v963_v19 = vld [vmem:[%s1146_s7 + $0x20] sm:$0xff]  ;;  %v962_v23 = vld [vmem:[%s1146_s7 + $0x18] sm:$0xff]  ;;  %v961_v27 = vld [vmem:[%s1146_s7 + $0x10] sm:$0xff] }
  0x2d   : > { %590 = vmatpush.bf16.msra.mxu0 %v965_v11  ;;  %v971_v20 = vld [vmem:[%s1146_s7 + $0x60] sm:$0xff]  ;;  %v970_v24 = vld [vmem:[%s1146_s7 + $0x58] sm:$0xff]  ;;  %v969_v28 = vld [vmem:[%s1146_s7 + $0x50] sm:$0xff] }
  0x2e   : > { %608 = vmatpush.bf16.msra.mxu1 %v973_v12  ;;  %v979_v21 = vld [vmem:[%s1146_s7 + $0xa0] sm:$0xff]  ;;  %v978_v25 = vld [vmem:[%s1146_s7 + $0x98] sm:$0xff]  ;;  %v977_v29 = vld [vmem:[%s1146_s7 + $0x90] sm:$0xff] }
  0x2f   : > { %626 = vmatpush.bf16.msra.mxu2 %v981_v13  ;;  %v987_v22 = vld [vmem:[%s1146_s7 + $0xe0] sm:$0xff]  ;;  %v986_v26 = vld [vmem:[%s1146_s7 + $0xd8] sm:$0xff]  ;;  %v985_v30 = vld [vmem:[%s1146_s7 + $0xd0] sm:$0xff] }
  0x30   : > { %644 = vmatpush.bf16.msra.mxu3 %v989_v14  ;;  %v960_v31 = vld [vmem:[%s1146_s7 + $0x8] sm:$0xff]  ;;  %v959_v35 = vld [vmem:[%s1146_s7] sm:$0xff] }
  0x31   : > { %591 = vmatpush.bf16.msra.mxu0 %v964_v15  ;;  %v968_v32 = vld [vmem:[%s1146_s7 + $0x48] sm:$0xff]  ;;  %v967_v36 = vld [vmem:[%s1146_s7 + $0x40] sm:$0xff] }
  0x32   : > { %609 = vmatpush.bf16.msra.mxu1 %v972_v16  ;;  %v976_v33 = vld [vmem:[%s1146_s7 + $0x88] sm:$0xff]  ;;  %v975_v37 = vld [vmem:[%s1146_s7 + $0x80] sm:$0xff] }
  0x33   : > { %627 = vmatpush.bf16.msra.mxu2 %v980_v17  ;;  %v984_v34 = vld [vmem:[%s1146_s7 + $0xc8] sm:$0xff]  ;;  %v983_v38 = vld [vmem:[%s1146_s7 + $0xc0] sm:$0xff] }
  0x34   : > { %645 = vmatpush.bf16.msra.mxu3 %v988_v18  ;;  %v807_v39 = vld [vmem:[%s1148_s8] sm:$0xf]  ;;  %v957_v40 = vld [vmem:[%s1148_s8 + $0xc] sm:$0xf0]  ;;  %v955_v41 = vld [vmem:[%s1148_s8 + $0x4] sm:$0xf] }
  0x35   : > { %592 = vmatpush.bf16.msra.mxu0 %v963_v19  ;;  %v809_v42 = vld [vmem:[%s1148_s8 + $0x10] sm:$0xf0]  ;;  %v815_v43 = vld [vmem:[%s1148_s8 + $0x8] sm:$0xf]  ;;  %v958_v44 = vld [vmem:[%s1148_s8 + $0x14] sm:$0xf0]  ;;  %v808_v47 = vor.u32 %v957_v40, %v807_v39 }
  0x36   : > { %610 = vmatpush.bf16.msra.mxu1 %v971_v20  ;;  %v956_v45 = vld [vmem:[%s1148_s8 + $0xc] sm:$0xf]  ;;  %v817_v46 = vld [vmem:[%s1148_s8 + $0x18] sm:$0xf0]  ;;  %v812_v48 = vor.u32 %v955_v41, %v809_v42  ;;  %v816_v49 = vor.u32 %v958_v44, %v815_v43  ;;  %v297_v51 = vld [vmem:[%s1148_s8 + $0x20] sm:$0xff] }
  0x37   : > { %628 = vmatpush.bf16.msra.mxu2 %v979_v21  ;;  %v820_v50 = vor.u32 %v956_v45, %v817_v46  ;;  %v298_v52 = vld [vmem:[%s1148_s8 + $0x28] sm:$0xff]  ;;  %v377_v53 = vunpack.c.l.b16 %v297_v51  ;;  %v378_v54 = vunpack.c.h.b16 %v297_v51  ;;  %v290_v5 = vld [vmem:[%s1260_s3] sm:$0xff] }
  0x38   : > { %646 = vmatpush.bf16.msra.mxu3 %v987_v22  ;;  %v379_v55 = vunpack.c.l.b16 %v298_v52  ;;  %v380_v56 = vunpack.c.h.b16 %v298_v52  ;;  %v291_v14 = vld [vmem:[%s1260_s3 + $0x8] sm:$0xff] }
  0x39   : > { %593 = vmatpush.bf16.msra.mxu0 %v962_v23  ;;  %v385_v57 = vpack.c.b16 %v377_v53, %v377_v53  ;;  %v386_v58 = vpack.c.b16 %v378_v54, %v378_v54  ;;  %v292_v23 = vld [vmem:[%s1260_s3 + $0x10] sm:$0xff] }
  0x3a   : > { %611 = vmatpush.bf16.msra.mxu1 %v970_v24  ;;  %v387_v59 = vpack.c.b16 %v379_v55, %v379_v55  ;;  %v388_v60 = vpack.c.b16 %v380_v56, %v380_v56 }
  0x3b   : > { %629 = vmatpush.bf16.msra.mxu2 %v978_v25 }
  0x3c   : > { %647 = vmatpush.bf16.msra.mxu3 %v986_v26 }
  0x3d   : > { %594 = vmatpush.bf16.msra.mxu0 %v961_v27 }
  0x3e   : > { %612 = vmatpush.bf16.msra.mxu1 %v969_v28 }
  0x3f   : > { %630 = vmatpush.bf16.msra.mxu2 %v977_v29 }
  0x40   : > { %648 = vmatpush.bf16.msra.mxu3 %v985_v30 }
  0x41   : > { %595 = vmatpush.bf16.msra.mxu0 %v960_v31 }
  0x42   : > { %613 = vmatpush.bf16.msra.mxu1 %v968_v32 }
  0x43   : > { %631 = vmatpush.bf16.msra.mxu2 %v976_v33 }
  0x44   : > { %649 = vmatpush.bf16.msra.mxu3 %v984_v34 }
  0x45   : > { %596 = vmatpush.bf16.msra.mxu0 %v959_v35 }
  0x46   : > { %614 = vmatpush.bf16.msra.mxu1 %v967_v36 }
  0x47   : > { %632 = vmatpush.bf16.msra.mxu2 %v975_v37 }
  0x48   : > { %650 = vmatpush.bf16.msra.mxu3 %v983_v38  ;;  %597 = vmatmul.bf16.vlgmr.msra.gmra.mxu0 %v808_v47 }
  0x49   : > { %615 = vmatmul.bf16.vlgmr.msra.gmra.mxu1 %v812_v48 }
  0x4a   : > { %633 = vmatmul.bf16.vlgmr.msra.gmra.mxu2 %v816_v49 }
  0x4b   : > { %651 = vmatmul.bf16.vlgmr.msra.gmra.mxu3 %v820_v50 }
  0x58   : > { %602 = vmatmul.bf16.gmra.mxu0 %v385_v57 }
  0x59   : > { %620 = vmatmul.bf16.gmra.mxu1 %v386_v58 }
  0x5a   : > { %638 = vmatmul.bf16.gmra.mxu2 %v387_v59 }
  0x5b   : > { %656 = vmatmul.bf16.gmra.mxu3 %v388_v60 }
  0xc5   : > { %v598_v61 = vpop.f32.mrf.mxu0 }
  0xc6   : > { %v616_v62 = vpop.f32.mrf.mxu1 }
  0xc7   : > { %v617_v63 = vadd.f32 %v616_v62, %v598_v61 }
  0xcd   : > { %v634_v0 = vpop.f32.mrf.mxu2  ;;  %v600_v3 = vpop.f32.mrf.mxu0 }
  0xce   : > { %v652_v1 = vpop.f32.mrf.mxu3  ;;  %v635_v2 = vadd.f32 %v634_v0, %v617_v63  ;;  %v618_v4 = vpop.f32.mrf.mxu1 }
  0xcf   : > { %v619_v8 = vadd.f32 %v618_v4, %v600_v3 }
  0xd0   : > { %v653_v6 = vadd.f32 %v652_v1, %v635_v2 }
  0xd2   : > { %v661_v7 = vadd.f32 %v653_v6, %v290_v5 }
  0xd4   : > { %664 = vst [vmem:[%s1260_s3] sm:$0xff] %v661_v7 }
  0xd5   : > { %v636_v9 = vpop.f32.mrf.mxu2  ;;  %v603_v12 = vpop.f32.mrf.mxu0 }
  0xd6   : > { %v654_v10 = vpop.f32.mrf.mxu3  ;;  %v637_v11 = vadd.f32 %v636_v9, %v619_v8  ;;  %v621_v13 = vpop.f32.mrf.mxu1 }
  0xd7   : > { %v622_v17 = vadd.f32 %v621_v13, %v603_v12 }
  0xd8   : > { %v655_v15 = vadd.f32 %v654_v10, %v637_v11 }
  0xda   : > { %v662_v16 = vadd.f32 %v655_v15, %v291_v14 }
  0xdc   : > { %665 = vst [vmem:[%s1260_s3 + $0x8] sm:$0xff] %v662_v16 }
  0xdd   : > { %v639_v18 = vpop.f32.mrf.mxu2  ;;  %v605_v21 = vpop.f32.mrf.mxu0 }
  0xde   : > { %v657_v19 = vpop.f32.mrf.mxu3  ;;  %v640_v20 = vadd.f32 %v639_v18, %v622_v17  ;;  %v623_v22 = vpop.f32.mrf.mxu1 }
  0xe0   : > { %v658_v24 = vadd.f32 %v657_v19, %v640_v20 }
  0xe2   : > { %v663_v25 = vadd.f32 %v658_v24, %v292_v23  ;;  %670 = sbr.rel (%p949_p11) target bundleno = 239 (0xef), region = 63 }
  0xe4   : > { %666 = vst [vmem:[%s1260_s3 + $0x10] sm:$0xff] %v663_v25 }
  0xe5   : > { %v641_v26 = vpop.f32.mrf.mxu2 }
  0xe6   : > { %v659_v27 = vpop.f32.mrf.mxu3 }
  0xe7   : > { %v671_v28 = vld [vmem:[%s1260_s3] sm:$0xff]  ;;  %v672_v30 = vld [vmem:[%s1260_s3 + $0x8] sm:$0xff] }
  0xe8   : > { %v1034_v29 = vld [vmem:[%s1259_s2] ss:$0 sm:$0xff] }
  0xe9   : > { %v678_v32 = vadd.f32 %v1034_v29, %v671_v28  ;;  %v679_v33 = vadd.f32 %v1034_v29, %v672_v30 }
  0xeb   : > { %v673_v31 = vld [vmem:[%s1260_s3 + $0x10] sm:$0xff]  ;;  %681 = vst [vmem:[%s1260_s3] sm:$0xff] %v678_v32 }
  0xec   : > { %v680_v34 = vadd.f32 %v1034_v29, %v673_v31  ;;  %682 = vst [vmem:[%s1260_s3 + $0x8] sm:$0xff] %v679_v33 }
  0xee   : > { %683 = vst [vmem:[%s1260_s3 + $0x10] sm:$0xff] %v680_v34 }
  0xef PF: > { %s13_s16 = sadd.s32 1, %s1073_s16   ;;  %s1261_s12 = smov %s1061_s13 }
  0xf0   : > { %p10_p12 = scmp.ge.s32.totalorder %s13_s16, 4   ;;  %s1262_s13 = smov %s1131_s20 }
  0xf1   : > { %s1263_s14 = smov %s1069_s15  ;;  %s1264_s15 = smov %s1266_s17 }
  0xf2   :  { %12 = sbr.rel (!%p10_p12) target bundleno = 3 (0x3), region = 104 }

</bundles_post_ra>
